<compile_context>
chip_gen: v7x
topology: tpu7x:2x2x1
jax: 0.10.0
libtpu: 0.0.40
codegen_flags: <defaults>
</compile_context>

<pallas_src>
import jax
import jax.numpy as jnp
from jax.experimental import pallas as pl
from jax.experimental.pallas import tpu as pltpu

CONFIG = {
    "max_n_electrodes": 130,
    "n_freq_features": 37,
    "max_n_time_bins": 10,
    "d_model": 128,
    "n_heads": 8,
    "n_layers": 6,
    "dropout": 0.1,   # module defines dropout but never applies it in forward
    "dim_output": 1,
}


def _pick_tile(n, target, mult):
    """Largest tile t <= target with n % t == 0 and (t % mult == 0 or t == n)."""
    if n <= target:
        return n
    t = (target // mult) * mult
    while t >= mult:
        if n % t == 0:
            return t
        t -= mult
    return n  # fall back to a single full block


# ----------------------------------------------------------------------------
# Linear projection kernel:  out = x @ W^T + b   (row-tiled, pipelined)
# ----------------------------------------------------------------------------
def _linear_kernel(x_ref, wt_ref, b_ref, o_ref):
    o_ref[...] = (
        jnp.dot(x_ref[...], wt_ref[...], preferred_element_type=jnp.float32)
        + b_ref[...]
    )


def pallas_linear(x2d, w, b, row_tile=256):
    """x2d: (N, d_in) f32, w: (d_out, d_in) torch convention, b: (d_out,)."""
    n, d_in = x2d.shape
    d_out = w.shape[0]
    tn = _pick_tile(n, row_tile, 8)          # rows per grid step
    return pl.pallas_call(
        _linear_kernel,
        out_shape=jax.ShapeDtypeStruct((n, d_out), jnp.float32),
        grid=(n // tn,),
        in_specs=[
            pl.BlockSpec((tn, d_in), lambda i: (i, 0)),
            pl.BlockSpec((d_in, d_out), lambda i: (0, 0)),   # resident weight
            pl.BlockSpec((1, d_out), lambda i: (0, 0)),      # resident bias
        ],
        out_specs=pl.BlockSpec((tn, d_out), lambda i: (i, 0)),
        compiler_params=pltpu.CompilerParams(
            dimension_semantics=("parallel",)),
    )(x2d, w.T, b.reshape(1, d_out))


# ----------------------------------------------------------------------------
# RoPE kernel in lane-dense (rows, d_model) layout.
#   out = x * C + shift_minus(x) * Sa + shift_plus(x) * Sb
# where shift_minus moves lane j+D4 -> j and shift_plus moves lane j-D4 -> j.
# Coefficient tables C/Sa/Sb are (1, T, d_model) and depend only on time bin t.
# The 1/sqrt(head_dim) scaling for q is folded into its tables.
# ----------------------------------------------------------------------------
def _make_rope_kernel(d4):
    def rope_kernel(x_ref, c_ref, sa_ref, sb_ref, o_ref):
        x = x_ref[...]                       # (G, T, D)
        d = x.shape[-1]
        # lane j <- lane j + d4   (wrap lanes are multiplied by 0 in Sa)
        x_m = jnp.concatenate([x[..., d4:], x[..., :d4]], axis=-1)
        # lane j <- lane j - d4   (wrap lanes are multiplied by 0 in Sb)
        x_p = jnp.concatenate([x[..., d - d4:], x[..., :d - d4]], axis=-1)
        o_ref[...] = x * c_ref[...] + x_m * sa_ref[...] + x_p * sb_ref[...]
    return rope_kernel


def pallas_rope(x3, C, Sa, Sb, d4, row_tile=64):
    """x3: (B*S*E, T, D) f32; C/Sa/Sb: (1, T, D) f32 coefficient tables."""
    n, t, d = x3.shape
    g = _pick_tile(n, row_tile, 1)
    coef_spec = pl.BlockSpec((1, t, d), lambda i: (0, 0, 0))
    return pl.pallas_call(
        _make_rope_kernel(d4),
        out_shape=jax.ShapeDtypeStruct((n, t, d), jnp.float32),
        grid=(n // g,),
        in_specs=[
            pl.BlockSpec((g, t, d), lambda i: (i, 0, 0)),
            coef_spec, coef_spec, coef_spec,
        ],
        out_specs=pl.BlockSpec((g, t, d), lambda i: (i, 0, 0)),
        compiler_params=pltpu.CompilerParams(
            dimension_semantics=("parallel",)),
    )(x3, C, Sa, Sb)


# ----------------------------------------------------------------------------
# Attention kernel: all heads per grid step, in-kernel mask from id vectors,
# masked softmax + PV, lane-dense (TQ, d_model) output.
# ----------------------------------------------------------------------------
def _make_attn_kernel(n_heads, head_dim):
    def attn_kernel(q_ref, k_ref, v_ref, tq_ref, eq_ref, tk_ref, ek_ref, o_ref):
        # ---- combined mask from per-position ids (no dense (L,L) HBM mask) ----
        # TODO(synk): arbitrary (non-standard) precomputed mask tables would need
        # a gather or dense-bias path; these compares implement the module's
        # standard causal=triu(k=1) / electrode=eye / electrode_time=~eye tables.
        tq = tq_ref[...]                      # (TQ, 1) int32 time-bin ids
        eq = eq_ref[...]                      # (TQ, 1) int32 electrode ids
        tk = tk_ref[...]                      # (1, Lk)
        ek = ek_ref[...]                      # (1, Lk)
        causal = tk > tq                                      # future time bins
        elec = (eq == ek) & (tq != tk)                        # same elec, diff t
        bias = jnp.where(causal | elec, -jnp.inf, 0.0)        # (TQ, Lk) f32

        q = q_ref[0]                          # (H, TQ, Dh)  RoPE'd, pre-scaled
        k = k_ref[0]                          # (H, Lk, Dh)  RoPE'd
        v = v_ref[0]                          # (H, Lk, Dh)

        s = jnp.einsum("hqd,hkd->hqk", q, k,
                       preferred_element_type=jnp.float32) + bias[None]
        m = jnp.max(s, axis=-1, keepdims=True)
        m_safe = jnp.where(m == -jnp.inf, 0.0, m)             # fully-masked rows
        p = jnp.exp(s - m_safe)                               # masked -> exp(-inf)=0
        denom = jnp.sum(p, axis=-1, keepdims=True)
        inv = jnp.where(denom > 0.0,
                        pl.reciprocal(denom, approx=True), 0.0)
        o = jnp.einsum("hqk,hkd->hqd", p * inv, v,
                       preferred_element_type=jnp.float32)    # (H, TQ, Dh)

        # assemble lane-dense (TQ, d_model) output: head h -> lanes [h*Dh, (h+1)*Dh)
        for h in range(n_heads):
            o_ref[0, :, h * head_dim:(h + 1) * head_dim] = o[h]

    return attn_kernel


def attention_core(q, k, v, tq_ids, eq_ids, tk_ids, ek_ids):
    """q/k/v: (B, H, L, Dh) f32 (RoPE applied, q pre-scaled). Returns (B, Lq, H*Dh)."""
    B, H, Lq, Dh = q.shape
    Lk = k.shape[2]
    D = H * Dh
    TQ = _pick_tile(Lq, 256, 8)               # q-row tile (caps live scores tile)
    return pl.pallas_call(
        _make_attn_kernel(H, Dh),
        out_shape=jax.ShapeDtypeStruct((B, Lq, D), jnp.float32),
        grid=(B, Lq // TQ),
        in_specs=[
            pl.BlockSpec((1, H, TQ, Dh), lambda b, i: (b, 0, i, 0)),
            pl.BlockSpec((1, H, Lk, Dh), lambda b, i: (b, 0, 0, 0)),
            pl.BlockSpec((1, H, Lk, Dh), lambda b, i: (b, 0, 0, 0)),
            pl.BlockSpec((TQ, 1), lambda b, i: (i, 0)),
            pl.BlockSpec((TQ, 1), lambda b, i: (i, 0)),
            pl.BlockSpec((1, Lk), lambda b, i: (0, 0)),
            pl.BlockSpec((1, Lk), lambda b, i: (0, 0)),
        ],
        out_specs=pl.BlockSpec((1, TQ, D), lambda b, i: (b, i, 0)),
        compiler_params=pltpu.CompilerParams(
            dimension_semantics=("parallel", "parallel"),
            vmem_limit_bytes=48 * 1024 * 1024),   # explicit budget (v7x: 64 MiB total)
    )(q, k, v, tq_ids, eq_ids, tk_ids, ek_ids)


# ----------------------------------------------------------------------------
# Full forward (Pallas kernels for the hot path, JAX glue for reshapes)
# ----------------------------------------------------------------------------
def rope_mha_forward(params, masks, query, key, value, config=CONFIG):
    Wq, bq, Wk, bk, Wv, bv, Wo, bo = params
    causal_mask, electrode_mask, electrode_time_mask, sin_tab, cos_tab = masks

    B, Sq, E, T, D = query.shape
    Sk = key.shape[1]
    H = config["n_heads"]
    Dh = D // H
    D4 = Dh // 4
    scaling = float(Dh) ** (-0.5)
    Lq = Sq * E * T
    Lk = Sk * E * T

    # ---- projections (tiled Pallas matmuls) ----
    q2 = pallas_linear(query.reshape(-1, D), Wq, bq)
    k2 = pallas_linear(key.reshape(-1, D), Wk, bk)
    v2 = pallas_linear(value.reshape(-1, D), Wv, bv)

    # ---- tiny (T, d_model) RoPE coefficient tables (torch bf16-casts cos/sin) ----
    cos_t = cos_tab[0, 0, 0, :T, 0, :].astype(jnp.bfloat16).astype(jnp.float32)  # (T, D4)
    sin_t = sin_tab[0, 0, 0, :T, 0, :].astype(jnp.bfloat16).astype(jnp.float32)
    ones_u = jnp.ones((T, Dh - 2 * D4), jnp.float32)
    zeros_u = jnp.zeros((T, Dh - 2 * D4), jnp.float32)
    zeros_q = jnp.zeros((T, D4), jnp.float32)
    c_head = jnp.concatenate([cos_t, cos_t, ones_u], axis=-1)        # (T, Dh)
    sa_head = jnp.concatenate([sin_t, zeros_q, zeros_u], axis=-1)    # uses lane j+D4
    sb_head = jnp.concatenate([zeros_q, -sin_t, zeros_u], axis=-1)   # uses lane j-D4
    C = jnp.tile(c_head, (1, H)).reshape(1, T, D)
    Sa = jnp.tile(sa_head, (1, H)).reshape(1, T, D)
    Sb = jnp.tile(sb_head, (1, H)).reshape(1, T, D)

    # ---- RoPE in lane-dense layout; fold 1/sqrt(Dh) scaling into q ----
    q_rope = pallas_rope(q2.reshape(B * Sq * E, T, D),
                         C * scaling, Sa * scaling, Sb * scaling, D4)
    k_rope = pallas_rope(k2.reshape(B * Sk * E, T, D), C, Sa, Sb, D4)

    def to_bhl(x, S):
        x = x.reshape(B, S, E, T, H, Dh)
        return jnp.transpose(x, (0, 4, 1, 2, 3, 5)).reshape(B, H, S * E * T, Dh)

    q = to_bhl(q_rope, Sq)
    k = to_bhl(k_rope, Sk)
    v = to_bhl(v2, Sk)

    # ---- per-position id vectors (replace the dense (Lq, Lk) mask) ----
    t_ids = jnp.tile(jnp.arange(T, dtype=jnp.int32), E)              # (E*T,)
    e_ids = jnp.repeat(jnp.arange(E, dtype=jnp.int32), T)            # (E*T,)
    tq_ids = jnp.tile(t_ids, Sq).reshape(Lq, 1)
    eq_ids = jnp.tile(e_ids, Sq).reshape(Lq, 1)
    tk_ids = jnp.tile(t_ids, Sk).reshape(1, Lk)
    ek_ids = jnp.tile(e_ids, Sk).reshape(1, Lk)

    # ---- attention: lane-dense (B, Lq, D) output, no post-transpose needed ----
    out = attention_core(q, k, v, tq_ids, eq_ids, tk_ids, ek_ids)

    out = pallas_linear(out.reshape(-1, D), Wo, bo)
    return out.reshape(B, Sq, E, T, D)


# ----------------------------------------------------------------------------
# Pure-JAX reference (mirrors the PyTorch forward) for correctness checking
# ----------------------------------------------------------------------------
def reference_forward(params, masks, query, key, value, config=CONFIG):
    Wq, bq, Wk, bk, Wv, bv, Wo, bo = params
    causal_mask, electrode_mask, electrode_time_mask, sin_tab, cos_tab = masks
    B, Sq, E, T, D = query.shape
    Sk = key.shape[1]
    H = config["n_heads"]
    Dh = D // H
    scaling = float(Dh) ** (-0.5)

    def lin(x, W, b):
        return jnp.dot(x, W.T, precision=jax.lax.Precision.HIGHEST) + b

    q = lin(query, Wq, bq).reshape(B, Sq, E, T, H, Dh)
    k = lin(key, Wk, bk).reshape(B, Sk, E, T, H, Dh)
    v = lin(value, Wv, bv).reshape(B, Sk, E, T, H, Dh)

    cos = cos_tab[:, :, :, :T, :, :].astype(jnp.bfloat16).astype(jnp.float32)
    sin = sin_tab[:, :, :, :T, :, :].astype(jnp.bfloat16).astype(jnp.float32)

    def rope(x):
        xl = x[..., : Dh // 4]
        xr = x[..., Dh // 4 : Dh // 2]
        xu = x[..., Dh // 2 :]
        xr_rot = xr * cos - xl * sin
        xl_rot = xl * cos + xr * sin
        return jnp.concatenate([xl_rot, xr_rot, xu], axis=-1)

    q = rope(q)
    k = rope(k)

    def to_bhl(x, S):
        return jnp.transpose(x, (0, 4, 1, 2, 3, 5)).reshape(B, H, S * E * T, Dh)

    q = to_bhl(q, Sq)
    k = to_bhl(k, Sk)
    v = to_bhl(v, Sk)

    attn = jnp.einsum("bhqd,bhkd->bhqk", q, k,
                      precision=jax.lax.Precision.HIGHEST) * scaling

    causal = causal_mask[:T, :T]
    et = electrode_time_mask[:T, :T]
    em = electrode_mask[:E, :E]
    elec = em[None, :, None, None, :, None] & et[None, None, :, None, None, :]
    comb = causal[None, None, :, None, None, :] | elec
    comb = jnp.broadcast_to(comb, (Sq, E, T, Sk, E, T)).reshape(Sq * E * T, Sk * E * T)

    attn = jnp.where(comb[None, None], -jnp.inf, attn)
    attn = jax.nn.softmax(attn, axis=-1)
    attn = jnp.where(jnp.isnan(attn), 0.0, attn)

    out = jnp.einsum("bhqk,bhkd->bhqd", attn, v,
                     precision=jax.lax.Precision.HIGHEST)
    out = out.reshape(B, H, Sq, E, T, Dh)
    out = jnp.transpose(out, (0, 2, 3, 4, 1, 5)).reshape(B, Sq, E, T, D)
    return lin(out, Wo, bo)


# ----------------------------------------------------------------------------
if __name__ == "__main__":
    D = CONFIG["d_model"]
    H = CONFIG["n_heads"]
    Dh = D // H
    D4 = Dh // 4
    Tmax = CONFIG["max_n_time_bins"]
    Emax = CONFIG["max_n_electrodes"]

    # deterministic precomputed masks / RoPE tables (shapes match module usage)
    causal_mask = jnp.triu(jnp.ones((Tmax, Tmax), dtype=bool), k=1)       # mask future
    electrode_time_mask = ~jnp.eye(Tmax, dtype=bool)                      # different time bins
    electrode_mask = jnp.eye(Emax, dtype=bool)                            # same electrode
    inv_freq = 1.0 / (10000.0 ** (jnp.arange(D4, dtype=jnp.float32) / D4))
    ang = jnp.arange(Tmax, dtype=jnp.float32)[:, None] * inv_freq[None, :]
    pos_enc_sin = jnp.sin(ang)[None, None, None, :, None, :]              # (1,1,1,Tmax,1,D4)
    pos_enc_cos = jnp.cos(ang)[None, None, None, :, None, :]
    masks = (causal_mask, electrode_mask, electrode_time_mask, pos_enc_sin, pos_enc_cos)

    # deterministic parameters
    root = jax.random.PRNGKey(0)
    ks = jax.random.split(root, 12)

    def init_linear(kw, kb):
        W = jax.random.normal(kw, (D, D), jnp.float32) * 0.05
        b = jax.random.normal(kb, (D,), jnp.float32) * 0.01
        return W, b

    Wq, bq = init_linear(ks[0], ks[1])
    Wk, bk = init_linear(ks[2], ks[3])
    Wv, bv = init_linear(ks[4], ks[5])
    Wo, bo = init_linear(ks[6], ks[7])
    params = (Wq, bq, Wk, bk, Wv, bv, Wo, bo)

    # small example input shapes consistent with the module's forward
    B, Sq, Sk, E, T = 2, 2, 2, 4, 4
    query = jax.random.normal(ks[8], (B, Sq, E, T, D), jnp.float32)
    key_in = jax.random.normal(ks[9], (B, Sk, E, T, D), jnp.float32)
    value = jax.random.normal(ks[10], (B, Sk, E, T, D), jnp.float32)

    fwd = jax.jit(rope_mha_forward)
    out = fwd(params, masks, query, key_in, value)
    out = jax.block_until_ready(out)

    ref = reference_forward(params, masks, query, key_in, value)
    assert out.shape == (B, Sq, E, T, D)
    assert bool(jnp.all(jnp.isfinite(out)))
    assert bool(jnp.allclose(out, ref, rtol=1e-2, atol=1e-2))

    print("KERNEL_OK")
</pallas_src>

<mosaic_0001>
module attributes {stable_mosaic.version = 11 : i64} {
  func.func @_linear_kernel(%arg0: i32, %arg1: memref<64x128xf32, #tpu.memory_space<vmem>>, %arg2: memref<128x128xf32, #tpu.memory_space<vmem>>, %arg3: memref<1x128xf32, #tpu.memory_space<vmem>>, %arg4: memref<64x128xf32, #tpu.memory_space<vmem>>) attributes {dimension_semantics = [#tpu.dimension_semantics<parallel>], iteration_bounds = array<i64: 1>, scalar_prefetch = 0 : i64, scratch_operands = 0 : i64, tpu.core_type = #tpu.core_type<tc>, window_params = [{transform_indices = @transform_0, window_bounds = array<i64: 64, 128>}, {pipeline_mode = #tpu.pipeline_mode<synchronous>, transform_indices = @transform_1, window_bounds = array<i64: 128, 128>}, {pipeline_mode = #tpu.pipeline_mode<synchronous>, transform_indices = @transform_2, window_bounds = array<i64: 1, 128>}, {transform_indices = @transform_3, window_bounds = array<i64: 64, 128>}]} {
    %c0 = arith.constant 0 : index
    %c0_0 = arith.constant 0 : index
    %0 = vector.load %arg1[%c0, %c0_0] : memref<64x128xf32, #tpu.memory_space<vmem>>, vector<64x128xf32>
    %c0_1 = arith.constant 0 : index
    %c0_2 = arith.constant 0 : index
    %1 = vector.load %arg2[%c0_1, %c0_2] : memref<128x128xf32, #tpu.memory_space<vmem>>, vector<128x128xf32>
    %cst = arith.constant dense<0.000000e+00> : vector<64x128xf32>
    %2 = tpu.matmul %0, %1, %cst {dimension_numbers = #tpu.dot_dimension_numbers<[1], [0], [0], [1], [0, 0, 1, 1], [], []>} : vector<64x128xf32>, vector<128x128xf32>, vector<64x128xf32> -> vector<64x128xf32>
    %c0_3 = arith.constant 0 : index
    %c0_4 = arith.constant 0 : index
    %3 = vector.load %arg3[%c0_3, %c0_4] : memref<1x128xf32, #tpu.memory_space<vmem>>, vector<1x128xf32>
    %4 = vector.broadcast %3 : vector<1x128xf32> to vector<64x128xf32>
    %5 = arith.addf %2, %4 : vector<64x128xf32>
    %c0_5 = arith.constant 0 : index
    %c0_6 = arith.constant 0 : index
    %6 = vector.load %arg4[%c0_5, %c0_6] : memref<64x128xf32, #tpu.memory_space<vmem>>, vector<64x128xf32>
    tpu.vector_store %arg4[%c0_5, %c0_6], %5 {strides = array<i32>} : memref<64x128xf32, #tpu.memory_space<vmem>>, vector<64x128xf32>,
    return
  }
  func.func @transform_0(%arg0: i32) -> (i32, i32) {
    %c0_i32 = arith.constant 0 : i32
    %c0_i32_0 = arith.constant 0 : i32
    return %arg0, %c0_i32 : i32, i32
  }
  func.func @transform_1(%arg0: i32) -> (i32, i32) {
    %c0_i32 = arith.constant 0 : i32
    %c0_i32_0 = arith.constant 0 : i32
    %c0_i32_1 = arith.constant 0 : i32
    return %c0_i32, %c0_i32_0 : i32, i32
  }
  func.func @transform_2(%arg0: i32) -> (i32, i32) {
    %c0_i32 = arith.constant 0 : i32
    %c0_i32_0 = arith.constant 0 : i32
    %c0_i32_1 = arith.constant 0 : i32
    return %c0_i32, %c0_i32_0 : i32, i32
  }
  func.func @transform_3(%arg0: i32) -> (i32, i32) {
    %c0_i32 = arith.constant 0 : i32
    %c0_i32_0 = arith.constant 0 : i32
    return %arg0, %c0_i32 : i32, i32
  }
}

module attributes {stable_mosaic.version = 11 : i64} {
  func.func @rope_kernel(%arg0: i32, %arg1: memref<16x4x128xf32, #tpu.memory_space<vmem>>, %arg2: memref<1x4x128xf32, #tpu.memory_space<vmem>>, %arg3: memref<1x4x128xf32, #tpu.memory_space<vmem>>, %arg4: memref<1x4x128xf32, #tpu.memory_space<vmem>>, %arg5: memref<16x4x128xf32, #tpu.memory_space<vmem>>) attributes {dimension_semantics = [#tpu.dimension_semantics<parallel>], iteration_bounds = array<i64: 1>, scalar_prefetch = 0 : i64, scratch_operands = 0 : i64, tpu.core_type = #tpu.core_type<tc>, window_params = [{transform_indices = @transform_0, window_bounds = array<i64: 16, 4, 128>}, {pipeline_mode = #tpu.pipeline_mode<synchronous>, transform_indices = @transform_1, window_bounds = array<i64: 1, 4, 128>}, {pipeline_mode = #tpu.pipeline_mode<synchronous>, transform_indices = @transform_2, window_bounds = array<i64: 1, 4, 128>}, {pipeline_mode = #tpu.pipeline_mode<synchronous>, transform_indices = @transform_3, window_bounds = array<i64: 1, 4, 128>}, {transform_indices = @transform_4, window_bounds = array<i64: 16, 4, 128>}]} {
    %c0 = arith.constant 0 : index
    %c0_0 = arith.constant 0 : index
    %c0_1 = arith.constant 0 : index
    %0 = vector.load %arg1[%c0, %c0_0, %c0_1] : memref<16x4x128xf32, #tpu.memory_space<vmem>>, vector<16x4x128xf32>
    %1 = vector.extract_strided_slice %0 {offsets = [0, 0, 4], sizes = [16, 4, 124], strides = [1, 1, 1]} : vector<16x4x128xf32> to vector<16x4x124xf32>
    %2 = vector.extract_strided_slice %0 {offsets = [0, 0, 0], sizes = [16, 4, 4], strides = [1, 1, 1]} : vector<16x4x128xf32> to vector<16x4x4xf32>
    %3 = tpu.concatenate %1, %2 in 2 : vector<16x4x124xf32>, vector<16x4x4xf32> -> vector<16x4x128xf32>
    %4 = vector.extract_strided_slice %0 {offsets = [0, 0, 124], sizes = [16, 4, 4], strides = [1, 1, 1]} : vector<16x4x128xf32> to vector<16x4x4xf32>
    %5 = vector.extract_strided_slice %0 {offsets = [0, 0, 0], sizes = [16, 4, 124], strides = [1, 1, 1]} : vector<16x4x128xf32> to vector<16x4x124xf32>
    %6 = tpu.concatenate %4, %5 in 2 : vector<16x4x4xf32>, vector<16x4x124xf32> -> vector<16x4x128xf32>
    %c0_2 = arith.constant 0 : index
    %c0_3 = arith.constant 0 : index
    %c0_4 = arith.constant 0 : index
    %7 = vector.load %arg2[%c0_2, %c0_3, %c0_4] : memref<1x4x128xf32, #tpu.memory_space<vmem>>, vector<1x4x128xf32>
    %8 = vector.broadcast %7 : vector<1x4x128xf32> to vector<16x4x128xf32>
    %9 = arith.mulf %0, %8 : vector<16x4x128xf32>
    %c0_5 = arith.constant 0 : index
    %c0_6 = arith.constant 0 : index
    %c0_7 = arith.constant 0 : index
    %10 = vector.load %arg3[%c0_5, %c0_6, %c0_7] : memref<1x4x128xf32, #tpu.memory_space<vmem>>, vector<1x4x128xf32>
    %11 = vector.broadcast %10 : vector<1x4x128xf32> to vector<16x4x128xf32>
    %12 = arith.mulf %3, %11 : vector<16x4x128xf32>
    %13 = arith.addf %9, %12 : vector<16x4x128xf32>
    %c0_8 = arith.constant 0 : index
    %c0_9 = arith.constant 0 : index
    %c0_10 = arith.constant 0 : index
    %14 = vector.load %arg4[%c0_8, %c0_9, %c0_10] : memref<1x4x128xf32, #tpu.memory_space<vmem>>, vector<1x4x128xf32>
    %15 = vector.broadcast %14 : vector<1x4x128xf32> to vector<16x4x128xf32>
    %16 = arith.mulf %6, %15 : vector<16x4x128xf32>
    %17 = arith.addf %13, %16 : vector<16x4x128xf32>
    %c0_11 = arith.constant 0 : index
    %c0_12 = arith.constant 0 : index
    %c0_13 = arith.constant 0 : index
    %18 = vector.load %arg5[%c0_11, %c0_12, %c0_13] : memref<16x4x128xf32, #tpu.memory_space<vmem>>, vector<16x4x128xf32>
    tpu.vector_store %arg5[%c0_11, %c0_12, %c0_13], %17 {strides = array<i32>} : memref<16x4x128xf32, #tpu.memory_space<vmem>>, vector<16x4x128xf32>,
    return
  }
  func.func @transform_0(%arg0: i32) -> (i32, i32, i32) {
    %c0_i32 = arith.constant 0 : i32
    %c0_i32_0 = arith.constant 0 : i32
    %c0_i32_1 = arith.constant 0 : i32
    return %arg0, %c0_i32, %c0_i32_0 : i32, i32, i32
  }
  func.func @transform_1(%arg0: i32) -> (i32, i32, i32) {
    %c0_i32 = arith.constant 0 : i32
    %c0_i32_0 = arith.constant 0 : i32
    %c0_i32_1 = arith.constant 0 : i32
    %c0_i32_2 = arith.constant 0 : i32
    return %c0_i32, %c0_i32_0, %c0_i32_1 : i32, i32, i32
  }
  func.func @transform_2(%arg0: i32) -> (i32, i32, i32) {
    %c0_i32 = arith.constant 0 : i32
    %c0_i32_0 = arith.constant 0 : i32
    %c0_i32_1 = arith.constant 0 : i32
    %c0_i32_2 = arith.constant 0 : i32
    return %c0_i32, %c0_i32_0, %c0_i32_1 : i32, i32, i32
  }
  func.func @transform_3(%arg0: i32) -> (i32, i32, i32) {
    %c0_i32 = arith.constant 0 : i32
    %c0_i32_0 = arith.constant 0 : i32
    %c0_i32_1 = arith.constant 0 : i32
    %c0_i32_2 = arith.constant 0 : i32
    return %c0_i32, %c0_i32_0, %c0_i32_1 : i32, i32, i32
  }
  func.func @transform_4(%arg0: i32) -> (i32, i32, i32) {
    %c0_i32 = arith.constant 0 : i32
    %c0_i32_0 = arith.constant 0 : i32
    %c0_i32_1 = arith.constant 0 : i32
    return %arg0, %c0_i32, %c0_i32_0 : i32, i32, i32
  }
}

module attributes {stable_mosaic.version = 11 : i64} {
  func.func @_linear_kernel(%arg0: i32, %arg1: memref<64x128xf32, #tpu.memory_space<vmem>>, %arg2: memref<128x128xf32, #tpu.memory_space<vmem>>, %arg3: memref<1x128xf32, #tpu.memory_space<vmem>>, %arg4: memref<64x128xf32, #tpu.memory_space<vmem>>) attributes {dimension_semantics = [#tpu.dimension_semantics<parallel>], iteration_bounds = array<i64: 1>, scalar_prefetch = 0 : i64, scratch_operands = 0 : i64, tpu.core_type = #tpu.core_type<tc>, window_params = [{transform_indices = @transform_0, window_bounds = array<i64: 64, 128>}, {pipeline_mode = #tpu.pipeline_mode<synchronous>, transform_indices = @transform_1, window_bounds = array<i64: 128, 128>}, {pipeline_mode = #tpu.pipeline_mode<synchronous>, transform_indices = @transform_2, window_bounds = array<i64: 1, 128>}, {transform_indices = @transform_3, window_bounds = array<i64: 64, 128>}]} {
    %c0 = arith.constant 0 : index
    %c0_0 = arith.constant 0 : index
    %0 = vector.load %arg1[%c0, %c0_0] : memref<64x128xf32, #tpu.memory_space<vmem>>, vector<64x128xf32>
    %c0_1 = arith.constant 0 : index
    %c0_2 = arith.constant 0 : index
    %1 = vector.load %arg2[%c0_1, %c0_2] : memref<128x128xf32, #tpu.memory_space<vmem>>, vector<128x128xf32>
    %cst = arith.constant dense<0.000000e+00> : vector<64x128xf32>
    %2 = tpu.matmul %0, %1, %cst {dimension_numbers = #tpu.dot_dimension_numbers<[1], [0], [0], [1], [0, 0, 1, 1], [], []>} : vector<64x128xf32>, vector<128x128xf32>, vector<64x128xf32> -> vector<64x128xf32>
    %c0_3 = arith.constant 0 : index
    %c0_4 = arith.constant 0 : index
    %3 = vector.load %arg3[%c0_3, %c0_4] : memref<1x128xf32, #tpu.memory_space<vmem>>, vector<1x128xf32>
    %4 = vector.broadcast %3 : vector<1x128xf32> to vector<64x128xf32>
    %5 = arith.addf %2, %4 : vector<64x128xf32>
    %c0_5 = arith.constant 0 : index
    %c0_6 = arith.constant 0 : index
    %6 = vector.load %arg4[%c0_5, %c0_6] : memref<64x128xf32, #tpu.memory_space<vmem>>, vector<64x128xf32>
    tpu.vector_store %arg4[%c0_5, %c0_6], %5 {strides = array<i32>} : memref<64x128xf32, #tpu.memory_space<vmem>>, vector<64x128xf32>,
    return
  }
  func.func @transform_0(%arg0: i32) -> (i32, i32) {
    %c0_i32 = arith.constant 0 : i32
    %c0_i32_0 = arith.constant 0 : i32
    return %arg0, %c0_i32 : i32, i32
  }
  func.func @transform_1(%arg0: i32) -> (i32, i32) {
    %c0_i32 = arith.constant 0 : i32
    %c0_i32_0 = arith.constant 0 : i32
    %c0_i32_1 = arith.constant 0 : i32
    return %c0_i32, %c0_i32_0 : i32, i32
  }
  func.func @transform_2(%arg0: i32) -> (i32, i32) {
    %c0_i32 = arith.constant 0 : i32
    %c0_i32_0 = arith.constant 0 : i32
    %c0_i32_1 = arith.constant 0 : i32
    return %c0_i32, %c0_i32_0 : i32, i32
  }
  func.func @transform_3(%arg0: i32) -> (i32, i32) {
    %c0_i32 = arith.constant 0 : i32
    %c0_i32_0 = arith.constant 0 : i32
    return %arg0, %c0_i32 : i32, i32
  }
}

module attributes {stable_mosaic.version = 11 : i64} {
  func.func @attn_kernel(%arg0: i32, %arg1: i32, %arg2: memref<1x8x32x16xf32, #tpu.memory_space<vmem>>, %arg3: memref<1x8x32x16xf32, #tpu.memory_space<vmem>>, %arg4: memref<1x8x32x16xf32, #tpu.memory_space<vmem>>, %arg5: memref<32x1xi32, #tpu.memory_space<vmem>>, %arg6: memref<32x1xi32, #tpu.memory_space<vmem>>, %arg7: memref<1x32xi32, #tpu.memory_space<vmem>>, %arg8: memref<1x32xi32, #tpu.memory_space<vmem>>, %arg9: memref<1x32x128xf32, #tpu.memory_space<vmem>>) attributes {dimension_semantics = [#tpu.dimension_semantics<parallel>, #tpu.dimension_semantics<parallel>], iteration_bounds = array<i64: 2, 1>, scalar_prefetch = 0 : i64, scratch_operands = 0 : i64, tpu.core_type = #tpu.core_type<tc>, window_params = [{transform_indices = @transform_0, window_bounds = array<i64: 1, 8, 32, 16>}, {transform_indices = @transform_1, window_bounds = array<i64: 1, 8, 32, 16>}, {transform_indices = @transform_2, window_bounds = array<i64: 1, 8, 32, 16>}, {transform_indices = @transform_3, window_bounds = array<i64: 32, 1>}, {transform_indices = @transform_4, window_bounds = array<i64: 32, 1>}, {pipeline_mode = #tpu.pipeline_mode<synchronous>, transform_indices = @transform_5, window_bounds = array<i64: 1, 32>}, {pipeline_mode = #tpu.pipeline_mode<synchronous>, transform_indices = @transform_6, window_bounds = array<i64: 1, 32>}, {transform_indices = @transform_7, window_bounds = array<i64: 1, 32, 128>}]} {
    %c0 = arith.constant 0 : index
    %c0_0 = arith.constant 0 : index
    %0 = vector.load %arg5[%c0, %c0_0] : memref<32x1xi32, #tpu.memory_space<vmem>>, vector<32x1xi32>
    %c0_1 = arith.constant 0 : index
    %c0_2 = arith.constant 0 : index
    %1 = vector.load %arg6[%c0_1, %c0_2] : memref<32x1xi32, #tpu.memory_space<vmem>>, vector<32x1xi32>
    %c0_3 = arith.constant 0 : index
    %c0_4 = arith.constant 0 : index
    %2 = vector.load %arg7[%c0_3, %c0_4] : memref<1x32xi32, #tpu.memory_space<vmem>>, vector<1x32xi32>
    %c0_5 = arith.constant 0 : index
    %c0_6 = arith.constant 0 : index
    %3 = vector.load %arg8[%c0_5, %c0_6] : memref<1x32xi32, #tpu.memory_space<vmem>>, vector<1x32xi32>
    %4 = vector.broadcast %2 : vector<1x32xi32> to vector<32x32xi32>
    %5 = vector.broadcast %0 : vector<32x1xi32> to vector<32x32xi32>
    %6 = arith.cmpi sgt, %4, %5 : vector<32x32xi32>
    %7 = vector.broadcast %1 : vector<32x1xi32> to vector<32x32xi32>
    %8 = vector.broadcast %3 : vector<1x32xi32> to vector<32x32xi32>
    %9 = arith.cmpi eq, %7, %8 : vector<32x32xi32>
    %10 = vector.broadcast %0 : vector<32x1xi32> to vector<32x32xi32>
    %11 = vector.broadcast %2 : vector<1x32xi32> to vector<32x32xi32>
    %12 = arith.cmpi ne, %10, %11 : vector<32x32xi32>
    %13 = arith.andi %9, %12 : vector<32x32xi1>
    %14 = arith.ori %6, %13 : vector<32x32xi1>
    %cst = arith.constant 0xFF800000 : f32
    %cst_7 = arith.constant 0.000000e+00 : f32
    %15 = vector.broadcast %cst : f32 to vector<32x32xf32>
    %16 = vector.broadcast %cst_7 : f32 to vector<32x32xf32>
    %17 = arith.select %14, %15, %16 : vector<32x32xi1>, vector<32x32xf32>
    %c0_8 = arith.constant 0 : index
    %c0_9 = arith.constant 0 : index
    %c0_10 = arith.constant 0 : index
    %c0_11 = arith.constant 0 : index
    %18 = vector.load %arg2[%c0_8, %c0_9, %c0_10, %c0_11] : memref<1x8x32x16xf32, #tpu.memory_space<vmem>>, vector<1x8x32x16xf32>
    %19 = vector.shape_cast %18 : vector<1x8x32x16xf32> to vector<8x32x16xf32>
    %c0_12 = arith.constant 0 : index
    %c0_13 = arith.constant 0 : index
    %c0_14 = arith.constant 0 : index
    %c0_15 = arith.constant 0 : index
    %20 = vector.load %arg3[%c0_12, %c0_13, %c0_14, %c0_15] : memref<1x8x32x16xf32, #tpu.memory_space<vmem>>, vector<1x8x32x16xf32>
    %21 = vector.shape_cast %20 : vector<1x8x32x16xf32> to vector<8x32x16xf32>
    %c0_16 = arith.constant 0 : index
    %c0_17 = arith.constant 0 : index
    %c0_18 = arith.constant 0 : index
    %c0_19 = arith.constant 0 : index
    %22 = vector.load %arg4[%c0_16, %c0_17, %c0_18, %c0_19] : memref<1x8x32x16xf32, #tpu.memory_space<vmem>>, vector<1x8x32x16xf32>
    %23 = vector.shape_cast %22 : vector<1x8x32x16xf32> to vector<8x32x16xf32>
    "tpu.trace_start"() <{level = 10 : i32, message = "hqd,hkd->hqk"}> : () -> ()
    %cst_20 = arith.constant dense<0.000000e+00> : vector<8x32x32xf32>
    %24 = tpu.matmul %19, %21, %cst_20 {dimension_numbers = #tpu.dot_dimension_numbers<[2], [2], [1], [1], [0, 0, 0, 1, 1, 1], [0], [0]>} : vector<8x32x16xf32>, vector<8x32x16xf32>, vector<8x32x32xf32> -> vector<8x32x32xf32>
    "tpu.trace_stop"() : () -> ()
    %25 = vector.shape_cast %17 : vector<32x32xf32> to vector<1x32x32xf32>
    %26 = vector.broadcast %25 : vector<1x32x32xf32> to vector<8x32x32xf32>
    %27 = arith.addf %24, %26 : vector<8x32x32xf32>
    %cst_21 = arith.constant dense<0xFF800000> : vector<8x32xf32>
    %28 = vector.multi_reduction <maximumf>, %27, %cst_21 [2] : vector<8x32x32xf32> to vector<8x32xf32>
    %29 = vector.shape_cast %28 : vector<8x32xf32> to vector<8x32x1xf32>
    %cst_22 = arith.constant 0xFF800000 : f32
    %30 = vector.broadcast %cst_22 : f32 to vector<8x32x1xf32>
    %31 = arith.cmpf oeq, %29, %30 : vector<8x32x1xf32>
    %cst_23 = arith.constant 0.000000e+00 : f32
    %32 = vector.broadcast %cst_23 : f32 to vector<8x32x1xf32>
    %33 = arith.select %31, %32, %29 : vector<8x32x1xi1>, vector<8x32x1xf32>
    %34 = vector.broadcast %33 : vector<8x32x1xf32> to vector<8x32x32xf32>
    %35 = arith.subf %27, %34 : vector<8x32x32xf32>
    %36 = math.exp %35 : vector<8x32x32xf32>
    %cst_24 = arith.constant dense<0.000000e+00> : vector<8x32xf32>
    %37 = vector.multi_reduction <add>, %36, %cst_24 [2] : vector<8x32x32xf32> to vector<8x32xf32>
    %38 = vector.shape_cast %37 : vector<8x32xf32> to vector<8x32x1xf32>
    %cst_25 = arith.constant 0.000000e+00 : f32
    %39 = vector.broadcast %cst_25 : f32 to vector<8x32x1xf32>
    %40 = arith.cmpf ogt, %38, %39 : vector<8x32x1xf32>
    %41 = tpu.reciprocal %38 {approx = true} : vector<8x32x1xf32> -> vector<8x32x1xf32>
    %cst_26 = arith.constant 0.000000e+00 : f32
    %42 = vector.broadcast %cst_26 : f32 to vector<8x32x1xf32>
    %43 = arith.select %40, %41, %42 : vector<8x32x1xi1>, vector<8x32x1xf32>
    %44 = vector.broadcast %43 : vector<8x32x1xf32> to vector<8x32x32xf32>
    %45 = arith.mulf %36, %44 : vector<8x32x32xf32>
    "tpu.trace_start"() <{level = 10 : i32, message = "hqk,hkd->hqd"}> : () -> ()
    %cst_27 = arith.constant dense<0.000000e+00> : vector<8x32x16xf32>
    %46 = tpu.matmul %45, %23, %cst_27 {dimension_numbers = #tpu.dot_dimension_numbers<[2], [1], [1], [2], [0, 0, 0, 1, 1, 2], [0], [0]>} : vector<8x32x32xf32>, vector<8x32x16xf32>, vector<8x32x16xf32> -> vector<8x32x16xf32>
    "tpu.trace_stop"() : () -> ()
    %47 = vector.extract_strided_slice %46 {offsets = [0, 0, 0], sizes = [1, 32, 16], strides = [1, 1, 1]} : vector<8x32x16xf32> to vector<1x32x16xf32>
    %48 = vector.shape_cast %47 : vector<1x32x16xf32> to vector<32x16xf32>
    %c0_28 = arith.constant 0 : index
    %c0_29 = arith.constant 0 : index
    %c0_30 = arith.constant 0 : index
    %49 = vector.load %arg9[%c0_28, %c0_29, %c0_30] : memref<1x32x128xf32, #tpu.memory_space<vmem>>, vector<1x32x16xf32>
    %50 = vector.shape_cast %49 : vector<1x32x16xf32> to vector<32x16xf32>
    %51 = vector.shape_cast %48 : vector<32x16xf32> to vector<1x32x16xf32>
    tpu.vector_store %arg9[%c0_28, %c0_29, %c0_30], %51 {strides = array<i32>} : memref<1x32x128xf32, #tpu.memory_space<vmem>>, vector<1x32x16xf32>,
    %52 = vector.extract_strided_slice %46 {offsets = [1, 0, 0], sizes = [1, 32, 16], strides = [1, 1, 1]} : vector<8x32x16xf32> to vector<1x32x16xf32>
    %53 = vector.shape_cast %52 : vector<1x32x16xf32> to vector<32x16xf32>
    %c0_31 = arith.constant 0 : index
    %c0_32 = arith.constant 0 : index
    %c16 = arith.constant 16 : index
    %54 = vector.load %arg9[%c0_31, %c0_32, %c16] : memref<1x32x128xf32, #tpu.memory_space<vmem>>, vector<1x32x16xf32>
    %55 = vector.shape_cast %54 : vector<1x32x16xf32> to vector<32x16xf32>
    %56 = vector.shape_cast %53 : vector<32x16xf32> to vector<1x32x16xf32>
    tpu.vector_store %arg9[%c0_31, %c0_32, %c16], %56 {strides = array<i32>} : memref<1x32x128xf32, #tpu.memory_space<vmem>>, vector<1x32x16xf32>,
    %57 = vector.extract_strided_slice %46 {offsets = [2, 0, 0], sizes = [1, 32, 16], strides = [1, 1, 1]} : vector<8x32x16xf32> to vector<1x32x16xf32>
    %58 = vector.shape_cast %57 : vector<1x32x16xf32> to vector<32x16xf32>
    %c0_33 = arith.constant 0 : index
    %c0_34 = arith.constant 0 : index
    %c32 = arith.constant 32 : index
    %59 = vector.load %arg9[%c0_33, %c0_34, %c32] : memref<1x32x128xf32, #tpu.memory_space<vmem>>, vector<1x32x16xf32>
    %60 = vector.shape_cast %59 : vector<1x32x16xf32> to vector<32x16xf32>
    %61 = vector.shape_cast %58 : vector<32x16xf32> to vector<1x32x16xf32>
    tpu.vector_store %arg9[%c0_33, %c0_34, %c32], %61 {strides = array<i32>} : memref<1x32x128xf32, #tpu.memory_space<vmem>>, vector<1x32x16xf32>,
    %62 = vector.extract_strided_slice %46 {offsets = [3, 0, 0], sizes = [1, 32, 16], strides = [1, 1, 1]} : vector<8x32x16xf32> to vector<1x32x16xf32>
    %63 = vector.shape_cast %62 : vector<1x32x16xf32> to vector<32x16xf32>
    %c0_35 = arith.constant 0 : index
    %c0_36 = arith.constant 0 : index
    %c48 = arith.constant 48 : index
    %64 = vector.load %arg9[%c0_35, %c0_36, %c48] : memref<1x32x128xf32, #tpu.memory_space<vmem>>, vector<1x32x16xf32>
    %65 = vector.shape_cast %64 : vector<1x32x16xf32> to vector<32x16xf32>
    %66 = vector.shape_cast %63 : vector<32x16xf32> to vector<1x32x16xf32>
    tpu.vector_store %arg9[%c0_35, %c0_36, %c48], %66 {strides = array<i32>} : memref<1x32x128xf32, #tpu.memory_space<vmem>>, vector<1x32x16xf32>,
    %67 = vector.extract_strided_slice %46 {offsets = [4, 0, 0], sizes = [1, 32, 16], strides = [1, 1, 1]} : vector<8x32x16xf32> to vector<1x32x16xf32>
    %68 = vector.shape_cast %67 : vector<1x32x16xf32> to vector<32x16xf32>
    %c0_37 = arith.constant 0 : index
    %c0_38 = arith.constant 0 : index
    %c64 = arith.constant 64 : index
    %69 = vector.load %arg9[%c0_37, %c0_38, %c64] : memref<1x32x128xf32, #tpu.memory_space<vmem>>, vector<1x32x16xf32>
    %70 = vector.shape_cast %69 : vector<1x32x16xf32> to vector<32x16xf32>
    %71 = vector.shape_cast %68 : vector<32x16xf32> to vector<1x32x16xf32>
    tpu.vector_store %arg9[%c0_37, %c0_38, %c64], %71 {strides = array<i32>} : memref<1x32x128xf32, #tpu.memory_space<vmem>>, vector<1x32x16xf32>,
    %72 = vector.extract_strided_slice %46 {offsets = [5, 0, 0], sizes = [1, 32, 16], strides = [1, 1, 1]} : vector<8x32x16xf32> to vector<1x32x16xf32>
    %73 = vector.shape_cast %72 : vector<1x32x16xf32> to vector<32x16xf32>
    %c0_39 = arith.constant 0 : index
    %c0_40 = arith.constant 0 : index
    %c80 = arith.constant 80 : index
    %74 = vector.load %arg9[%c0_39, %c0_40, %c80] : memref<1x32x128xf32, #tpu.memory_space<vmem>>, vector<1x32x16xf32>
    %75 = vector.shape_cast %74 : vector<1x32x16xf32> to vector<32x16xf32>
    %76 = vector.shape_cast %73 : vector<32x16xf32> to vector<1x32x16xf32>
    tpu.vector_store %arg9[%c0_39, %c0_40, %c80], %76 {strides = array<i32>} : memref<1x32x128xf32, #tpu.memory_space<vmem>>, vector<1x32x16xf32>,
    %77 = vector.extract_strided_slice %46 {offsets = [6, 0, 0], sizes = [1, 32, 16], strides = [1, 1, 1]} : vector<8x32x16xf32> to vector<1x32x16xf32>
    %78 = vector.shape_cast %77 : vector<1x32x16xf32> to vector<32x16xf32>
    %c0_41 = arith.constant 0 : index
    %c0_42 = arith.constant 0 : index
    %c96 = arith.constant 96 : index
    %79 = vector.load %arg9[%c0_41, %c0_42, %c96] : memref<1x32x128xf32, #tpu.memory_space<vmem>>, vector<1x32x16xf32>
    %80 = vector.shape_cast %79 : vector<1x32x16xf32> to vector<32x16xf32>
    %81 = vector.shape_cast %78 : vector<32x16xf32> to vector<1x32x16xf32>
    tpu.vector_store %arg9[%c0_41, %c0_42, %c96], %81 {strides = array<i32>} : memref<1x32x128xf32, #tpu.memory_space<vmem>>, vector<1x32x16xf32>,
    %82 = vector.extract_strided_slice %46 {offsets = [7, 0, 0], sizes = [1, 32, 16], strides = [1, 1, 1]} : vector<8x32x16xf32> to vector<1x32x16xf32>
    %83 = vector.shape_cast %82 : vector<1x32x16xf32> to vector<32x16xf32>
    %c0_43 = arith.constant 0 : index
    %c0_44 = arith.constant 0 : index
    %c112 = arith.constant 112 : index
    %84 = vector.load %arg9[%c0_43, %c0_44, %c112] : memref<1x32x128xf32, #tpu.memory_space<vmem>>, vector<1x32x16xf32>
    %85 = vector.shape_cast %84 : vector<1x32x16xf32> to vector<32x16xf32>
    %86 = vector.shape_cast %83 : vector<32x16xf32> to vector<1x32x16xf32>
    tpu.vector_store %arg9[%c0_43, %c0_44, %c112], %86 {strides = array<i32>} : memref<1x32x128xf32, #tpu.memory_space<vmem>>, vector<1x32x16xf32>,
    return
  }
  func.func @transform_0(%arg0: i32, %arg1: i32) -> (i32, i32, i32, i32) {
    %c0_i32 = arith.constant 0 : i32
    %c0_i32_0 = arith.constant 0 : i32
    %c0_i32_1 = arith.constant 0 : i32
    return %arg0, %c0_i32, %arg1, %c0_i32_0 : i32, i32, i32, i32
  }
  func.func @transform_1(%arg0: i32, %arg1: i32) -> (i32, i32, i32, i32) {
    %c0_i32 = arith.constant 0 : i32
    %c0_i32_0 = arith.constant 0 : i32
    %c0_i32_1 = arith.constant 0 : i32
    %c0_i32_2 = arith.constant 0 : i32
    return %arg0, %c0_i32, %c0_i32_0, %c0_i32_1 : i32, i32, i32, i32
  }
  func.func @transform_2(%arg0: i32, %arg1: i32) -> (i32, i32, i32, i32) {
    %c0_i32 = arith.constant 0 : i32
    %c0_i32_0 = arith.constant 0 : i32
    %c0_i32_1 = arith.constant 0 : i32
    %c0_i32_2 = arith.constant 0 : i32
    return %arg0, %c0_i32, %c0_i32_0, %c0_i32_1 : i32, i32, i32, i32
  }
  func.func @transform_3(%arg0: i32, %arg1: i32) -> (i32, i32) {
    %c0_i32 = arith.constant 0 : i32
    %c0_i32_0 = arith.constant 0 : i32
    return %arg1, %c0_i32 : i32, i32
  }
  func.func @transform_4(%arg0: i32, %arg1: i32) -> (i32, i32) {
    %c0_i32 = arith.constant 0 : i32
    %c0_i32_0 = arith.constant 0 : i32
    return %arg1, %c0_i32 : i32, i32
  }
  func.func @transform_5(%arg0: i32, %arg1: i32) -> (i32, i32) {
    %c0_i32 = arith.constant 0 : i32
    %c0_i32_0 = arith.constant 0 : i32
    %c0_i32_1 = arith.constant 0 : i32
    return %c0_i32, %c0_i32_0 : i32, i32
  }
  func.func @transform_6(%arg0: i32, %arg1: i32) -> (i32, i32) {
    %c0_i32 = arith.constant 0 : i32
    %c0_i32_0 = arith.constant 0 : i32
    %c0_i32_1 = arith.constant 0 : i32
    return %c0_i32, %c0_i32_0 : i32, i32
  }
  func.func @transform_7(%arg0: i32, %arg1: i32) -> (i32, i32, i32) {
    %c0_i32 = arith.constant 0 : i32
    %c0_i32_0 = arith.constant 0 : i32
    return %arg0, %arg1, %c0_i32 : i32, i32, i32
  }
}

</mosaic_0001>

<bundles_post_ra>
// kernel: tile.58
= control target key start
LH: loop header
LB: loop body
LE: loop exit
PB: predicated region body
PF: predicated region fallthrough
CT: control target
= control target key end

     0   :  { %vm7_vm0 = vcmask 31744   ;;  %s37_s8 = smov 4   ;;  %s38_s9 = smov 8   ;;  %vm13_vm1 = vcmask 130144   ;;  %vm19_vm2 = vcmask 97344   ;;  %vm25_vm3 = vcmask 64544   ;;  %s55_s0 = inlined_call_operand.vmem [shape: s32[4,4], index: 0, kind: input, shape index: {}]   ;;  %s56_s1 = inlined_call_operand.vmem [shape: s32[16], index: 1, kind: output, shape index: {}]  }
   0x1   :  { %v4_v0 = vld [vmem:[%s55_s0] sm:$0xf]  ;;  %s36_s0 = smov 12  }
   0x2   :  { %5 = vst [vmem:[#allocation1] sm:$0xf] %v4_v0 }
   0x9   :  { %v10_v1 = vld [vmem:[#allocation1 + $0x3] sm:$0x1]   ;;  %v22_v2 = vld [vmem:[#allocation1 + $0x1] sm:$0x1]   ;;  %v6_v3 = vld [vmem:[#allocation1] sm:$0x1]  }
   0xa   :  { %11 = vrot.lane.b32.xlu0 %v10_v1, %s36_s0  ;;  %23 = vrot.lane.b32.xlu1 %v22_v2, %s37_s8  ;;  %v16_v4 = vld [vmem:[#allocation1 + $0x2] sm:$0x1]   ;;  %8 = vst.msk [vmem:[#allocation0] sm:$0x1] %vm7_vm0, %v6_v3  }
   0xe   :  { %17 = vrot.lane.b32.xlu0 %v16_v4, %s38_s9 }
  0x7c   :  { %v12_v5 = vpop.permute.xlu0 %11   ;;  %v24_v6 = vpop.permute.xlu1 %23  }
  0x7d   :  { %14 = vst.msk [vmem:[#allocation0] sm:$0x1] %vm13_vm1, %v12_v5  }
  0x80   :  { %v18_v7 = vpop.permute.xlu0 %17  }
  0x81   :  { %20 = vst.msk [vmem:[#allocation0] sm:$0x1] %vm19_vm2, %v18_v7  }
  0x82   :  { %26 = vst.msk [vmem:[#allocation0] sm:$0x1] %vm25_vm3, %v24_v6  }
  0x89   :  { %v30_v8 = vld [vmem:[#allocation0] sm:$0x1] }
  0x8a   :  { %32 = vst [vmem:[%s56_s1] sm:$0x1] %v30_v8 }

// kernel: tile.59
= control target key start
LH: loop header
LB: loop body
LE: loop exit
PB: predicated region body
PF: predicated region fallthrough
CT: control target
= control target key end

     0   :  { %s22_s0 = inlined_call_operand.vmem [shape: s32[16], index: 0, kind: input, shape index: {}]   ;;  %s23_s1 = inlined_call_operand.vmem [shape: s32[2,16], index: 1, kind: output, shape index: {}]  }
   0x1   :  { %v4_v0 = vld [vmem:[%s22_s0] ss:$0 sm:$0xff] }
   0x2   :  { %5 = vst [vmem:[%s23_s1] sm:$0x3] %v4_v0 }

// kernel: tile.0
= control target key start
LH: loop header
LB: loop body
LE: loop exit
PB: predicated region body
PF: predicated region fallthrough
CT: control target
= control target key end

     0   :  { %s130_s8 = smov 125   ;;  %s131_s9 = smov 126   ;;  %vm7_vm0 = vcmask 7168   ;;  %s221_s0 = inlined_call_operand.vmem [shape: s32[2,16], index: 0, kind: input, shape index: {}]   ;;  %s222_s1 = inlined_call_operand.vmem [shape: s32[32,1], index: 1, kind: output, shape index: {}]  }
   0x1   :  { %v4_v0 = vld [vmem:[%s221_s0] sm:$0x3]  ;;  %s129_s0 = smov 127   ;;  %s132_s10 = smov 124  }
   0x2   :  { %5 = vst [vmem:[#allocation0] sm:$0x3] %v4_v0  ;;  %s133_s11 = smov 123   ;;  %s134_s12 = smov 122  }
   0x3   :  { %s135_s13 = smov 121   ;;  %s136_s14 = smov 120  }
   0x4   :  { %s137_s17 = smov 119   ;;  %s138_s18 = smov 118  }
   0x5   :  { %s139_s19 = smov 117   ;;  %s140_s20 = smov 116  }
   0x6   :  { %s141_s21 = smov 115   ;;  %s142_s22 = smov 114  }
   0x7   :  { %s143_s23 = smov 113  }
   0x9   :  { %v9_v1 = vld [vmem:[#allocation0] sm:$0x3]  }
   0xa   :  { %v21_v2 = vld [vmem:[#allocation0] sm:$0x3]   ;;  %10 = vrot.lane.b32.xlu0 %v9_v1, %s129_s0 }
   0xb   :  { %22 = vrot.lane.b32.xlu1 %v21_v2, %s130_s8  ;;  %v15_v3 = vld [vmem:[#allocation0] sm:$0x3]  }
   0xc   :  { %v27_v4 = vld [vmem:[#allocation0] sm:$0x3]  }
   0xd   :  { %v33_v5 = vld [vmem:[#allocation0] sm:$0x3]  }
   0xe   :  { %16 = vrot.lane.b32.xlu0 %v15_v3, %s131_s9  ;;  %v39_v6 = vld [vmem:[#allocation0] sm:$0x3]  }
   0xf   :  { %28 = vrot.lane.b32.xlu1 %v27_v4, %s132_s10  ;;  %v45_v7 = vld [vmem:[#allocation0] sm:$0x3]  }
  0x10   :  { %v51_v8 = vld [vmem:[#allocation0] sm:$0x3]  }
  0x11   :  { %v57_v9 = vld [vmem:[#allocation0] sm:$0x3]  }
  0x12   :  { %34 = vrot.lane.b32.xlu0 %v33_v5, %s133_s11  ;;  %v63_v10 = vld [vmem:[#allocation0] sm:$0x3]  }
  0x13   :  { %40 = vrot.lane.b32.xlu1 %v39_v6, %s134_s12  ;;  %v6_v11 = vld [vmem:[#allocation0] sm:$0x3]  }
  0x14   :  { %8 = vst.msk [vmem:[%s222_s1] ss:$16 sm:$0x3] %vm7_vm0, %v6_v11   ;;  %v69_v12 = vld [vmem:[#allocation0] sm:$0x3]  }
  0x15   :  { %v75_v13 = vld [vmem:[#allocation0] sm:$0x3]  }
  0x16   :  { %46 = vrot.lane.b32.xlu0 %v45_v7, %s135_s13  ;;  %v81_v14 = vld [vmem:[#allocation0] sm:$0x3]  }
  0x17   :  { %52 = vrot.lane.b32.xlu1 %v51_v8, %s136_s14  ;;  %v87_v15 = vld [vmem:[#allocation0] sm:$0x3]  }
  0x18   :  { %v93_v16 = vld [vmem:[#allocation0] sm:$0x3]  }
  0x1a   :  { %58 = vrot.lane.b32.xlu0 %v57_v9, %s137_s17 }
  0x1b   :  { %64 = vrot.lane.b32.xlu1 %v63_v10, %s138_s18 }
  0x1e   :  { %70 = vrot.lane.b32.xlu0 %v69_v12, %s139_s19 }
  0x1f   :  { %76 = vrot.lane.b32.xlu1 %v75_v13, %s140_s20 }
  0x22   :  { %82 = vrot.lane.b32.xlu0 %v81_v14, %s141_s21 }
  0x23   :  { %88 = vrot.lane.b32.xlu1 %v87_v15, %s142_s22 }
  0x26   :  { %94 = vrot.lane.b32.xlu0 %v93_v16, %s143_s23 }
  0x7c   :  { %v11_v17 = vpop.permute.xlu0 %10  }
  0x7d   :  { %v23_v18 = vpop.permute.xlu1 %22   ;;  %99 = vst.msk [vmem:[%s222_s1 + $0x1] ss:$16 sm:$0x3] %vm7_vm0, %v11_v17  }
  0x7e   :  { %101 = vst.msk [vmem:[%s222_s1 + $0x3] ss:$16 sm:$0x3] %vm7_vm0, %v23_v18  }
  0x80   :  { %v17_v19 = vpop.permute.xlu0 %16  }
  0x81   :  { %v29_v20 = vpop.permute.xlu1 %28   ;;  %100 = vst.msk [vmem:[%s222_s1 + $0x2] ss:$16 sm:$0x3] %vm7_vm0, %v17_v19  }
  0x82   :  { %102 = vst.msk [vmem:[%s222_s1 + $0x4] ss:$16 sm:$0x3] %vm7_vm0, %v29_v20  }
  0x84   :  { %v35_v21 = vpop.permute.xlu0 %34  }
  0x85   :  { %v41_v22 = vpop.permute.xlu1 %40   ;;  %103 = vst.msk [vmem:[%s222_s1 + $0x5] ss:$16 sm:$0x3] %vm7_vm0, %v35_v21  }
  0x86   :  { %104 = vst.msk [vmem:[%s222_s1 + $0x6] ss:$16 sm:$0x3] %vm7_vm0, %v41_v22  }
  0x88   :  { %v47_v23 = vpop.permute.xlu0 %46  }
  0x89   :  { %v53_v24 = vpop.permute.xlu1 %52   ;;  %105 = vst.msk [vmem:[%s222_s1 + $0x7] ss:$16 sm:$0x3] %vm7_vm0, %v47_v23  }
  0x8a   :  { %106 = vst.msk [vmem:[%s222_s1 + $0x8] ss:$16 sm:$0x3] %vm7_vm0, %v53_v24  }
  0x8c   :  { %v59_v25 = vpop.permute.xlu0 %58  }
  0x8d   :  { %v65_v26 = vpop.permute.xlu1 %64   ;;  %107 = vst.msk [vmem:[%s222_s1 + $0x9] ss:$16 sm:$0x3] %vm7_vm0, %v59_v25  }
  0x8e   :  { %108 = vst.msk [vmem:[%s222_s1 + $0xa] ss:$16 sm:$0x3] %vm7_vm0, %v65_v26  }
  0x90   :  { %v71_v27 = vpop.permute.xlu0 %70  }
  0x91   :  { %v77_v28 = vpop.permute.xlu1 %76   ;;  %109 = vst.msk [vmem:[%s222_s1 + $0xb] ss:$16 sm:$0x3] %vm7_vm0, %v71_v27  }
  0x92   :  { %110 = vst.msk [vmem:[%s222_s1 + $0xc] ss:$16 sm:$0x3] %vm7_vm0, %v77_v28  }
  0x94   :  { %v83_v29 = vpop.permute.xlu0 %82  }
  0x95   :  { %v89_v30 = vpop.permute.xlu1 %88   ;;  %111 = vst.msk [vmem:[%s222_s1 + $0xd] ss:$16 sm:$0x3] %vm7_vm0, %v83_v29  }
  0x96   :  { %112 = vst.msk [vmem:[%s222_s1 + $0xe] ss:$16 sm:$0x3] %vm7_vm0, %v89_v30  }
  0x98   :  { %v95_v31 = vpop.permute.xlu0 %94  }
  0x99   :  { %113 = vst.msk [vmem:[%s222_s1 + $0xf] ss:$16 sm:$0x3] %vm7_vm0, %v95_v31  }

// kernel: tile.69
= control target key start
LH: loop header
LB: loop body
LE: loop exit
PB: predicated region body
PF: predicated region fallthrough
CT: control target
= control target key end

     0   :  { %vm7_vm0 = vcmask 130048   ;;  %vm13_vm1 = vcmask 261248   ;;  %s39_s0 = inlined_call_operand.vmem [shape: s32[2,16], index: 0, kind: input, shape index: {}]   ;;  %s40_s1 = inlined_call_operand.vmem [shape: s32[1,32], index: 1, kind: output, shape index: {}]  }
   0x1   :  { %v4_v0 = vld [vmem:[%s39_s0] sm:$0x3]  ;;  %s22_s0 = smov 16  }
   0x2   :  { %5 = vst [vmem:[#allocation1] sm:$0x3] %v4_v0 }
   0x9   :  { %v10_v1 = vld [vmem:[#allocation1 + $0x1] sm:$0x1]   ;;  %v6_v2 = vld [vmem:[#allocation1] sm:$0x1]  }
   0xa   :  { %11 = vrot.lane.b32.xlu0 %v10_v1, %s22_s0  ;;  %8 = vst.msk [vmem:[#allocation0] sm:$0x1] %vm7_vm0, %v6_v2  }
  0x7c   :  { %v12_v3 = vpop.permute.xlu0 %11  }
  0x7d   :  { %14 = vst.msk [vmem:[#allocation0] sm:$0x1] %vm13_vm1, %v12_v3  }
  0x84   :  { %v18_v4 = vld [vmem:[#allocation0] sm:$0x1] }
  0x85   :  { %20 = vst [vmem:[%s40_s1] sm:$0x1] %v18_v4 }

// kernel: rope_mha_forward.7
= control target key start
LH: loop header
LB: loop body
LE: loop exit
PB: predicated region body
PF: predicated region fallthrough
CT: control target
= control target key end

     0   :  { %s398_s1 = inlined_call_operand.vmem [shape: f32[128,128], index: 1, kind: input, shape index: {}]   ;;  %s399_s0 = inlined_call_operand.vmem [shape: f32[64,128], index: 0, kind: input, shape index: {}]   ;;  %s400_s2 = inlined_call_operand.vmem [shape: f32[1,128], index: 2, kind: input, shape index: {}]   ;;  %s401_s3 = inlined_call_operand.vmem [shape: f32[64,128], index: 3, kind: output, shape index: {}]  }
   0x1   :  { %v22_v0 = vld [vmem:[%s398_s1] sm:$0xff]  ;;  %v23_v1 = vld [vmem:[%s398_s1 + $0x8] sm:$0xff]  ;;  %v24_v2 = vld [vmem:[%s398_s1 + $0x10] sm:$0xff] }
   0x2   :  { %v231_v3 = vpack.c.bf16 %v23_v1, %v22_v0  ;;  %v25_v4 = vld [vmem:[%s398_s1 + $0x18] sm:$0xff]  ;;  %v26_v6 = vld [vmem:[%s398_s1 + $0x20] sm:$0xff]  ;;  %v27_v7 = vld [vmem:[%s398_s1 + $0x28] sm:$0xff] }
   0x3   :  { %v235_v5 = vpack.c.bf16 %v25_v4, %v24_v2  ;;  %v239_v8 = vpack.c.bf16 %v27_v7, %v26_v6  ;;  %v14_v9 = vld [vmem:[%s399_s0] sm:$0xff]  ;;  %v28_v11 = vld [vmem:[%s398_s1 + $0x30] sm:$0xff]  ;;  %v29_v12 = vld [vmem:[%s398_s1 + $0x38] sm:$0xff] }
   0x4   :  { %232 = vmatprep.subr.bf16.mxu0 %v231_v3  ;;  %263 = vmatprep.subr.bf16.mxu1 %v231_v3  ;;  %v18_v10 = vld [vmem:[%s399_s0 + $0x20] sm:$0xff]  ;;  %v243_v13 = vpack.c.bf16 %v29_v12, %v28_v11  ;;  %v31_v15 = vld [vmem:[%s398_s1 + $0x48] sm:$0xff]  ;;  %v32_v17 = vld [vmem:[%s398_s1 + $0x50] sm:$0xff] }
   0x5   :  { %234 = vmatpush3.bf16.msra.mxu0 %v231_v3  ;;  %271 = vmatpush3.bf16.msra.mxu1 %v231_v3  ;;  %v30_v14 = vld [vmem:[%s398_s1 + $0x40] sm:$0xff]  ;;  %v33_v18 = vld [vmem:[%s398_s1 + $0x58] sm:$0xff]  ;;  %v35_v21 = vld [vmem:[%s398_s1 + $0x68] sm:$0xff] }
   0x6   :  { %236 = vmatprep.subr.bf16.mxu0 %v235_v5  ;;  %264 = vmatprep.subr.bf16.mxu1 %v235_v5  ;;  %v247_v16 = vpack.c.bf16 %v31_v15, %v30_v14  ;;  %v251_v19 = vpack.c.bf16 %v33_v18, %v32_v17  ;;  %v34_v20 = vld [vmem:[%s398_s1 + $0x60] sm:$0xff]  ;;  %v36_v23 = vld [vmem:[%s398_s1 + $0x70] sm:$0xff]  ;;  %v37_v24 = vld [vmem:[%s398_s1 + $0x78] sm:$0xff] }
   0x7   :  { %219 = vmatprep.mubr.f32.mxu0 %v14_v9  ;;  %225 = vmatprep.mubr.f32.mxu1 %v18_v10  ;;  %v255_v22 = vpack.c.bf16 %v35_v21, %v34_v20  ;;  %v259_v25 = vpack.c.bf16 %v37_v24, %v36_v23  ;;  %v15_v26 = vld [vmem:[%s399_s0 + $0x8] sm:$0xff]  ;;  %v16_v28 = vld [vmem:[%s399_s0 + $0x10] sm:$0xff]  ;;  %v17_v30 = vld [vmem:[%s399_s0 + $0x18] sm:$0xff] }
   0x8   :  { %v19_v27 = vld [vmem:[%s399_s0 + $0x28] sm:$0xff]  ;;  %v20_v29 = vld [vmem:[%s399_s0 + $0x30] sm:$0xff]  ;;  %v21_v31 = vld [vmem:[%s399_s0 + $0x38] sm:$0xff] }
   0x9   :  { %238 = vmatpush3.bf16.msra.mxu0 %v235_v5  ;;  %272 = vmatpush3.bf16.msra.mxu1 %v235_v5  ;;  %v162_v32 = vld [vmem:[%s400_s2] ss:$0 sm:$0xff] }
   0xa   :  { %240 = vmatprep.subr.bf16.mxu0 %v239_v8  ;;  %265 = vmatprep.subr.bf16.mxu1 %v239_v8 }
   0xd   :  { %242 = vmatpush3.bf16.msra.mxu0 %v239_v8  ;;  %273 = vmatpush3.bf16.msra.mxu1 %v239_v8 }
   0xe   :  { %244 = vmatprep.subr.bf16.mxu0 %v243_v13  ;;  %266 = vmatprep.subr.bf16.mxu1 %v243_v13 }
  0x11   :  { %246 = vmatpush3.bf16.msra.mxu0 %v243_v13  ;;  %274 = vmatpush3.bf16.msra.mxu1 %v243_v13 }
  0x12   :  { %248 = vmatprep.subr.bf16.mxu0 %v247_v16  ;;  %267 = vmatprep.subr.bf16.mxu1 %v247_v16 }
  0x15   :  { %250 = vmatpush3.bf16.msra.mxu0 %v247_v16  ;;  %275 = vmatpush3.bf16.msra.mxu1 %v247_v16 }
  0x16   :  { %252 = vmatprep.subr.bf16.mxu0 %v251_v19  ;;  %268 = vmatprep.subr.bf16.mxu1 %v251_v19 }
  0x19   :  { %254 = vmatpush3.bf16.msra.mxu0 %v251_v19  ;;  %276 = vmatpush3.bf16.msra.mxu1 %v251_v19 }
  0x1a   :  { %256 = vmatprep.subr.bf16.mxu0 %v255_v22  ;;  %269 = vmatprep.subr.bf16.mxu1 %v255_v22 }
  0x1d   :  { %258 = vmatpush3.bf16.msra.mxu0 %v255_v22  ;;  %277 = vmatpush3.bf16.msra.mxu1 %v255_v22 }
  0x1e   :  { %260 = vmatprep.subr.bf16.mxu0 %v259_v25  ;;  %270 = vmatprep.subr.bf16.mxu1 %v259_v25 }
  0x21   :  { %262 = vmatpush3.bf16.msra.mxu0 %v259_v25  ;;  %278 = vmatpush3.bf16.msra.mxu1 %v259_v25 }
  0x24   :  { %220 = vmatmul.mubr.f32.vlgmr.msra.gmra.mrb[0].mxu0 %v15_v26  ;;  %226 = vmatmul.mubr.f32.vlgmr.msra.gmra.mrb[0].mxu1 %v19_v27 }
  0x25   :  { %222 = vmatprep.mubr.f32.mxu0 %v16_v28  ;;  %228 = vmatprep.mubr.f32.mxu1 %v20_v29 }
  0x28   :  { %223 = vmatmul.mubr.f32.gmra.mrb[2].mxu0 %v17_v30  ;;  %229 = vmatmul.mubr.f32.gmra.mrb[2].mxu1 %v21_v31 }
  0xf7   :  { %v221_v33 = vpop.f32.mrb[0].mxu0  ;;  %v227_v34 = vpop.f32.mrb[0].mxu1 }
  0xf8   :  { %v117_v35 = vadd.f32 %v221_v33, %v162_v32  ;;  %v137_v36 = vadd.f32 %v227_v34, %v162_v32  ;;  %v111_v37 = vpop.f32.mrb[1].mxu0  ;;  %v131_v38 = vpop.f32.mrb[1].mxu1 }
  0xf9   :  { %v112_v39 = vadd.f32 %v162_v32, %v111_v37  ;;  %v132_v40 = vadd.f32 %v162_v32, %v131_v38 }
  0xfa   :  { %151 = vst [vmem:[%s401_s3 + $0x8] sm:$0xff] %v117_v35  ;;  %155 = vst [vmem:[%s401_s3 + $0x28] sm:$0xff] %v137_v36 }
  0xfb   :  { %150 = vst [vmem:[%s401_s3] sm:$0xff] %v112_v39  ;;  %154 = vst [vmem:[%s401_s3 + $0x20] sm:$0xff] %v132_v40  ;;  %v224_v41 = vpop.f32.mrb[2].mxu0  ;;  %v230_v42 = vpop.f32.mrb[2].mxu1 }
  0xfc   :  { %v127_v43 = vadd.f32 %v224_v41, %v162_v32  ;;  %v147_v44 = vadd.f32 %v230_v42, %v162_v32  ;;  %v121_v45 = vpop.f32.mrb[3].mxu0  ;;  %v141_v46 = vpop.f32.mrb[3].mxu1 }
  0xfd   :  { %v122_v47 = vadd.f32 %v162_v32, %v121_v45  ;;  %v142_v48 = vadd.f32 %v162_v32, %v141_v46 }
  0xfe   :  { %153 = vst [vmem:[%s401_s3 + $0x18] sm:$0xff] %v127_v43  ;;  %157 = vst [vmem:[%s401_s3 + $0x38] sm:$0xff] %v147_v44 }
  0xff   :  { %152 = vst [vmem:[%s401_s3 + $0x10] sm:$0xff] %v122_v47  ;;  %156 = vst [vmem:[%s401_s3 + $0x30] sm:$0xff] %v142_v48 }

// kernel: rope_mha_forward.10
= control target key start
LH: loop header
LB: loop body
LE: loop exit
PB: predicated region body
PF: predicated region fallthrough
CT: control target
= control target key end

     0   :  { %s250_s19 = smov 124   ;;  %s251_s23 = smov 4   ;;  %s534_s0 = inlined_call_operand.vmem [shape: f32[16,4,128], index: 0, kind: input, shape index: {}]   ;;  %s535_s1 = inlined_call_operand.vmem [shape: f32[1,4,128], index: 1, kind: input, shape index: {}]   ;;  %s536_s2 = inlined_call_operand.vmem [shape: f32[1,4,128], index: 2, kind: input, shape index: {}]   ;;  %s537_s3 = inlined_call_operand.vmem [shape: f32[1,4,128], index: 3, kind: input, shape index: {}]   ;;  %s538_s4 = inlined_call_operand.vmem [shape: f32[16,4,128], index: 4, kind: output, shape index: {}]  }
   0x1   :  { %v280_v0 = vld [vmem:[%s534_s0 + $0x8] sm:$0xf]  ;;  %v285_v1 = vld [vmem:[%s534_s0] sm:$0xf]  ;;  %v292_v2 = vld [vmem:[%s534_s0 + $0xc] sm:$0xf] }
   0x2   :  { %53 = vrot.lane.b32.xlu1 %v280_v0, %s250_s19  ;;  %49 = vrot.lane.b32.xlu0 %v285_v1, %s250_s19  ;;  %v297_v3 = vld [vmem:[%s534_s0 + $0x4] sm:$0xf]  ;;  %v304_v4 = vld [vmem:[%s534_s0 + $0x14] sm:$0xf] }
   0x3   :  { %v309_v5 = vld [vmem:[%s534_s0 + $0x10] sm:$0xf]  ;;  %v316_v6 = vld [vmem:[%s534_s0 + $0x1c] sm:$0xf]  ;;  %v321_v7 = vld [vmem:[%s534_s0 + $0x18] sm:$0xf] }
   0x4   :  { %v328_v8 = vld [vmem:[%s534_s0 + $0x24] sm:$0xf]  ;;  %v333_v9 = vld [vmem:[%s534_s0 + $0x20] sm:$0xf]  ;;  %v340_v10 = vld [vmem:[%s534_s0 + $0x2c] sm:$0xf] }
   0x5   :  { %v345_v11 = vld [vmem:[%s534_s0 + $0x28] sm:$0xf]  ;;  %v352_v12 = vld [vmem:[%s534_s0 + $0x34] sm:$0xf]  ;;  %v357_v13 = vld [vmem:[%s534_s0 + $0x30] sm:$0xf] }
   0x6   :  { %55 = vrot.lane.b32.xlu1 %v292_v2, %s250_s19  ;;  %51 = vrot.lane.b32.xlu0 %v297_v3, %s250_s19  ;;  %v364_v14 = vld [vmem:[%s534_s0 + $0x3c] sm:$0xf]  ;;  %v369_v15 = vld [vmem:[%s534_s0 + $0x38] sm:$0xf] }
   0x7   :  { %v400_v30 = vld [vmem:[%s535_s1] sm:$0xf] }
   0x8   :  { %v405_v31 = vld [vmem:[%s536_s2] sm:$0xf]  ;;  %v146_v32 = vmul.f32 %v400_v30, %v285_v1  ;;  %v147_v36 = vmul.f32 %v400_v30, %v297_v3  ;;  %v148_v39 = vmul.f32 %v400_v30, %v280_v0  ;;  %v149_v40 = vmul.f32 %v400_v30, %v292_v2 }
   0x9   :  { %v420_v38 = vld [vmem:[%s537_s3] sm:$0xf]  ;;  %v151_v51 = vmul.f32 %v400_v30, %v304_v4  ;;  %v150_v52 = vmul.f32 %v400_v30, %v309_v5  ;;  %v153_v63 = vmul.f32 %v400_v30, %v316_v6 }
   0xa   :  { %59 = vrot.lane.b32.xlu1 %v304_v4, %s250_s19  ;;  %57 = vrot.lane.b32.xlu0 %v309_v5, %s250_s19 }
   0xe   :  { %63 = vrot.lane.b32.xlu1 %v316_v6, %s250_s19  ;;  %61 = vrot.lane.b32.xlu0 %v321_v7, %s250_s19 }
  0x12   :  { %67 = vrot.lane.b32.xlu1 %v328_v8, %s250_s19  ;;  %65 = vrot.lane.b32.xlu0 %v333_v9, %s250_s19 }
  0x16   :  { %71 = vrot.lane.b32.xlu1 %v340_v10, %s250_s19  ;;  %69 = vrot.lane.b32.xlu0 %v345_v11, %s250_s19 }
  0x1a   :  { %75 = vrot.lane.b32.xlu1 %v352_v12, %s250_s19  ;;  %73 = vrot.lane.b32.xlu0 %v357_v13, %s250_s19 }
  0x1e   :  { %79 = vrot.lane.b32.xlu1 %v364_v14, %s250_s19  ;;  %77 = vrot.lane.b32.xlu0 %v369_v15, %s250_s19 }
  0x22   :  { %99 = vrot.lane.b32.xlu1 %v297_v3, %s251_s23  ;;  %97 = vrot.lane.b32.xlu0 %v285_v1, %s251_s23 }
  0x26   :  { %103 = vrot.lane.b32.xlu1 %v292_v2, %s251_s23  ;;  %101 = vrot.lane.b32.xlu0 %v280_v0, %s251_s23  ;;  %v152_v0 = vmul.f32 %v400_v30, %v321_v7 }
  0x2a   :  { %107 = vrot.lane.b32.xlu1 %v304_v4, %s251_s23  ;;  %105 = vrot.lane.b32.xlu0 %v309_v5, %s251_s23 }
  0x2e   :  { %111 = vrot.lane.b32.xlu1 %v316_v6, %s251_s23  ;;  %109 = vrot.lane.b32.xlu0 %v321_v7, %s251_s23 }
  0x32   :  { %115 = vrot.lane.b32.xlu1 %v328_v8, %s251_s23  ;;  %113 = vrot.lane.b32.xlu0 %v333_v9, %s251_s23 }
  0x36   :  { %119 = vrot.lane.b32.xlu1 %v340_v10, %s251_s23  ;;  %117 = vrot.lane.b32.xlu0 %v345_v11, %s251_s23 }
  0x3a   :  { %123 = vrot.lane.b32.xlu1 %v352_v12, %s251_s23  ;;  %121 = vrot.lane.b32.xlu0 %v357_v13, %s251_s23 }
  0x3e   :  { %127 = vrot.lane.b32.xlu1 %v364_v14, %s251_s23  ;;  %125 = vrot.lane.b32.xlu0 %v369_v15, %s251_s23 }
  0x74   :  { %v54_v16 = vpop.permute.xlu1 %53  ;;  %v50_v17 = vpop.permute.xlu0 %49 }
  0x75   :  { %v163_v33 = vmul.f32 %v405_v31, %v50_v17  ;;  %v165_v41 = vmul.f32 %v405_v31, %v54_v16 }
  0x77   :  { %v179_v42 = vadd.f32 %v163_v33, %v146_v32  ;;  %v181_v57 = vadd.f32 %v165_v41, %v148_v39  ;;  %v156_v39 = vmul.f32 %v400_v30, %v345_v11 }
  0x78   :  { %v56_v18 = vpop.permute.xlu1 %55  ;;  %v52_v19 = vpop.permute.xlu0 %51 }
  0x79   :  { %v164_v37 = vmul.f32 %v405_v31, %v52_v19  ;;  %v166_v45 = vmul.f32 %v405_v31, %v56_v18  ;;  %v155_v19 = vmul.f32 %v400_v30, %v328_v8 }
  0x7b   :  { %v180_v46 = vadd.f32 %v164_v37, %v147_v36  ;;  %v182_v58 = vadd.f32 %v166_v45, %v149_v40 }
  0x7c   :  { %v60_v20 = vpop.permute.xlu1 %59  ;;  %v58_v21 = vpop.permute.xlu0 %57 }
  0x7d   :  { %v168_v53 = vmul.f32 %v405_v31, %v60_v20  ;;  %v167_v54 = vmul.f32 %v405_v31, %v58_v21  ;;  %v154_v20 = vmul.f32 %v400_v30, %v333_v9 }
  0x7f   :  { %v184_v1 = vadd.f32 %v168_v53, %v151_v51  ;;  %v183_v2 = vadd.f32 %v167_v54, %v150_v52 }
  0x80   :  { %v64_v22 = vpop.permute.xlu1 %63  ;;  %v62_v23 = vpop.permute.xlu0 %61 }
  0x81   :  { %v170_v5 = vmul.f32 %v405_v31, %v64_v22  ;;  %v169_v16 = vmul.f32 %v405_v31, %v62_v23 }
  0x83   :  { %v186_v33 = vadd.f32 %v170_v5, %v153_v63  ;;  %v185_v36 = vadd.f32 %v169_v16, %v152_v0 }
  0x84   :  { %v68_v24 = vpop.permute.xlu1 %67  ;;  %v66_v25 = vpop.permute.xlu0 %65 }
  0x85   :  { %v172_v21 = vmul.f32 %v405_v31, %v68_v24  ;;  %v171_v22 = vmul.f32 %v405_v31, %v66_v25  ;;  %v157_v25 = vmul.f32 %v400_v30, %v340_v10 }
  0x87   :  { %v188_v40 = vadd.f32 %v172_v21, %v155_v19  ;;  %v187_v41 = vadd.f32 %v171_v22, %v154_v20 }
  0x88   :  { %v389_v26 = vpop.permute.xlu1 %71  ;;  %v391_v27 = vpop.permute.xlu0 %69 }
  0x89   :  { %v173_v45 = vmul.f32 %v405_v31, %v391_v27  ;;  %v158_v27 = vmul.f32 %v400_v30, %v357_v13 }
  0x8b   :  { %v189_v53 = vadd.f32 %v173_v45, %v156_v39 }
  0x8c   :  { %v393_v28 = vpop.permute.xlu1 %75  ;;  %v395_v29 = vpop.permute.xlu0 %73 }
  0x90   :  { %v410_v34 = vpop.permute.xlu1 %79  ;;  %v412_v35 = vpop.permute.xlu0 %77 }
  0x94   :  { %v100_v43 = vpop.permute.xlu1 %99  ;;  %v98_v44 = vpop.permute.xlu0 %97 }
  0x95   :  { %v197_v47 = vmul.f32 %v420_v38, %v100_v43  ;;  %v196_v48 = vmul.f32 %v420_v38, %v98_v44  ;;  %v174_v44 = vmul.f32 %v405_v31, %v389_v26  ;;  %v159_v26 = vmul.f32 %v400_v30, %v352_v12 }
  0x97   :  { %v213_v49 = vadd.f32 %v197_v47, %v180_v46  ;;  %v212_v50 = vadd.f32 %v196_v48, %v179_v42  ;;  %v176_v48 = vmul.f32 %v405_v31, %v393_v28  ;;  %v190_v52 = vadd.f32 %v174_v44, %v157_v25 }
  0x98   :  { %v104_v55 = vpop.permute.xlu1 %103  ;;  %v102_v56 = vpop.permute.xlu0 %101 }
  0x99   :  { %229 = vst [vmem:[%s538_s4 + $0x4] sm:$0xf] %v213_v49  ;;  %228 = vst [vmem:[%s538_s4] sm:$0xf] %v212_v50  ;;  %v199_v59 = vmul.f32 %v420_v38, %v104_v55  ;;  %v198_v60 = vmul.f32 %v420_v38, %v102_v56  ;;  %v175_v49 = vmul.f32 %v405_v31, %v395_v29 }
  0x9a   :  { %v161_v29 = vmul.f32 %v400_v30, %v364_v14  ;;  %v160_v55 = vmul.f32 %v400_v30, %v369_v15  ;;  %v192_v56 = vadd.f32 %v176_v48, %v159_v26 }
  0x9b   :  { %v215_v61 = vadd.f32 %v199_v59, %v182_v58  ;;  %v214_v62 = vadd.f32 %v198_v60, %v181_v57  ;;  %v191_v57 = vadd.f32 %v175_v49, %v158_v27  ;;  %v178_v60 = vmul.f32 %v405_v31, %v410_v34 }
  0x9c   :  { %v108_v3 = vpop.permute.xlu1 %107  ;;  %v106_v4 = vpop.permute.xlu0 %105 }
  0x9d   :  { %231 = vst [vmem:[%s538_s4 + $0xc] sm:$0xf] %v215_v61  ;;  %230 = vst [vmem:[%s538_s4 + $0x8] sm:$0xf] %v214_v62  ;;  %v201_v6 = vmul.f32 %v420_v38, %v108_v3  ;;  %v200_v7 = vmul.f32 %v420_v38, %v106_v4  ;;  %v177_v61 = vmul.f32 %v405_v31, %v412_v35 }
  0x9e   :  { %v194_v34 = vadd.f32 %v178_v60, %v161_v29 }
  0x9f   :  { %v217_v17 = vadd.f32 %v201_v6, %v184_v1  ;;  %v216_v18 = vadd.f32 %v200_v7, %v183_v2  ;;  %v193_v1 = vadd.f32 %v177_v61, %v160_v55 }
  0xa0   :  { %v112_v23 = vpop.permute.xlu1 %111  ;;  %v110_v32 = vpop.permute.xlu0 %109 }
  0xa1   :  { %233 = vst [vmem:[%s538_s4 + $0x14] sm:$0xf] %v217_v17  ;;  %232 = vst [vmem:[%s538_s4 + $0x10] sm:$0xf] %v216_v18  ;;  %v203_v8 = vmul.f32 %v420_v38, %v112_v23  ;;  %v202_v9 = vmul.f32 %v420_v38, %v110_v32 }
  0xa3   :  { %v219_v37 = vadd.f32 %v203_v8, %v186_v33  ;;  %v218_v24 = vadd.f32 %v202_v9, %v185_v36 }
  0xa4   :  { %v116_v42 = vpop.permute.xlu1 %115  ;;  %v114_v43 = vpop.permute.xlu0 %113 }
  0xa5   :  { %235 = vst [vmem:[%s538_s4 + $0x1c] sm:$0xf] %v219_v37  ;;  %234 = vst [vmem:[%s538_s4 + $0x18] sm:$0xf] %v218_v24  ;;  %v205_v10 = vmul.f32 %v420_v38, %v116_v42  ;;  %v204_v11 = vmul.f32 %v420_v38, %v114_v43 }
  0xa7   :  { %v221_v46 = vadd.f32 %v205_v10, %v188_v40  ;;  %v220_v47 = vadd.f32 %v204_v11, %v187_v41 }
  0xa8   :  { %v120_v50 = vpop.permute.xlu1 %119  ;;  %v118_v51 = vpop.permute.xlu0 %117 }
  0xa9   :  { %237 = vst [vmem:[%s538_s4 + $0x24] sm:$0xf] %v221_v46  ;;  %236 = vst [vmem:[%s538_s4 + $0x20] sm:$0xf] %v220_v47  ;;  %v207_v12 = vmul.f32 %v420_v38, %v120_v50  ;;  %v206_v13 = vmul.f32 %v420_v38, %v118_v51 }
  0xab   :  { %v223_v28 = vadd.f32 %v207_v12, %v190_v52  ;;  %v222_v54 = vadd.f32 %v206_v13, %v189_v53 }
  0xac   :  { %v124_v58 = vpop.permute.xlu1 %123  ;;  %v122_v59 = vpop.permute.xlu0 %121 }
  0xad   :  { %239 = vst [vmem:[%s538_s4 + $0x2c] sm:$0xf] %v223_v28  ;;  %238 = vst [vmem:[%s538_s4 + $0x28] sm:$0xf] %v222_v54  ;;  %v209_v14 = vmul.f32 %v420_v38, %v124_v58  ;;  %v208_v15 = vmul.f32 %v420_v38, %v122_v59 }
  0xaf   :  { %v225_v30 = vadd.f32 %v209_v14, %v192_v56  ;;  %v224_v62 = vadd.f32 %v208_v15, %v191_v57 }
  0xb0   :  { %v128_v63 = vpop.permute.xlu1 %127  ;;  %v126_v0 = vpop.permute.xlu0 %125 }
  0xb1   :  { %241 = vst [vmem:[%s538_s4 + $0x34] sm:$0xf] %v225_v30  ;;  %240 = vst [vmem:[%s538_s4 + $0x30] sm:$0xf] %v224_v62  ;;  %v211_v31 = vmul.f32 %v420_v38, %v128_v63  ;;  %v210_v35 = vmul.f32 %v420_v38, %v126_v0 }
  0xb3   :  { %v227_v2 = vadd.f32 %v211_v31, %v194_v34  ;;  %v226_v3 = vadd.f32 %v210_v35, %v193_v1 }
  0xb5   :  { %243 = vst [vmem:[%s538_s4 + $0x3c] sm:$0xf] %v227_v2  ;;  %242 = vst [vmem:[%s538_s4 + $0x38] sm:$0xf] %v226_v3 }

// kernel: rope_mha_forward.13
= control target key start
LH: loop header
LB: loop body
LE: loop exit
PB: predicated region body
PF: predicated region fallthrough
CT: control target
= control target key end

     0   :  { %s429_s0 = inlined_call_operand.vmem [shape: f32[64,128], index: 0, kind: input, shape index: {}]   ;;  %s430_s1 = inlined_call_operand.vmem [shape: f32[128,128], index: 1, kind: input, shape index: {}]   ;;  %s431_s2 = inlined_call_operand.vmem [shape: f32[1,128], index: 2, kind: input, shape index: {}]   ;;  %s432_s3 = inlined_call_operand.hbm [shape: f32[64,128], index: 3, kind: output, shape index: {}]  }
   0x1   :  { %v23_v0 = vld [vmem:[%s430_s1] sm:$0xff]  ;;  %v24_v1 = vld [vmem:[%s430_s1 + $0x8] sm:$0xff]  ;;  %v25_v2 = vld [vmem:[%s430_s1 + $0x10] sm:$0xff] }
   0x2   :  { %v244_v3 = vpack.c.bf16 %v24_v1, %v23_v0  ;;  %v26_v4 = vld [vmem:[%s430_s1 + $0x18] sm:$0xff]  ;;  %v27_v6 = vld [vmem:[%s430_s1 + $0x20] sm:$0xff]  ;;  %v28_v7 = vld [vmem:[%s430_s1 + $0x28] sm:$0xff] }
   0x3   :  { %v248_v5 = vpack.c.bf16 %v26_v4, %v25_v2  ;;  %v252_v8 = vpack.c.bf16 %v28_v7, %v27_v6  ;;  %v15_v9 = vld [vmem:[%s429_s0] sm:$0xff]  ;;  %v29_v11 = vld [vmem:[%s430_s1 + $0x30] sm:$0xff]  ;;  %v30_v12 = vld [vmem:[%s430_s1 + $0x38] sm:$0xff] }
   0x4   :  { %245 = vmatprep.subr.bf16.mxu0 %v244_v3  ;;  %276 = vmatprep.subr.bf16.mxu1 %v244_v3  ;;  %v19_v10 = vld [vmem:[%s429_s0 + $0x20] sm:$0xff] }
   0x5   :  { %247 = vmatpush3.bf16.msra.mxu0 %v244_v3  ;;  %284 = vmatpush3.bf16.msra.mxu1 %v244_v3 }
   0x6   :  { %249 = vmatprep.subr.bf16.mxu0 %v248_v5  ;;  %277 = vmatprep.subr.bf16.mxu1 %v248_v5 }
   0x7   :  { %232 = vmatprep.mubr.f32.mxu0 %v15_v9  ;;  %238 = vmatprep.mubr.f32.mxu1 %v19_v10 }
   0x9   :  { %251 = vmatpush3.bf16.msra.mxu0 %v248_v5  ;;  %285 = vmatpush3.bf16.msra.mxu1 %v248_v5 }
   0xa   :  { %8 = vsyncpa [#allocation3], 0  ;;  %253 = vmatprep.subr.bf16.mxu0 %v252_v8  ;;  %278 = vmatprep.subr.bf16.mxu1 %v252_v8  ;;  %v256_v13 = vpack.c.bf16 %v30_v12, %v29_v11  ;;  %v31_v14 = vld [vmem:[%s430_s1 + $0x40] sm:$0xff]  ;;  %v32_v15 = vld [vmem:[%s430_s1 + $0x48] sm:$0xff]  ;;  %s319_s7 = smov [#allocation2]  }
   0xb   :  { %v260_v16 = vpack.c.bf16 %v32_v15, %v31_v14  ;;  %v33_v17 = vld [vmem:[%s430_s1 + $0x50] sm:$0xff]  ;;  %v34_v18 = vld [vmem:[%s430_s1 + $0x58] sm:$0xff]  ;;  %v35_v20 = vld [vmem:[%s430_s1 + $0x60] sm:$0xff]  ;;  %s164_s8 = sshll.u32 %s319_s7, 4  ;;  %s165_s8 = int_to_ptr.vmem [resolvable:$true] %s164_s8 }
   0xc   :  { %v264_v19 = vpack.c.bf16 %v34_v18, %v33_v17  ;;  %v36_v21 = vld [vmem:[%s430_s1 + $0x68] sm:$0xff]  ;;  %v37_v23 = vld [vmem:[%s430_s1 + $0x70] sm:$0xff]  ;;  %v38_v24 = vld [vmem:[%s430_s1 + $0x78] sm:$0xff]  ;;  %p300_p1 = scmp.lt.s32.totalorder %s165_s8, %s165_s8 }
   0xd   :  { %255 = vmatpush3.bf16.msra.mxu0 %v252_v8  ;;  %286 = vmatpush3.bf16.msra.mxu1 %v252_v8  ;;  %v268_v22 = vpack.c.bf16 %v36_v21, %v35_v20  ;;  %v272_v25 = vpack.c.bf16 %v38_v24, %v37_v23  ;;  %v16_v26 = vld [vmem:[%s429_s0 + $0x8] sm:$0xff]  ;;  %v17_v28 = vld [vmem:[%s429_s0 + $0x10] sm:$0xff]  ;;  %v18_v30 = vld [vmem:[%s429_s0 + $0x18] sm:$0xff] }
   0xe   :  { %257 = vmatprep.subr.bf16.mxu0 %v256_v13  ;;  %279 = vmatprep.subr.bf16.mxu1 %v256_v13  ;;  %v20_v27 = vld [vmem:[%s429_s0 + $0x28] sm:$0xff]  ;;  %v21_v29 = vld [vmem:[%s429_s0 + $0x30] sm:$0xff]  ;;  %v22_v31 = vld [vmem:[%s429_s0 + $0x38] sm:$0xff]  ;;  %s295_s0 = scalar_lea.vmem %s165_s8, 1024 }
   0xf   :  { %v175_v32 = vld [vmem:[%s431_s2] ss:$0 sm:$0xff]  ;;  %p296_p0 = scmp.ne.s32.totalorder %s165_s8, %s295_s0  ;;  %p301_p2 = scmp.lt.s32.totalorder %s295_s0, %s295_s0 }
  0x11   :  { %259 = vmatpush3.bf16.msra.mxu0 %v256_v13  ;;  %287 = vmatpush3.bf16.msra.mxu1 %v256_v13  ;;  %p302_p3 = por %p301_p2, %p300_p1 }
  0x12   :  { %261 = vmatprep.subr.bf16.mxu0 %v260_v16  ;;  %280 = vmatprep.subr.bf16.mxu1 %v260_v16 }
  0x13   :  { %p303_p4 = pnand %p302_p3, %p296_p0 }
  0x15   :  { %263 = vmatpush3.bf16.msra.mxu0 %v260_v16  ;;  %288 = vmatpush3.bf16.msra.mxu1 %v260_v16 }
  0x16   :  { %265 = vmatprep.subr.bf16.mxu0 %v264_v19  ;;  %281 = vmatprep.subr.bf16.mxu1 %v264_v19 }
  0x19   :  { %267 = vmatpush3.bf16.msra.mxu0 %v264_v19  ;;  %289 = vmatpush3.bf16.msra.mxu1 %v264_v19 }
  0x1a   :  { %269 = vmatprep.subr.bf16.mxu0 %v268_v22  ;;  %282 = vmatprep.subr.bf16.mxu1 %v268_v22 }
  0x1d   :  { %271 = vmatpush3.bf16.msra.mxu0 %v268_v22  ;;  %290 = vmatpush3.bf16.msra.mxu1 %v268_v22 }
  0x1e   :  { %273 = vmatprep.subr.bf16.mxu0 %v272_v25  ;;  %283 = vmatprep.subr.bf16.mxu1 %v272_v25 }
  0x21   :  { %275 = vmatpush3.bf16.msra.mxu0 %v272_v25  ;;  %291 = vmatpush3.bf16.msra.mxu1 %v272_v25 }
  0x24   :  { %233 = vmatmul.mubr.f32.vlgmr.msra.gmra.mrb[0].mxu0 %v16_v26  ;;  %239 = vmatmul.mubr.f32.vlgmr.msra.gmra.mrb[0].mxu1 %v20_v27 }
  0x25   :  { %235 = vmatprep.mubr.f32.mxu0 %v17_v28  ;;  %241 = vmatprep.mubr.f32.mxu1 %v21_v29 }
  0x28   :  { %236 = vmatmul.mubr.f32.gmra.mrb[2].mxu0 %v18_v30  ;;  %242 = vmatmul.mubr.f32.gmra.mrb[2].mxu1 %v22_v31 }
  0xf7   :  { %v234_v33 = vpop.f32.mrb[0].mxu0  ;;  %v240_v34 = vpop.f32.mrb[0].mxu1 }
  0xf8   :  { %v118_v35 = vadd.f32 %v234_v33, %v175_v32  ;;  %v138_v36 = vadd.f32 %v240_v34, %v175_v32  ;;  %v112_v37 = vpop.f32.mrb[1].mxu0  ;;  %v132_v38 = vpop.f32.mrb[1].mxu1 }
  0xf9   :  { %v113_v39 = vadd.f32 %v175_v32, %v112_v37  ;;  %v133_v40 = vadd.f32 %v175_v32, %v132_v38 }
  0xfa   :  { %152 = vst [vmem:[#allocation2 + $0x8] sm:$0xff] %v118_v35  ;;  %156 = vst [vmem:[#allocation2 + $0x28] sm:$0xff] %v138_v36 }
  0xfb   :  { %151 = vst [vmem:[#allocation2] sm:$0xff] %v113_v39  ;;  %155 = vst [vmem:[#allocation2 + $0x20] sm:$0xff] %v133_v40  ;;  %v237_v41 = vpop.f32.mrb[2].mxu0  ;;  %v243_v42 = vpop.f32.mrb[2].mxu1 }
  0xfc   :  { %v128_v43 = vadd.f32 %v237_v41, %v175_v32  ;;  %v148_v44 = vadd.f32 %v243_v42, %v175_v32  ;;  %v122_v45 = vpop.f32.mrb[3].mxu0  ;;  %v142_v46 = vpop.f32.mrb[3].mxu1 }
  0xfd   :  { %v123_v47 = vadd.f32 %v175_v32, %v122_v45  ;;  %v143_v48 = vadd.f32 %v175_v32, %v142_v46 }
  0xfe   :  { %154 = vst [vmem:[#allocation2 + $0x18] sm:$0xff] %v128_v43  ;;  %158 = vst [vmem:[#allocation2 + $0x38] sm:$0xff] %v148_v44 }
  0xff   :  { %153 = vst [vmem:[#allocation2 + $0x10] sm:$0xff] %v123_v47  ;;  %157 = vst [vmem:[#allocation2 + $0x30] sm:$0xff] %v143_v48 }
 0x100   :  { %306 = shalt.err (!%p303_p4)
}
 0x101   :  { %s307_s10 = scalar_lea.hbm %s432_s3, 1024 }
 0x102   :  { %p308_p5 = scmp.ne.s32.totalorder %s432_s3, %s307_s10  ;;  %p311_p6 = scmp.lt.u32.totalorder %s307_s10, %s432_s3 }
 0x104   :  { %p313_p7 = pnand %p311_p6, %p308_p5 }
 0x106   :  { %316 = shalt.err (!%p313_p7)
}
 0x107   :  { %s320_s15 = smov 128   ;;  %s321_s16 = smov 8  }
 0x108   :  { %170 = dma.vmem_to_hbm [thread:$0]  %s165_s8, 1024, %s432_s3, [#allocation3], %s320_s15, %s320_s15, %s321_s16  }
 0x109   :  { %317 = dma.done.wait [#allocation3], 1024  }
 0x10a   :  { %318 = vsyncadd [#allocation3], 4294966272 }
 0x10b   :  { %174 = vsyncpa [#allocation3], 1 }

// kernel: rope_mha_forward.12
= control target key start
LH: loop header
LB: loop body
LE: loop exit
PB: predicated region body
PF: predicated region fallthrough
CT: control target
= control target key end

     0   :  { %s3853_s24 = smov 0   ;;  %s3855_s25 = smov 0   ;;  %s4589_s0 = inlined_call_operand.vmem [shape: f32[2,8,32,16], index: 0, kind: input, shape index: {}]   ;;  %s4590_s1 = inlined_call_operand.vmem [shape: f32[2,8,32,16], index: 1, kind: input, shape index: {}]   ;;  %s4591_s2 = inlined_call_operand.vmem [shape: f32[2,8,32,16], index: 2, kind: input, shape index: {}]   ;;  %s4592_s3 = inlined_call_operand.vmem [shape: s32[32,1], index: 3, kind: input, shape index: {}]   ;;  %s4593_s4 = inlined_call_operand.vmem [shape: s32[32,1], index: 4, kind: input, shape index: {}]   ;;  %s4594_s5 = inlined_call_operand.vmem [shape: s32[1,32], index: 5, kind: input, shape index: {}]   ;;  %s4595_s6 = inlined_call_operand.vmem [shape: s32[1,32], index: 6, kind: input, shape index: {}]   ;;  %s4596_s7 = inlined_call_operand.vmem [shape: f32[2,32,128], index: 7, kind: output, shape index: {}]  }
   0x1   :  { %s3857_s26 = smov 0  }
   0x2 LB: > { %s29_s27 = sadd.s32 1, %s3798_s25  ;;  %p2992_p0 = scmp.ge.s32.totalorder %s3802_s26, 1  ;;  %s3802_s26 = sphi %s3857_s26, %s17_s26   ;;  %s3798_s25 = sphi %s3855_s25, %s4600_s25   ;;  %s3794_s24 = sphi %s3853_s24, %s4599_s24  }
   0x3   : > { %p31_p1 = scmp.ge.s32.totalorder %s29_s27, 2  ;;  %p300_p2 = scmp.lt.s32.totalorder %s3802_s26, 3 }
   0x5   : > { %s4602_s27 = smov (%p31_p1, %s29_s27), 0  ;;  %p301_p3 = pnand %p2992_p0, %p300_p2 }
   0x6   : > { %p361_p4 = scmp.lt.s32.totalorder (!%p301_p3), %s3794_s24, 1  ;;  %v403_v0 = vld [vmem:[%s4592_s3 + $0x8] sm:$0xff] (!%p301_p3)  ;;  %v402_v1 = vld [vmem:[%s4592_s3] sm:$0xff] (!%p301_p3)  ;;  %v3804_v2 = vmov (!%p301_p3), 0   ;;  %vm564_vm0 = vcmask (!%p301_p3), 130048   ;;  %v408_v20 = vld [vmem:[%s4593_s4 + $0x10] sm:$0xff] (!%p301_p3) }
   0x7   : > { %304 = sbr.rel (%p301_p3) target bundleno = 965 (0x3c5), region = 48  ;;  %3651 = vset.pattern.permute.xlu1 (!%p301_p3), %v3804_v2  ;;  %3650 = vset.pattern.permute.xlu0 (!%p301_p3), %v3804_v2  ;;  %v407_v3 = vld [vmem:[%s4593_s4 + $0x8] sm:$0xff] (!%p301_p3)  ;;  %v406_v4 = vld [vmem:[%s4593_s4] sm:$0xff] (!%p301_p3)  ;;  %vm3896_vm1 = vmpackc.low (!%p301_p3), %vm564_vm0, %vm564_vm0  ;;  %s3806_s20 = smov (!%p301_p3), 16  }
   0x8   : > { %420 = vperm.xlu1 (!%p301_p3), %3651, %v403_v0   ;;  %417 = vperm.xlu0 (!%p301_p3), %3650, %v402_v1   ;;  %v404_v21 = vld [vmem:[%s4592_s3 + $0x10] sm:$0xff] (!%p301_p3)  ;;  %v409_v26 = vld [vmem:[%s4593_s4 + $0x18] sm:$0xff] (!%p301_p3)  ;;  %s3808_s21 = smov (!%p301_p3), 48   ;;  %s3809_s22 = smov (!%p301_p3), 64  }
   0x9   : > { %v405_v27 = vld [vmem:[%s4592_s3 + $0x18] sm:$0xff] (!%p301_p3)  ;;  %s3810_s23 = smov (!%p301_p3), 80   ;;  %s3811_s28 = smov (!%p301_p3), 96  }
   0xa   : > { %s3812_s29 = smov (!%p301_p3), 112  }
   0xc   : > { %436 = vperm.xlu1 (!%p301_p3), %3651, %v407_v3   ;;  %433 = vperm.xlu0 (!%p301_p3), %3650, %v406_v4  }
   0xe   : > { %s4604_s24 = smov (!%p361_p4, %s3794_s24), 1 }
   0xf   : > { %s3886_s13 = sshll.u32 %s4604_s24, 8 }
  0x10   : > { %s3892_s16 = scalar_lea.vmem %s4590_s1, %s3886_s13  ;;  %s3904_s19 = scalar_lea.vmem %s4589_s0, %s3886_s13  ;;  %439 = vperm.xlu1 %3651, %v408_v20   ;;  %423 = vperm.xlu0 %3650, %v404_v21  }
  0x11   : > { %v500_v6 = vld [vmem:[%s3892_s16] sm:$0xff]  ;;  %v501_v7 = vld [vmem:[%s3892_s16 + $0x8] sm:$0xff]  ;;  %v502_v11 = vld [vmem:[%s3892_s16 + $0x10] sm:$0xff] }
  0x12   : > { %v504_v8 = vld [vmem:[%s3892_s16 + $0x20] sm:$0xff]  ;;  %v3457_v9 = vpack.c.bf16 %v501_v7, %v500_v6  ;;  %v505_v10 = vld [vmem:[%s3892_s16 + $0x28] sm:$0xff]  ;;  %v503_v12 = vld [vmem:[%s3892_s16 + $0x18] sm:$0xff] }
  0x13   : > { %v3469_v13 = vpack.c.bf16 %v505_v10, %v504_v8  ;;  %v3463_v14 = vpack.c.bf16 %v503_v12, %v502_v11  ;;  %v506_v15 = vld [vmem:[%s3892_s16 + $0x30] sm:$0xff]  ;;  %v507_v16 = vld [vmem:[%s3892_s16 + $0x38] sm:$0xff]  ;;  %v468_v17 = vld [vmem:[%s3904_s19] sm:$0xff] }
  0x14   : > { %3459 = vmatprep.subr.msk.bf16.mxu0 %vm3896_vm1, %v3457_v9  ;;  %v3475_v18 = vpack.c.bf16 %v507_v16, %v506_v15  ;;  %3241 = vmatprep.mubr.msk.f32.mxu0 %vm564_vm0, %v468_v17  ;;  %v472_v19 = vld [vmem:[%s3904_s19 + $0x20] sm:$0xff]  ;;  %v509_v23 = vld [vmem:[%s3892_s16 + $0x48] sm:$0xff]  ;;  %v510_v30 = vld [vmem:[%s3892_s16 + $0x50] sm:$0xff] }
  0x15   : > { %3471 = vmatprep.subr.msk.bf16.mxu1 %vm3896_vm1, %v3469_v13  ;;  %3462 = vmatpush3.bf16.xpose.msk.msra.mxu0 %vm3896_vm1, %v3457_v9  ;;  %v508_v22 = vld [vmem:[%s3892_s16 + $0x40] sm:$0xff]  ;;  %v513_v25 = vld [vmem:[%s3892_s16 + $0x68] sm:$0xff]  ;;  %v511_v31 = vld [vmem:[%s3892_s16 + $0x58] sm:$0xff] }
  0x16   : > { %3474 = vmatpush3.bf16.xpose.msk.msra.mxu1 %vm3896_vm1, %v3469_v13  ;;  %3465 = vmatprep.subr.msk.bf16.mxu0 %vm3896_vm1, %v3463_v14  ;;  %v512_v24 = vld [vmem:[%s3892_s16 + $0x60] sm:$0xff]  ;;  %v3481_v28 = vpack.c.bf16 %v509_v23, %v508_v22  ;;  %v469_v32 = vld [vmem:[%s3904_s19 + $0x8] sm:$0xff]  ;;  %v514_v33 = vld [vmem:[%s3892_s16 + $0x70] sm:$0xff]  ;;  %v3487_v37 = vpack.c.bf16 %v511_v31, %v510_v30 }
  0x17   : > { %3477 = vmatprep.subr.msk.bf16.mxu1 %vm3896_vm1, %v3475_v18  ;;  %3255 = vmatprep.mubr.msk.f32.mxu1 %vm564_vm0, %v472_v19  ;;  %v3493_v29 = vpack.c.bf16 %v513_v25, %v512_v24  ;;  %v515_v34 = vld [vmem:[%s3892_s16 + $0x78] sm:$0xff]  ;;  %v473_v35 = vld [vmem:[%s3904_s19 + $0x28] sm:$0xff]  ;;  %v470_v36 = vld [vmem:[%s3904_s19 + $0x10] sm:$0xff] }
  0x18   : > { %442 = vperm.xlu1 %3651, %v409_v26   ;;  %426 = vperm.xlu0 %3650, %v405_v27   ;;  %v474_v38 = vld [vmem:[%s3904_s19 + $0x30] sm:$0xff]  ;;  %v3499_v39 = vpack.c.bf16 %v515_v34, %v514_v33  ;;  %v471_v40 = vld [vmem:[%s3904_s19 + $0x18] sm:$0xff]  ;;  %v476_v42 = vld [vmem:[%s3904_s19 + $0x40] sm:$0xff] }
  0x19   : > { %v475_v41 = vld [vmem:[%s3904_s19 + $0x38] sm:$0xff]  ;;  %v480_v43 = vld [vmem:[%s3904_s19 + $0x60] sm:$0xff]  ;;  %v517_v45 = vld [vmem:[%s3892_s16 + $0x88] sm:$0xff] }
  0x1a   : > { %v516_v44 = vld [vmem:[%s3892_s16 + $0x80] sm:$0xff]  ;;  %v521_v47 = vld [vmem:[%s3892_s16 + $0xa8] sm:$0xff]  ;;  %v518_v50 = vld [vmem:[%s3892_s16 + $0x90] sm:$0xff] }
  0x1b   : > { %v520_v46 = vld [vmem:[%s3892_s16 + $0xa0] sm:$0xff]  ;;  %v3505_v48 = vpack.c.bf16 %v517_v45, %v516_v44  ;;  %v519_v51 = vld [vmem:[%s3892_s16 + $0x98] sm:$0xff]  ;;  %v477_v52 = vld [vmem:[%s3904_s19 + $0x48] sm:$0xff] }
  0x1c   : > { %v3517_v49 = vpack.c.bf16 %v521_v47, %v520_v46  ;;  %v522_v53 = vld [vmem:[%s3892_s16 + $0xb0] sm:$0xff]  ;;  %v523_v54 = vld [vmem:[%s3892_s16 + $0xb8] sm:$0xff]  ;;  %v481_v55 = vld [vmem:[%s3904_s19 + $0x68] sm:$0xff]  ;;  %v3511_v57 = vpack.c.bf16 %v519_v51, %v518_v50 }
  0x1d   : > { %3468 = vmatpush3.bf16.xpose.msk.msra.mxu0 %vm3896_vm1, %v3463_v14  ;;  %v478_v56 = vld [vmem:[%s3904_s19 + $0x50] sm:$0xff]  ;;  %v3523_v59 = vpack.c.bf16 %v523_v54, %v522_v53  ;;  %v479_v60 = vld [vmem:[%s3904_s19 + $0x58] sm:$0xff]  ;;  %v484_v62 = vld [vmem:[%s3904_s19 + $0x80] sm:$0xff] }
  0x1e   : > { %3480 = vmatpush3.bf16.xpose.msk.msra.mxu1 %vm3896_vm1, %v3475_v18  ;;  %3483 = vmatprep.subr.msk.bf16.mxu0 %vm3896_vm1, %v3481_v28  ;;  %v482_v58 = vld [vmem:[%s3904_s19 + $0x70] sm:$0xff]  ;;  %v483_v61 = vld [vmem:[%s3904_s19 + $0x78] sm:$0xff]  ;;  %v488_v63 = vld [vmem:[%s3904_s19 + $0xa0] sm:$0xff] }
  0x1f   : > { %3495 = vmatprep.subr.msk.bf16.mxu1 %vm3896_vm1, %v3493_v29  ;;  %v524_v0 = vld [vmem:[%s3892_s16 + $0xc0] sm:$0xff]  ;;  %v525_v1 = vld [vmem:[%s3892_s16 + $0xc8] sm:$0xff]  ;;  %v526_v7 = vld [vmem:[%s3892_s16 + $0xd0] sm:$0xff] }
  0x20   : > { %v528_v2 = vld [vmem:[%s3892_s16 + $0xe0] sm:$0xff]  ;;  %v529_v3 = vld [vmem:[%s3892_s16 + $0xe8] sm:$0xff]  ;;  %v3529_v4 = vpack.c.bf16 %v525_v1, %v524_v0  ;;  %v527_v8 = vld [vmem:[%s3892_s16 + $0xd8] sm:$0xff] }
  0x21   : > { %v3541_v6 = vpack.c.bf16 %v529_v3, %v528_v2  ;;  %v485_v9 = vld [vmem:[%s3904_s19 + $0x88] sm:$0xff]  ;;  %v530_v10 = vld [vmem:[%s3892_s16 + $0xf0] sm:$0xff]  ;;  %v531_v11 = vld [vmem:[%s3892_s16 + $0xf8] sm:$0xff]  ;;  %v3535_v14 = vpack.c.bf16 %v527_v8, %v526_v7  ;;  %s4317_s16 = scalar_lea.vmem %s4591_s2, %s3886_s13  ;;  %s3104_s13 = sshll.u32 %s4604_s24, 5 }
  0x22   : > { %v489_v12 = vld [vmem:[%s3904_s19 + $0xa8] sm:$0xff]  ;;  %v486_v13 = vld [vmem:[%s3904_s19 + $0x90] sm:$0xff]  ;;  %v3547_v16 = vpack.c.bf16 %v531_v11, %v530_v10  ;;  %v487_v17 = vld [vmem:[%s3904_s19 + $0x98] sm:$0xff]  ;;  %s3807_s24 = smov 32  }
  0x23   : > { %v490_v15 = vld [vmem:[%s3904_s19 + $0xb0] sm:$0xff]  ;;  %v491_v18 = vld [vmem:[%s3904_s19 + $0xb8] sm:$0xff]  ;;  %v492_v19 = vld [vmem:[%s3904_s19 + $0xc0] sm:$0xff] }
  0x24   : > { %3242 = vmatmul.mubr.msk.f32.vlgmr.msra.gmra.mrb[0].mxu0 %vm564_vm0, %v469_v32  ;;  %v496_v20 = vld [vmem:[%s3904_s19 + $0xe0] sm:$0xff]  ;;  %v493_v21 = vld [vmem:[%s3904_s19 + $0xc8] sm:$0xff]  ;;  %v494_v23 = vld [vmem:[%s3904_s19 + $0xd0] sm:$0xff] }
  0x25   : > { %3256 = vmatmul.mubr.msk.f32.vlgmr.msra.gmra.mrb[0].mxu1 %vm564_vm0, %v473_v35  ;;  %3486 = vmatpush3.bf16.xpose.msk.msra.mxu0 %vm3896_vm1, %v3481_v28  ;;  %v497_v22 = vld [vmem:[%s3904_s19 + $0xe8] sm:$0xff]  ;;  %v498_v24 = vld [vmem:[%s3904_s19 + $0xf0] sm:$0xff]  ;;  %v495_v25 = vld [vmem:[%s3904_s19 + $0xd8] sm:$0xff] }
  0x26   : > { %3498 = vmatpush3.bf16.xpose.msk.msra.mxu1 %vm3896_vm1, %v3493_v29  ;;  %3244 = vmatprep.mubr.msk.f32.mxu0 %vm564_vm0, %v470_v36  ;;  %v499_v26 = vld [vmem:[%s3904_s19 + $0xf8] sm:$0xff]  ;;  %v3001_v28 = vld [vmem:[%s4594_s5] ss:$0 sm:$0xff]  ;;  %v3805_v36 = vmov 0.0   ;;  %s4542_s19 = scalar_lea.vmem %s4596_s7, %s3104_s13 }
  0x27   : > { %3258 = vmatprep.mubr.msk.f32.mxu1 %vm564_vm0, %v474_v38  ;;  %3489 = vmatprep.subr.msk.bf16.mxu0 %vm3896_vm1, %v3487_v37  ;;  %v3002_v29 = vld [vmem:[%s4595_s6] ss:$0 sm:$0xff] }
  0x28   : > { %3245 = vmatmul.mubr.msk.f32.gmra.mrb[2].mxu0 %vm564_vm0, %v471_v40  ;;  %3501 = vmatprep.subr.msk.bf16.mxu1 %vm3896_vm1, %v3499_v39 }
  0x29   : > { %3259 = vmatmul.mubr.msk.f32.gmra.mrb[2].mxu1 %vm564_vm0, %v475_v41  ;;  %3269 = vmatprep.mubr.msk.f32.mxu0 %vm564_vm0, %v476_v42 }
  0x2a   : > { %3283 = vmatprep.mubr.msk.f32.mxu1 %vm564_vm0, %v480_v43 }
  0x2d   : > { %3492 = vmatpush3.bf16.xpose.msk.msra.mxu0 %vm3896_vm1, %v3487_v37 }
  0x2e   : > { %3504 = vmatpush3.bf16.xpose.msk.msra.mxu1 %vm3896_vm1, %v3499_v39  ;;  %3507 = vmatprep.subr.msk.bf16.mxu0 %vm3896_vm1, %v3505_v48 }
  0x2f   : > { %3519 = vmatprep.subr.msk.bf16.mxu1 %vm3896_vm1, %v3517_v49 }
  0x34   : > { %3270 = vmatmul.mubr.msk.f32.vlgmr.msra.gmra.mrb[4].mxu0 %vm564_vm0, %v477_v52 }
  0x35   : > { %3284 = vmatmul.mubr.msk.f32.vlgmr.msra.gmra.mrb[4].mxu1 %vm564_vm0, %v481_v55  ;;  %3510 = vmatpush3.bf16.xpose.msk.msra.mxu0 %vm3896_vm1, %v3505_v48 }
  0x36   : > { %3522 = vmatpush3.bf16.xpose.msk.msra.mxu1 %vm3896_vm1, %v3517_v49  ;;  %3272 = vmatprep.mubr.msk.f32.mxu0 %vm564_vm0, %v478_v56 }
  0x37   : > { %3286 = vmatprep.mubr.msk.f32.mxu1 %vm564_vm0, %v482_v58  ;;  %3513 = vmatprep.subr.msk.bf16.mxu0 %vm3896_vm1, %v3511_v57 }
  0x38   : > { %3273 = vmatmul.mubr.msk.f32.gmra.mrb[6].mxu0 %vm564_vm0, %v479_v60  ;;  %3525 = vmatprep.subr.msk.bf16.mxu1 %vm3896_vm1, %v3523_v59 }
  0x39   : > { %3287 = vmatmul.mubr.msk.f32.gmra.mrb[6].mxu1 %vm564_vm0, %v483_v61  ;;  %3297 = vmatprep.mubr.msk.f32.mxu0 %vm564_vm0, %v484_v62 }
  0x3a   : > { %3311 = vmatprep.mubr.msk.f32.mxu1 %vm564_vm0, %v488_v63 }
  0x3d   : > { %3516 = vmatpush3.bf16.xpose.msk.msra.mxu0 %vm3896_vm1, %v3511_v57 }
  0x3e   : > { %3528 = vmatpush3.bf16.xpose.msk.msra.mxu1 %vm3896_vm1, %v3523_v59  ;;  %3531 = vmatprep.subr.msk.bf16.mxu0 %vm3896_vm1, %v3529_v4 }
  0x3f   : > { %3543 = vmatprep.subr.msk.bf16.mxu1 %vm3896_vm1, %v3541_v6 }
  0x44   : > { %3298 = vmatmul.mubr.msk.f32.vlgmr.msra.gmra.mrb[8].mxu0 %vm564_vm0, %v485_v9 }
  0x45   : > { %3312 = vmatmul.mubr.msk.f32.vlgmr.msra.gmra.mrb[8].mxu1 %vm564_vm0, %v489_v12  ;;  %3534 = vmatpush3.bf16.xpose.msk.msra.mxu0 %vm3896_vm1, %v3529_v4 }
  0x46   : > { %3546 = vmatpush3.bf16.xpose.msk.msra.mxu1 %vm3896_vm1, %v3541_v6  ;;  %3300 = vmatprep.mubr.msk.f32.mxu0 %vm564_vm0, %v486_v13 }
  0x47   : > { %3314 = vmatprep.mubr.msk.f32.mxu1 %vm564_vm0, %v490_v15  ;;  %3537 = vmatprep.subr.msk.bf16.mxu0 %vm3896_vm1, %v3535_v14 }
  0x48   : > { %3301 = vmatmul.mubr.msk.f32.gmra.mrb[10].mxu0 %vm564_vm0, %v487_v17  ;;  %3549 = vmatprep.subr.msk.bf16.mxu1 %vm3896_vm1, %v3547_v16 }
  0x49   : > { %3315 = vmatmul.mubr.msk.f32.gmra.mrb[10].mxu1 %vm564_vm0, %v491_v18  ;;  %3325 = vmatprep.mubr.msk.f32.mxu0 %vm564_vm0, %v492_v19 }
  0x4a   : > { %3339 = vmatprep.mubr.msk.f32.mxu1 %vm564_vm0, %v496_v20 }
  0x4d   : > { %3540 = vmatpush3.bf16.xpose.msk.msra.mxu0 %vm3896_vm1, %v3535_v14 }
  0x4e   : > { %3552 = vmatpush3.bf16.xpose.msk.msra.mxu1 %vm3896_vm1, %v3547_v16  ;;  %vm1437_vm1 = vcmask 261120  }
  0x54   : > { %3326 = vmatmul.mubr.msk.f32.vlgmr.msra.gmra.mrb[12].mxu0 %vm564_vm0, %v493_v21 }
  0x55   : > { %3340 = vmatmul.mubr.msk.f32.vlgmr.msra.gmra.mrb[12].mxu1 %vm564_vm0, %v497_v22  ;;  %3328 = vmatprep.mubr.msk.f32.mxu0 %vm564_vm0, %v494_v23 }
  0x56   : > { %3342 = vmatprep.mubr.msk.f32.mxu1 %vm564_vm0, %v498_v24 }
  0x58   : > { %3329 = vmatmul.mubr.msk.f32.gmra.mrb[14].mxu0 %vm564_vm0, %v495_v25 }
  0x59   : > { %3343 = vmatmul.mubr.msk.f32.gmra.mrb[14].mxu1 %vm564_vm0, %v499_v26 }
  0x87   : > { %v421_v5 = vpop.permute.xlu1 %420  ;;  %v418_v27 = vpop.permute.xlu0 %417 }
  0x88   : > { %vm453_vm2 = vcmp.ne.s32.totalorder %v421_v5, %v3001_v28  ;;  %vm429_vm4 = vcmp.gt.s32.totalorder %v3001_v28, %v421_v5  ;;  %vm452_vm6 = vcmp.ne.s32.totalorder %v418_v27, %v3001_v28  ;;  %vm428_vm11 = vcmp.gt.s32.totalorder %v3001_v28, %v418_v27 }
  0x8b   : > { %v437_v30 = vpop.permute.xlu1 %436  ;;  %v434_v31 = vpop.permute.xlu0 %433 }
  0x8c   : > { %vm449_vm3 = vcmp.eq.s32.totalorder %v437_v30, %v3002_v29  ;;  %vm448_vm7 = vcmp.eq.s32.totalorder %v434_v31, %v3002_v29 }
  0x8d   : > { %vm457_vm5 = vmand %vm449_vm3, %vm453_vm2 }
  0x8e   : > { %vm461_vm8 = vmor %vm429_vm4, %vm457_vm5 }
  0x8f   : > { %v440_v32 = vpop.permute.xlu1 %439  ;;  %v424_v33 = vpop.permute.xlu0 %423  ;;  %vm456_vm12 = vmand %vm448_vm7, %vm452_vm6  ;;  %v4084_v37 = vsel %vm461_vm8, -inf, %v3805_v36 }
  0x90   : > { %vm450_vm9 = vcmp.eq.s32.totalorder %v440_v32, %v3002_v29  ;;  %vm454_vm10 = vcmp.ne.s32.totalorder %v424_v33, %v3001_v28  ;;  %vm430_vm13 = vcmp.gt.s32.totalorder %v3001_v28, %v424_v33  ;;  %vm460_vm15 = vmor %vm428_vm11, %vm456_vm12 }
  0x91   : > { %vm458_vm14 = vmand %vm450_vm9, %vm454_vm10  ;;  %v4092_v44 = vsel %vm460_vm15, -inf, %v3805_v36 }
  0x92   : > { %vm462_vm2 = vmor %vm430_vm13, %vm458_vm14 }
  0x93   : > { %v4101_v49 = vsel %vm462_vm2, -inf, %v3805_v36 }
  0x97   : > { %v443_v34 = vpop.permute.xlu1 %442  ;;  %v427_v35 = vpop.permute.xlu0 %426 }
  0x98   : > { %vm451_vm3 = vcmp.eq.s32.totalorder %v443_v34, %v3002_v29  ;;  %vm455_vm4 = vcmp.ne.s32.totalorder %v427_v35, %v3001_v28  ;;  %vm431_vm5 = vcmp.gt.s32.totalorder %v3001_v28, %v427_v35 }
  0x99   : > { %vm459_vm6 = vmand %vm451_vm3, %vm455_vm4 }
  0x9a   : > { %vm463_vm7 = vmor %vm431_vm5, %vm459_vm6 }
  0x9b   : > { %v4116_v58 = vsel %vm463_vm7, -inf, %v3805_v36 }
  0xf7   : > { %v3243_v38 = vpop.f32.mrb[0].mxu0 }
  0xf8   : > { %v4087_v39 = vadd.f32 %v3243_v38, %v4084_v37  ;;  %v3257_v40 = vpop.f32.mrb[0].mxu1  ;;  %v655_v41 = vpop.f32.mrb[1].mxu0 }
  0xf9   : > { %v4090_v42 = vadd.f32 %v3257_v40, %v4084_v37  ;;  %v764_v43 = vpop.f32.mrb[1].mxu1  ;;  %v4097_v46 = vadd.f32 %v655_v41, %v4092_v44 }
  0xfa   : > { %v1441_v45 = vsel %vm1437_vm1, %v4087_v39, -inf  ;;  %v4107_v54 = vadd.f32 %v764_v43, %v4092_v44 }
  0xfb   : > { %v1453_v47 = vsel %vm1437_vm1, %v4090_v42, -inf  ;;  %1442 = vmax.xlane.f32.xlu1 %v1441_v45  ;;  %v3246_v48 = vpop.f32.mrb[2].mxu0  ;;  %v1438_v56 = vsel %vm1437_vm1, %v4097_v46, -inf }
  0xfc   : > { %1454 = vmax.xlane.f32.xlu0 %v1453_v47  ;;  %v3260_v50 = vpop.f32.mrb[2].mxu1  ;;  %v665_v51 = vpop.f32.mrb[3].mxu0  ;;  %v4119_v59 = vadd.f32 %v3246_v48, %v4116_v58  ;;  %v1450_v60 = vsel %vm1437_vm1, %v4107_v54, -inf }
  0xfd   : > { %v4104_v52 = vadd.f32 %v665_v51, %v4101_v49  ;;  %v774_v53 = vpop.f32.mrb[3].mxu1  ;;  %v4126_v62 = vadd.f32 %v3260_v50, %v4116_v58 }
  0xfe   : > { %v4110_v55 = vadd.f32 %v774_v53, %v4101_v49  ;;  %v1447_v0 = vsel %vm1437_vm1, %v4119_v59, -inf }
  0xff   : > { %v1444_v57 = vsel %vm1437_vm1, %v4104_v52, -inf  ;;  %v1459_v9 = vsel %vm1437_vm1, %v4126_v62, -inf }
 0x100   : > { %1439 = vmax.xlane.f32.xlu0 %v1438_v56  ;;  %1445 = vmax.xlane.f32.xlu1 %v1444_v57  ;;  %v1456_v61 = vsel %vm1437_vm1, %v4110_v55, -inf }
 0x104   : > { %1451 = vmax.xlane.f32.xlu0 %v1450_v60  ;;  %1457 = vmax.xlane.f32.xlu1 %v1456_v61 }
 0x107   : > { %v3271_v63 = vpop.f32.mrb[4].mxu0 }
 0x108   : > { %v3285_v1 = vpop.f32.mrb[4].mxu1  ;;  %1448 = vmax.xlane.f32.xlu0 %v1447_v0  ;;  %v873_v2 = vpop.f32.mrb[5].mxu0  ;;  %v4134_v6 = vadd.f32 %v3271_v63, %v4084_v37 }
 0x109   : > { %v4131_v3 = vadd.f32 %v873_v2, %v4092_v44  ;;  %v982_v4 = vpop.f32.mrb[5].mxu1  ;;  %v4144_v14 = vadd.f32 %v3285_v1, %v4084_v37 }
 0x10a   : > { %v4137_v7 = vadd.f32 %v982_v4, %v4092_v44  ;;  %v1465_v16 = vsel %vm1437_vm1, %v4134_v6, -inf }
 0x10b   : > { %v3274_v8 = vpop.f32.mrb[6].mxu0  ;;  %v1462_v10 = vsel %vm1437_vm1, %v4131_v3, -inf  ;;  %v1477_v20 = vsel %vm1437_vm1, %v4144_v14, -inf }
 0x10c   : > { %v3288_v11 = vpop.f32.mrb[6].mxu1  ;;  %1460 = vmax.xlane.f32.xlu0 %v1459_v9  ;;  %v883_v12 = vpop.f32.mrb[7].mxu0  ;;  %1463 = vmax.xlane.f32.xlu1 %v1462_v10  ;;  %v1474_v17 = vsel %vm1437_vm1, %v4137_v7, -inf  ;;  %v4154_v18 = vadd.f32 %v3274_v8, %v4116_v58 }
 0x10d   : > { %v992_v13 = vpop.f32.mrb[7].mxu1  ;;  %v4147_v15 = vadd.f32 %v883_v12, %v4101_v49  ;;  %v4164_v22 = vadd.f32 %v3288_v11, %v4116_v58 }
 0x10e   : > { %v4157_v19 = vadd.f32 %v992_v13, %v4101_v49  ;;  %v1471_v24 = vsel %vm1437_vm1, %v4154_v18, -inf }
 0x10f   : > { %v1468_v21 = vsel %vm1437_vm1, %v4147_v15, -inf  ;;  %v1483_v32 = vsel %vm1437_vm1, %v4164_v22, -inf }
 0x110   : > { %1466 = vmax.xlane.f32.xlu0 %v1465_v16  ;;  %1475 = vmax.xlane.f32.xlu1 %v1474_v17  ;;  %v1480_v25 = vsel %vm1437_vm1, %v4157_v19, -inf }
 0x114   : > { %1478 = vmax.xlane.f32.xlu0 %v1477_v20  ;;  %1469 = vmax.xlane.f32.xlu1 %v1468_v21 }
 0x117   : > { %v3299_v23 = vpop.f32.mrb[8].mxu0 }
 0x118   : > { %v3313_v26 = vpop.f32.mrb[8].mxu1  ;;  %1472 = vmax.xlane.f32.xlu0 %v1471_v24  ;;  %v1091_v5 = vpop.f32.mrb[9].mxu0  ;;  %1481 = vmax.xlane.f32.xlu1 %v1480_v25  ;;  %v4174_v29 = vadd.f32 %v3299_v23, %v4084_v37 }
 0x119   : > { %v4171_v27 = vadd.f32 %v1091_v5, %v4092_v44  ;;  %v1200_v28 = vpop.f32.mrb[9].mxu1  ;;  %v4184_v38 = vadd.f32 %v3313_v26, %v4084_v37 }
 0x11a   : > { %v4177_v30 = vadd.f32 %v1200_v28, %v4092_v44  ;;  %v1489_v41 = vsel %vm1437_vm1, %v4174_v29, -inf }
 0x11b   : > { %v3302_v31 = vpop.f32.mrb[10].mxu0  ;;  %v1486_v33 = vsel %vm1437_vm1, %v4171_v27, -inf  ;;  %v1501_v48 = vsel %vm1437_vm1, %v4184_v38, -inf }
 0x11c   : > { %v3316_v34 = vpop.f32.mrb[10].mxu1  ;;  %1484 = vmax.xlane.f32.xlu0 %v1483_v32  ;;  %v1101_v35 = vpop.f32.mrb[11].mxu0  ;;  %1487 = vmax.xlane.f32.xlu1 %v1486_v33  ;;  %v1498_v43 = vsel %vm1437_vm1, %v4177_v30, -inf  ;;  %v4194_v45 = vadd.f32 %v3302_v31, %v4116_v58 }
 0x11d   : > { %v1210_v36 = vpop.f32.mrb[11].mxu1  ;;  %v4187_v40 = vadd.f32 %v1101_v35, %v4101_v49  ;;  %v4204_v51 = vadd.f32 %v3316_v34, %v4116_v58 }
 0x11e   : > { %v4197_v47 = vadd.f32 %v1210_v36, %v4101_v49  ;;  %v1495_v56 = vsel %vm1437_vm1, %v4194_v45, -inf }
 0x11f   : > { %v1492_v50 = vsel %vm1437_vm1, %v4187_v40, -inf  ;;  %v1507_v8 = vsel %vm1437_vm1, %v4204_v51, -inf }
 0x120   : > { %1490 = vmax.xlane.f32.xlu0 %v1489_v41  ;;  %1499 = vmax.xlane.f32.xlu1 %v1498_v43  ;;  %v1504_v57 = vsel %vm1437_vm1, %v4197_v47, -inf }
 0x124   : > { %1502 = vmax.xlane.f32.xlu0 %v1501_v48  ;;  %1493 = vmax.xlane.f32.xlu1 %v1492_v50 }
 0x127   : > { %v3327_v53 = vpop.f32.mrb[12].mxu0 }
 0x128   : > { %v3341_v60 = vpop.f32.mrb[12].mxu1  ;;  %1496 = vmax.xlane.f32.xlu0 %v1495_v56  ;;  %v1309_v61 = vpop.f32.mrb[13].mxu0  ;;  %1505 = vmax.xlane.f32.xlu1 %v1504_v57  ;;  %v4214_v1 = vadd.f32 %v3327_v53, %v4084_v37 }
 0x129   : > { %v4211_v63 = vadd.f32 %v1309_v61, %v4092_v44  ;;  %v1418_v0 = vpop.f32.mrb[13].mxu1  ;;  %v4224_v13 = vadd.f32 %v3341_v60, %v4084_v37 }
 0x12a   : > { %v4217_v2 = vadd.f32 %v1418_v0, %v4092_v44  ;;  %v1513_v44 = vsel %vm1437_vm1, %v4214_v1, -inf }
 0x12b   : > { %v3330_v4 = vpop.f32.mrb[14].mxu0  ;;  %v1510_v9 = vsel %vm1437_vm1, %v4211_v63, -inf  ;;  %v1525_v37 = vsel %vm1437_vm1, %v4224_v13, -inf }
 0x12c   : > { %v3344_v10 = vpop.f32.mrb[14].mxu1  ;;  %1508 = vmax.xlane.f32.xlu0 %v1507_v8  ;;  %v1319_v11 = vpop.f32.mrb[15].mxu0  ;;  %1511 = vmax.xlane.f32.xlu1 %v1510_v9  ;;  %v1522_v17 = vsel %vm1437_vm1, %v4217_v2, -inf  ;;  %v4234_v20 = vadd.f32 %v3330_v4, %v4116_v58 }
 0x12d   : > { %v1428_v12 = vpop.f32.mrb[15].mxu1  ;;  %v4227_v16 = vadd.f32 %v1319_v11, %v4101_v49  ;;  %v4244_v24 = vadd.f32 %v3344_v10, %v4116_v58 }
 0x12e   : > { %v4237_v21 = vadd.f32 %v1428_v12, %v4101_v49  ;;  %v1519_v25 = vsel %vm1437_vm1, %v4234_v20, -inf }
 0x12f   : > { %v1516_v23 = vsel %vm1437_vm1, %v4227_v16, -inf  ;;  %v1531_v49 = vsel %vm1437_vm1, %v4244_v24, -inf }
 0x130   : > { %1514 = vmax.xlane.f32.xlu0 %v1513_v44  ;;  %1523 = vmax.xlane.f32.xlu1 %v1522_v17  ;;  %v1528_v26 = vsel %vm1437_vm1, %v4237_v21, -inf }
 0x134   : > { %1526 = vmax.xlane.f32.xlu0 %v1525_v37  ;;  %1517 = vmax.xlane.f32.xlu1 %v1516_v23 }
 0x138   : > { %1520 = vmax.xlane.f32.xlu0 %v1519_v25  ;;  %1529 = vmax.xlane.f32.xlu1 %v1528_v26 }
 0x13c   : > { %1532 = vmax.xlane.f32.xlu0 %v1531_v49 }
 0x188   : > { %v1443_v5 = vpop.xlane.xlu1 %1442 }
 0x189   : > { %v1455_v28 = vpop.xlane.xlu0 %1454  ;;  %vm1535_vm8 = vcmp.eq.f32.partialorder %v1443_v5, -inf }
 0x18a   : > { %vm1539_vm9 = vcmp.eq.f32.partialorder %v1455_v28, -inf  ;;  %v1567_v31 = vsel %vm1535_vm8, 0.0, %v1443_v5 }
 0x18b   : > { %v1571_v32 = vsel %vm1539_vm9, 0.0, %v1455_v28  ;;  %v1599_v58 = vsub.f32 %v4087_v39, %v1567_v31 }
 0x18c   : > { %v1603_v33 = vsub.f32 %v4090_v42, %v1571_v32 }
 0x18d   : > { %v1632_v34 = vmul.f32 1.442695, %v1599_v58  ;;  %v1440_v35 = vpop.xlane.xlu0 %1439  ;;  %v1446_v36 = vpop.xlane.xlu1 %1445 }
 0x18e   : > { %v1640_v41 = vmul.f32 1.442695, %v1603_v33  ;;  %vm1534_vm10 = vcmp.eq.f32.partialorder %v1440_v35, -inf  ;;  %vm1536_vm11 = vcmp.eq.f32.partialorder %v1446_v36, -inf }
 0x18f   : > { %3652 = vpow2.f32 %v1632_v34  ;;  %v1566_v43 = vsel %vm1534_vm10, 0.0, %v1440_v35  ;;  %v1568_v48 = vsel %vm1536_vm11, 0.0, %v1446_v36 }
 0x190   : > { %3654 = vpow2.f32 %v1640_v41  ;;  %v1598_v50 = vsub.f32 %v4097_v46, %v1566_v43  ;;  %v1600_v53 = vsub.f32 %v4104_v52, %v1568_v48 }
 0x191   : > { %v1452_v56 = vpop.xlane.xlu0 %1451  ;;  %v1458_v57 = vpop.xlane.xlu1 %1457 }
 0x192   : > { %v1630_v60 = vmul.f32 1.442695, %v1598_v50  ;;  %vm1538_vm12 = vcmp.eq.f32.partialorder %v1452_v56, -inf  ;;  %vm1540_vm13 = vcmp.eq.f32.partialorder %v1458_v57, -inf  ;;  %v1634_v0 = vmul.f32 1.442695, %v1600_v53 }
 0x193   : > { %v1570_v39 = vsel %vm1538_vm12, 0.0, %v1452_v56  ;;  %v1572_v42 = vsel %vm1540_vm13, 0.0, %v1458_v57 }
 0x194   : > { %3656 = vpow2.f32 %v1630_v60  ;;  %v1602_v61 = vsub.f32 %v4107_v54, %v1570_v39  ;;  %v1604_v4 = vsub.f32 %v4110_v55, %v1572_v42 }
 0x195   : > { %v1449_v8 = vpop.xlane.xlu0 %1448 }
 0x196   : > { %v1638_v9 = vmul.f32 1.442695, %v1602_v61  ;;  %vm1537_vm14 = vcmp.eq.f32.partialorder %v1449_v8, -inf  ;;  %v1642_v11 = vmul.f32 1.442695, %v1604_v4 }
 0x197   : > { %v1569_v10 = vsel %vm1537_vm14, 0.0, %v1449_v8 }
 0x198   : > { %3658 = vpow2.f32 %v1638_v9  ;;  %v1601_v46 = vsub.f32 %v4119_v59, %v1569_v10 }
 0x199   : > { %v4259_v52 = vpop.eup %3652  ;;  %3660 = vpow2.f32 %v1634_v0  ;;  %v1461_v12 = vpop.xlane.xlu0 %1460 }
 0x19a   : > { %v1464_v44 = vpop.xlane.xlu1 %1463  ;;  %v4261_v17 = vpop.eup %3654  ;;  %v1636_v37 = vmul.f32 1.442695, %v1601_v46  ;;  %vm1541_vm15 = vcmp.eq.f32.partialorder %v1461_v12, -inf  ;;  %v1697_v54 = vsel %vm1437_vm1, %v4259_v52, 0.0 }
 0x19b   : > { %vm1542_vm2 = vcmp.eq.f32.partialorder %v1464_v44, -inf  ;;  %v1573_v55 = vsel %vm1541_vm15, 0.0, %v1461_v12  ;;  %1698 = vadd.xlane.f32.xlu0 %v1697_v54  ;;  %v1709_v5 = vsel %vm1437_vm1, %v4261_v17, 0.0 }
 0x19c   : > { %v1574_v23 = vsel %vm1542_vm2, 0.0, %v1464_v44  ;;  %3662 = vpow2.f32 %v1636_v37  ;;  %v1605_v59 = vsub.f32 %v4126_v62, %v1573_v55 }
 0x19d   : > { %v1606_v25 = vsub.f32 %v4131_v3, %v1574_v23  ;;  %3664 = vpow2.f32 %v1642_v11  ;;  %v1467_v26 = vpop.xlane.xlu0 %1466 }
 0x19e   : > { %v1476_v49 = vpop.xlane.xlu1 %1475  ;;  %v4269_v28 = vpop.eup %3656  ;;  %v1644_v31 = vmul.f32 1.442695, %v1605_v59  ;;  %vm1543_vm3 = vcmp.eq.f32.partialorder %v1467_v26, -inf }
 0x19f   : > { %v1646_v32 = vmul.f32 1.442695, %v1606_v25  ;;  %vm1546_vm4 = vcmp.eq.f32.partialorder %v1476_v49, -inf  ;;  %v1575_v58 = vsel %vm1543_vm3, 0.0, %v1467_v26  ;;  %1710 = vadd.xlane.f32.xlu0 %v1709_v5  ;;  %v1694_v62 = vsel %vm1437_vm1, %v4269_v28, 0.0 }
 0x1a0   : > { %v1578_v33 = vsel %vm1546_vm4, 0.0, %v1476_v49  ;;  %3666 = vpow2.f32 %v1644_v31  ;;  %v1607_v3 = vsub.f32 %v4134_v6, %v1575_v58  ;;  %1695 = vadd.xlane.f32.xlu1 %v1694_v62 }
 0x1a1   : > { %v1610_v34 = vsub.f32 %v4137_v7, %v1578_v33  ;;  %3668 = vpow2.f32 %v1646_v32  ;;  %v1479_v35 = vpop.xlane.xlu0 %1478 }
 0x1a2   : > { %v1470_v36 = vpop.xlane.xlu1 %1469  ;;  %v4275_v41 = vpop.eup %3658  ;;  %v1648_v43 = vmul.f32 1.442695, %v1607_v3  ;;  %vm1547_vm5 = vcmp.eq.f32.partialorder %v1479_v35, -inf }
 0x1a3   : > { %v1654_v48 = vmul.f32 1.442695, %v1610_v34  ;;  %vm1544_vm6 = vcmp.eq.f32.partialorder %v1470_v36, -inf  ;;  %v4277_v50 = vpop.eup %3660  ;;  %v1579_v53 = vsel %vm1547_vm5, 0.0, %v1479_v35  ;;  %v1706_v57 = vsel %vm1437_vm1, %v4275_v41, 0.0 }
 0x1a4   : > { %v1576_v56 = vsel %vm1544_vm6, 0.0, %v1470_v36  ;;  %3670 = vpow2.f32 %v1648_v43  ;;  %v1611_v6 = vsub.f32 %v4144_v14, %v1579_v53  ;;  %1707 = vadd.xlane.f32.xlu1 %v1706_v57  ;;  %v1700_v10 = vsel %vm1437_vm1, %v4277_v50, 0.0 }
 0x1a5   : > { %v1608_v7 = vsub.f32 %v4147_v15, %v1576_v56  ;;  %3672 = vpow2.f32 %v1654_v48  ;;  %v1473_v60 = vpop.xlane.xlu0 %1472 }
 0x1a6   : > { %v1482_v39 = vpop.xlane.xlu1 %1481  ;;  %v4283_v42 = vpop.eup %3662  ;;  %v1656_v61 = vmul.f32 1.442695, %v1611_v6  ;;  %vm1545_vm7 = vcmp.eq.f32.partialorder %v1473_v60, -inf }
 0x1a7   : > { %v1650_v0 = vmul.f32 1.442695, %v1608_v7  ;;  %vm1548_vm8 = vcmp.eq.f32.partialorder %v1482_v39, -inf  ;;  %v4285_v4 = vpop.eup %3664  ;;  %v1577_v8 = vsel %vm1545_vm7, 0.0, %v1473_v60  ;;  %v1703_v14 = vsel %vm1437_vm1, %v4283_v42, 0.0  ;;  %v532_v60 = vld [vmem:[%s4317_s16] sm:$0xff] }
 0x1a8   : > { %v1580_v9 = vsel %vm1548_vm8, 0.0, %v1482_v39  ;;  %3674 = vpow2.f32 %v1656_v61  ;;  %v1609_v15 = vsub.f32 %v4154_v18, %v1577_v8  ;;  %1701 = vadd.xlane.f32.xlu1 %v1700_v10  ;;  %1704 = vadd.xlane.f32.xlu0 %v1703_v14  ;;  %v1712_v18 = vsel %vm1437_vm1, %v4285_v4, 0.0  ;;  %v533_v39 = vld [vmem:[%s4317_s16 + $0x8] sm:$0xff] }
 0x1a9   : > { %v1612_v46 = vsub.f32 %v4157_v19, %v1580_v9  ;;  %3676 = vpow2.f32 %v1650_v0  ;;  %v1485_v11 = vpop.xlane.xlu0 %1484  ;;  %v3553_v14 = vpack.c.bf16 %v533_v39, %v532_v60 }
 0x1aa   : > { %v1488_v12 = vpop.xlane.xlu1 %1487  ;;  %v4293_v44 = vpop.eup %3666  ;;  %v1652_v37 = vmul.f32 1.442695, %v1609_v15  ;;  %vm1549_vm9 = vcmp.eq.f32.partialorder %v1485_v11, -inf }
 0x1ab   : > { %v1658_v54 = vmul.f32 1.442695, %v1612_v46  ;;  %vm1550_vm10 = vcmp.eq.f32.partialorder %v1488_v12, -inf  ;;  %v4295_v55 = vpop.eup %3668  ;;  %v1581_v23 = vsel %vm1549_vm9, 0.0, %v1485_v11  ;;  %v1715_v19 = vsel %vm1437_vm1, %v4293_v44, 0.0  ;;  %3554 = vmatprep.subr.bf16.mxu0 %v3553_v14 }
 0x1ac   : > { %v1582_v59 = vsel %vm1550_vm10, 0.0, %v1488_v12  ;;  %3678 = vpow2.f32 %v1652_v37  ;;  %v1613_v25 = vsub.f32 %v4164_v22, %v1581_v23  ;;  %1713 = vadd.xlane.f32.xlu1 %v1712_v18  ;;  %1716 = vadd.xlane.f32.xlu0 %v1715_v19  ;;  %v1718_v22 = vsel %vm1437_vm1, %v4295_v55, 0.0  ;;  %v535_v23 = vld [vmem:[%s4317_s16 + $0x18] sm:$0xff] }
 0x1ad   : > { %v1614_v26 = vsub.f32 %v4171_v27, %v1582_v59  ;;  %3680 = vpow2.f32 %v1658_v54  ;;  %v1491_v49 = vpop.xlane.xlu0 %1490  ;;  %v534_v54 = vld [vmem:[%s4317_s16 + $0x10] sm:$0xff]  ;;  %v536_v59 = vld [vmem:[%s4317_s16 + $0x20] sm:$0xff]  ;;  %3556 = vmatpush3.bf16.msra.mxu0 %v3553_v14 }
 0x1ae   : > { %v1500_v5 = vpop.xlane.xlu1 %1499  ;;  %v4303_v31 = vpop.eup %3670  ;;  %v1660_v32 = vmul.f32 1.442695, %v1613_v25  ;;  %vm1551_vm11 = vcmp.eq.f32.partialorder %v1491_v49, -inf  ;;  %v537_v25 = vld [vmem:[%s4317_s16 + $0x28] sm:$0xff] }
 0x1af   : > { %v1662_v58 = vmul.f32 1.442695, %v1614_v26  ;;  %vm1554_vm12 = vcmp.eq.f32.partialorder %v1500_v5, -inf  ;;  %v4305_v33 = vpop.eup %3672  ;;  %v1583_v62 = vsel %vm1551_vm11, 0.0, %v1491_v49  ;;  %v1721_v27 = vsel %vm1437_vm1, %v4303_v31, 0.0 }
 0x1b0   : > { %v1586_v3 = vsel %vm1554_vm12, 0.0, %v1500_v5  ;;  %3682 = vpow2.f32 %v1660_v32  ;;  %v1615_v34 = vsub.f32 %v4174_v29, %v1583_v62  ;;  %1719 = vadd.xlane.f32.xlu1 %v1718_v22  ;;  %1722 = vadd.xlane.f32.xlu0 %v1721_v27  ;;  %v1730_v6 = vsel %vm1437_vm1, %v4305_v33, 0.0 }
 0x1b1   : > { %v1618_v35 = vsub.f32 %v4177_v30, %v1586_v3  ;;  %3684 = vpow2.f32 %v1662_v58  ;;  %v1503_v36 = vpop.xlane.xlu0 %1502  ;;  %v3557_v5 = vpack.c.bf16 %v535_v23, %v534_v54  ;;  %v3561_v32 = vpack.c.bf16 %v537_v25, %v536_v59  ;;  %v540_v23 = vld [vmem:[%s4317_s16 + $0x40] sm:$0xff]  ;;  %v541_v59 = vld [vmem:[%s4317_s16 + $0x48] sm:$0xff] }
 0x1b2   : > { %v1494_v43 = vpop.xlane.xlu1 %1493  ;;  %v4319_v48 = vpop.eup %3674  ;;  %v1664_v53 = vmul.f32 1.442695, %v1615_v34  ;;  %vm1555_vm13 = vcmp.eq.f32.partialorder %v1503_v36, -inf }
 0x1b3   : > { %v1670_v56 = vmul.f32 1.442695, %v1618_v35  ;;  %vm1552_vm14 = vcmp.eq.f32.partialorder %v1494_v43, -inf  ;;  %v4321_v29 = vpop.eup %3676  ;;  %v1587_v30 = vsel %vm1555_vm13, 0.0, %v1503_v36  ;;  %v1733_v7 = vsel %vm1437_vm1, %v4319_v48, 0.0  ;;  %3558 = vmatprep.subr.bf16.mxu0 %v3557_v5  ;;  %3562 = vmatprep.subr.bf16.mxu1 %v3561_v32  ;;  %v538_v35 = vld [vmem:[%s4317_s16 + $0x30] sm:$0xff] }
 0x1b4   : > { %v1584_v57 = vsel %vm1552_vm14, 0.0, %v1494_v43  ;;  %3686 = vpow2.f32 %v1664_v53  ;;  %v1619_v61 = vsub.f32 %v4184_v38, %v1587_v30  ;;  %1731 = vadd.xlane.f32.xlu1 %v1730_v6  ;;  %1734 = vadd.xlane.f32.xlu0 %v1733_v7  ;;  %v1724_v10 = vsel %vm1437_vm1, %v4321_v29, 0.0  ;;  %v539_v36 = vld [vmem:[%s4317_s16 + $0x38] sm:$0xff] }
 0x1b5   : > { %v1616_v0 = vsub.f32 %v4187_v40, %v1584_v57  ;;  %3688 = vpow2.f32 %v1670_v56  ;;  %v1497_v8 = vpop.xlane.xlu0 %1496  ;;  %3560 = vmatpush3.bf16.msra.mxu0 %v3557_v5  ;;  %3564 = vmatpush3.bf16.msra.mxu1 %v3561_v32  ;;  %v3565_v57 = vpack.c.bf16 %v539_v36, %v538_v35 }
 0x1b6   : > { %v1506_v9 = vpop.xlane.xlu1 %1505  ;;  %v4333_v15 = vpop.eup %3678  ;;  %v1672_v46 = vmul.f32 1.442695, %v1619_v61  ;;  %vm1553_vm15 = vcmp.eq.f32.partialorder %v1497_v8, -inf }
 0x1b7   : > { %v1666_v11 = vmul.f32 1.442695, %v1616_v0  ;;  %vm1556_vm2 = vcmp.eq.f32.partialorder %v1506_v9, -inf  ;;  %v4335_v38 = vpop.eup %3680  ;;  %v1585_v40 = vsel %vm1553_vm15, 0.0, %v1497_v8  ;;  %v1727_v37 = vsel %vm1437_vm1, %v4333_v15, 0.0  ;;  %3566 = vmatprep.subr.bf16.mxu1 %v3565_v57 }
 0x1b8   : > { %v1588_v12 = vsel %vm1556_vm2, 0.0, %v1506_v9  ;;  %3690 = vpow2.f32 %v1672_v46  ;;  %v1617_v18 = vsub.f32 %v4194_v45, %v1585_v40  ;;  %1725 = vadd.xlane.f32.xlu1 %v1724_v10  ;;  %1728 = vadd.xlane.f32.xlu0 %v1727_v37  ;;  %v1736_v27 = vsel %vm1437_vm1, %v4335_v38, 0.0 }
 0x1b9   : > { %v1620_v19 = vsub.f32 %v4197_v47, %v1588_v12  ;;  %3692 = vpow2.f32 %v1666_v11  ;;  %v1509_v26 = vpop.xlane.xlu0 %1508  ;;  %3568 = vmatpush3.bf16.msra.mxu1 %v3565_v57 }
 0x1ba   : > { %v1512_v49 = vpop.xlane.xlu1 %1511  ;;  %v4345_v58 = vpop.eup %3682  ;;  %v1668_v62 = vmul.f32 1.442695, %v1617_v18  ;;  %vm1557_vm3 = vcmp.eq.f32.partialorder %v1509_v26, -inf }
 0x1bb   : > { %v1674_v3 = vmul.f32 1.442695, %v1620_v19  ;;  %vm1558_vm4 = vcmp.eq.f32.partialorder %v1512_v49, -inf  ;;  %v4347_v45 = vpop.eup %3684  ;;  %v1589_v47 = vsel %vm1557_vm3, 0.0, %v1509_v26  ;;  %v1739_v34 = vsel %vm1437_vm1, %v4345_v58, 0.0 }
 0x1bc   : > { %v1590_v22 = vsel %vm1558_vm4, 0.0, %v1512_v49  ;;  %3694 = vpow2.f32 %v1668_v62  ;;  %v1621_v43 = vsub.f32 %v4204_v51, %v1589_v47  ;;  %1737 = vadd.xlane.f32.xlu1 %v1736_v27  ;;  %1740 = vadd.xlane.f32.xlu0 %v1739_v34  ;;  %v4379_v49 = vpack.c.bf16 %v541_v59, %v540_v23  ;;  %v544_v27 = vld [vmem:[%s4317_s16 + $0x60] sm:$0xff]  ;;  %v545_v34 = vld [vmem:[%s4317_s16 + $0x68] sm:$0xff] }
 0x1bd   : > { %v1622_v53 = vsub.f32 %v4211_v63, %v1590_v22  ;;  %3696 = vpow2.f32 %v1674_v3  ;;  %v1515_v56 = vpop.xlane.xlu0 %1514  ;;  %v1742_v63 = vsel %vm1437_vm1, %v4347_v45, 0.0 }
 0x1be   : > { %v1524_v30 = vpop.xlane.xlu1 %1523  ;;  %v4357_v6 = vpop.eup %3686  ;;  %v1676_v7 = vmul.f32 1.442695, %v1621_v43  ;;  %vm1559_vm5 = vcmp.eq.f32.partialorder %v1515_v56, -inf  ;;  %3570 = vmatprep.subr.bf16.mxu0 %v4379_v49 }
 0x1bf   : > { %v1678_v60 = vmul.f32 1.442695, %v1622_v53  ;;  %vm1562_vm6 = vcmp.eq.f32.partialorder %v1524_v30, -inf  ;;  %v4359_v39 = vpop.eup %3688  ;;  %v1591_v61 = vsel %vm1559_vm5, 0.0, %v1515_v56  ;;  %v1745_v0 = vsel %vm1437_vm1, %v4357_v6, 0.0 }
 0x1c0   : > { %v1594_v51 = vsel %vm1562_vm6, 0.0, %v1524_v30  ;;  %3698 = vpow2.f32 %v1676_v7  ;;  %v1623_v8 = vsub.f32 %v4214_v1, %v1591_v61  ;;  %1743 = vadd.xlane.f32.xlu1 %v1742_v63  ;;  %1746 = vadd.xlane.f32.xlu0 %v1745_v0  ;;  %v4394_v53 = vpack.c.bf16 %v545_v34, %v544_v27  ;;  %v543_v27 = vld [vmem:[%s4317_s16 + $0x58] sm:$0xff] }
 0x1c1   : > { %v1626_v9 = vsub.f32 %v4217_v2, %v1594_v51  ;;  %3700 = vpow2.f32 %v1678_v60  ;;  %v1527_v10 = vpop.xlane.xlu0 %1526  ;;  %v1754_v2 = vsel %vm1437_vm1, %v4359_v39, 0.0 }
 0x1c2   : > { %v1518_v14 = vpop.xlane.xlu1 %1517  ;;  %v4367_v46 = vpop.eup %3690  ;;  %v1680_v11 = vmul.f32 1.442695, %v1623_v8  ;;  %vm1563_vm7 = vcmp.eq.f32.partialorder %v1527_v10, -inf  ;;  %3578 = vmatprep.subr.bf16.mxu1 %v4394_v53 }
 0x1c3   : > { %v1686_v40 = vmul.f32 1.442695, %v1626_v9  ;;  %vm1560_vm8 = vcmp.eq.f32.partialorder %v1518_v14, -inf  ;;  %v4369_v12 = vpop.eup %3692  ;;  %v1595_v37 = vsel %vm1563_vm7, 0.0, %v1527_v10  ;;  %v1757_v54 = vsel %vm1437_vm1, %v4367_v46, 0.0 }
 0x1c4   : > { %v1592_v1 = vsel %vm1560_vm8, 0.0, %v1518_v14  ;;  %3702 = vpow2.f32 %v1680_v11  ;;  %v1627_v18 = vsub.f32 %v4224_v13, %v1595_v37  ;;  %1755 = vadd.xlane.f32.xlu1 %v1754_v2  ;;  %1758 = vadd.xlane.f32.xlu0 %v1757_v54 }
 0x1c5   : > { %v1624_v19 = vsub.f32 %v4227_v16, %v1592_v1  ;;  %3704 = vpow2.f32 %v1686_v40  ;;  %v1521_v25 = vpop.xlane.xlu0 %1520  ;;  %v1748_v16 = vsel %vm1437_vm1, %v4369_v12, 0.0 }
 0x1c6   : > { %v1530_v26 = vpop.xlane.xlu1 %1529  ;;  %v4381_v5 = vpop.eup %3694  ;;  %v1688_v32 = vmul.f32 1.442695, %v1627_v18  ;;  %vm1561_vm9 = vcmp.eq.f32.partialorder %v1521_v25, -inf }
 0x1c7   : > { %v1682_v62 = vmul.f32 1.442695, %v1624_v19  ;;  %vm1564_vm10 = vcmp.eq.f32.partialorder %v1530_v26, -inf  ;;  %v4383_v3 = vpop.eup %3696  ;;  %v1593_v13 = vsel %vm1561_vm9, 0.0, %v1521_v25  ;;  %v1751_v22 = vsel %vm1437_vm1, %v4381_v5, 0.0 }
 0x1c8   : > { %v1596_v47 = vsel %vm1564_vm10, 0.0, %v1530_v26  ;;  %3706 = vpow2.f32 %v1688_v32  ;;  %v1625_v35 = vsub.f32 %v4234_v20, %v1593_v13  ;;  %1749 = vadd.xlane.f32.xlu1 %v1748_v16  ;;  %1752 = vadd.xlane.f32.xlu0 %v1751_v22  ;;  %v1760_v61 = vsel %vm1437_vm1, %v4383_v3, 0.0  ;;  %v542_v22 = vld [vmem:[%s4317_s16 + $0x50] sm:$0xff] }
 0x1c9   : > { %v1628_v36 = vsub.f32 %v4237_v21, %v1596_v47  ;;  %v1533_v43 = vpop.xlane.xlu0 %1532  ;;  %3708 = vpow2.f32 %v1682_v62 }
 0x1ca   : > { %v4396_v56 = vpop.eup %3698  ;;  %v1684_v30 = vmul.f32 1.442695, %v1625_v35  ;;  %vm1565_vm11 = vcmp.eq.f32.partialorder %v1533_v43, -inf }
 0x1cb   : > { %v1690_v57 = vmul.f32 1.442695, %v1628_v36  ;;  %v4398_v7 = vpop.eup %3700  ;;  %v1597_v60 = vsel %vm1565_vm11, 0.0, %v1533_v43  ;;  %v1763_v20 = vsel %vm1437_vm1, %v4396_v56, 0.0 }
 0x1cc   : > { %3710 = vpow2.f32 %v1684_v30  ;;  %v1629_v21 = vsub.f32 %v4244_v24, %v1597_v60  ;;  %1761 = vadd.xlane.f32.xlu1 %v1760_v61  ;;  %1764 = vadd.xlane.f32.xlu0 %v1763_v20  ;;  %v1766_v8 = vsel %vm1437_vm1, %v4398_v7, 0.0  ;;  %v3573_v60 = vpack.c.bf16 %v543_v27, %v542_v22  ;;  %v546_v61 = vld [vmem:[%s4317_s16 + $0x70] sm:$0xff] }
 0x1cd   : > { %3712 = vpow2.f32 %v1690_v57 }
 0x1ce   : > { %v4406_v51 = vpop.eup %3702  ;;  %v1692_v63 = vmul.f32 1.442695, %v1629_v21 }
 0x1cf   : > { %v4408_v0 = vpop.eup %3704  ;;  %v1769_v9 = vsel %vm1437_vm1, %v4406_v51, 0.0 }
 0x1d0   : > { %3714 = vpow2.f32 %v1692_v63  ;;  %1767 = vadd.xlane.f32.xlu1 %v1766_v8  ;;  %1770 = vadd.xlane.f32.xlu0 %v1769_v9  ;;  %v1778_v24 = vsel %vm1437_vm1, %v4408_v0, 0.0  ;;  %v547_v63 = vld [vmem:[%s4317_s16 + $0x78] sm:$0xff]  ;;  %v548_v8 = vld [vmem:[%s4317_s16 + $0x80] sm:$0xff]  ;;  %v549_v9 = vld [vmem:[%s4317_s16 + $0x88] sm:$0xff] }
 0x1d2   : > { %v4414_v10 = vpop.eup %3706 }
 0x1d3   : > { %v1781_v14 = vsel %vm1437_vm1, %v4414_v10, 0.0  ;;  %v4420_v11 = vpop.eup %3708 }
 0x1d4   : > { %1779 = vadd.xlane.f32.xlu1 %v1778_v24  ;;  %1782 = vadd.xlane.f32.xlu0 %v1781_v14  ;;  %v1772_v37 = vsel %vm1437_vm1, %v4420_v11, 0.0 }
 0x1d6   : > { %v4422_v40 = vpop.eup %3710 }
 0x1d7   : > { %v1775_v1 = vsel %vm1437_vm1, %v4422_v40, 0.0  ;;  %v4428_v2 = vpop.eup %3712 }
 0x1d8   : > { %1773 = vadd.xlane.f32.xlu1 %v1772_v37  ;;  %1776 = vadd.xlane.f32.xlu0 %v1775_v1  ;;  %v1784_v23 = vsel %vm1437_vm1, %v4428_v2, 0.0  ;;  %v3581_v1 = vpack.c.bf16 %v547_v63, %v546_v61  ;;  %v554_v63 = vld [vmem:[%s4317_s16 + $0xb0] sm:$0xff] }
 0x1da   : > { %v4430_v54 = vpop.eup %3714 }
 0x1db   : > { %v1787_v59 = vsel %vm1437_vm1, %v4430_v54, 0.0 }
 0x1dc   : > { %1785 = vadd.xlane.f32.xlu1 %v1784_v23  ;;  %1788 = vadd.xlane.f32.xlu0 %v1787_v59  ;;  %v4449_v23 = vpack.c.bf16 %v549_v9, %v548_v8  ;;  %v555_v9 = vld [vmem:[%s4317_s16 + $0xb8] sm:$0xff] }
 0x228   : > { %v1699_v18 = vpop.xlane.xlu0 %1698 }
 0x229   : > { %3716 = vrcp.f32 %v1699_v18  ;;  %vm1791_vm12 = vcmp.gt.f32.partialorder %v1699_v18, 0.0  ;;  %v552_v18 = vld [vmem:[%s4317_s16 + $0xa0] sm:$0xff] }
 0x22c   : > { %v1711_v19 = vpop.xlane.xlu0 %1710 }
 0x22d   : > { %v1696_v25 = vpop.xlane.xlu1 %1695  ;;  %vm1795_vm14 = vcmp.gt.f32.partialorder %v1711_v19, 0.0 }
 0x22e   : > { %3718 = vrcp.f32 %v1696_v25  ;;  %vm1790_vm13 = vcmp.gt.f32.partialorder %v1696_v25, 0.0 }
 0x22f   : > { %3720 = vrcp.f32 %v1711_v19  ;;  %v553_v19 = vld [vmem:[%s4317_s16 + $0xa8] sm:$0xff] }
 0x231   : > { %v1708_v26 = vpop.xlane.xlu1 %1707 }
 0x232   : > { %3722 = vrcp.f32 %v1708_v26  ;;  %vm1794_vm15 = vcmp.gt.f32.partialorder %v1708_v26, 0.0 }
 0x233   : > { %v3717_v32 = vpop.eup %3716 }
 0x234   : > { %v1855_v16 = vsel %vm1791_vm12, %v3717_v32, 0.0 }
 0x235   : > { %v1702_v62 = vpop.xlane.xlu1 %1701  ;;  %v1705_v13 = vpop.xlane.xlu0 %1704  ;;  %v1887_v57 = vmul.f32 %v4259_v52, %v1855_v16 }
 0x236   : > { %3724 = vrcp.f32 %v1702_v62  ;;  %vm1792_vm2 = vcmp.gt.f32.partialorder %v1702_v62, 0.0  ;;  %vm1793_vm3 = vcmp.gt.f32.partialorder %v1705_v13, 0.0 }
 0x237   : > { %3726 = vrcp.f32 %v1705_v13 }
 0x238   : > { %v3719_v47 = vpop.eup %3718 }
 0x239   : > { %v3721_v34 = vpop.eup %3720  ;;  %v1854_v35 = vsel %vm1790_vm13, %v3719_v47, 0.0  ;;  %v1714_v36 = vpop.xlane.xlu1 %1713  ;;  %v4459_v47 = vpack.c.bf16 %v553_v19, %v552_v18  ;;  %v3597_v18 = vpack.c.bf16 %v555_v9, %v554_v63 }
 0x23a   : > { %v1717_v43 = vpop.xlane.xlu0 %1716  ;;  %v1886_v30 = vmul.f32 %v4269_v28, %v1854_v35  ;;  %3728 = vrcp.f32 %v1714_v36  ;;  %v1859_v21 = vsel %vm1795_vm14, %v3721_v34, 0.0  ;;  %vm1796_vm4 = vcmp.gt.f32.partialorder %v1714_v36, 0.0  ;;  %v550_v36 = vld [vmem:[%s4317_s16 + $0x90] sm:$0xff] }
 0x23b   : > { %3730 = vrcp.f32 %v1717_v43  ;;  %v1891_v37 = vmul.f32 %v4261_v17, %v1859_v21  ;;  %vm1797_vm5 = vcmp.gt.f32.partialorder %v1717_v43, 0.0  ;;  %v551_v43 = vld [vmem:[%s4317_s16 + $0x98] sm:$0xff] }
 0x23c   : > { %v3723_v20 = vpop.eup %3722  ;;  %3353 = vmatprep.mubr.msk.f32.mxu0 %vm1437_vm1, %v1886_v30  ;;  %v3589_v21 = vpack.c.bf16 %v551_v43, %v550_v36 }
 0x23d   : > { %v1858_v24 = vsel %vm1794_vm15, %v3723_v20, 0.0  ;;  %v1720_v14 = vpop.xlane.xlu1 %1719  ;;  %3354 = vmatmul.mubr.msk.f32.vlgmr.msra.gmra.mrb[16].mxu0 %vm1437_vm1, %v1887_v57 }
 0x23e   : > { %v1723_v28 = vpop.xlane.xlu0 %1722  ;;  %v1890_v52 = vmul.f32 %v4275_v41, %v1858_v24  ;;  %3732 = vrcp.f32 %v1720_v14  ;;  %3572 = vmatpush3.bf16.msra.mxu0 %v4379_v49  ;;  %vm1798_vm6 = vcmp.gt.f32.partialorder %v1720_v14, 0.0  ;;  %v556_v24 = vld [vmem:[%s4317_s16 + $0xc0] sm:$0xff]  ;;  %v557_v14 = vld [vmem:[%s4317_s16 + $0xc8] sm:$0xff] }
 0x23f   : > { %3734 = vrcp.f32 %v1723_v28  ;;  %3574 = vmatprep.subr.bf16.mxu0 %v3573_v60  ;;  %vm1799_vm7 = vcmp.gt.f32.partialorder %v1723_v28, 0.0  ;;  %v4481_v19 = vpack.c.bf16 %v557_v14, %v556_v24 }
 0x240   : > { %v3725_v59 = vpop.eup %3724  ;;  %3367 = vmatprep.mubr.msk.f32.mxu1 %vm1437_vm1, %v1890_v52 }
 0x241   : > { %v3727_v25 = vpop.eup %3726  ;;  %v1856_v26 = vsel %vm1792_vm2, %v3725_v59, 0.0  ;;  %v1732_v41 = vpop.xlane.xlu1 %1731  ;;  %3368 = vmatmul.mubr.msk.f32.vlgmr.msra.gmra.mrb[16].mxu1 %vm1437_vm1, %v1891_v37 }
 0x242   : > { %v1735_v49 = vpop.xlane.xlu0 %1734  ;;  %v1888_v17 = vmul.f32 %v4277_v50, %v1856_v26  ;;  %v1857_v32 = vsel %vm1793_vm3, %v3727_v25, 0.0  ;;  %3736 = vrcp.f32 %v1732_v41  ;;  %3576 = vmatpush3.bf16.msra.mxu0 %v3573_v60  ;;  %3580 = vmatpush3.bf16.msra.mxu1 %v4394_v53  ;;  %vm1802_vm8 = vcmp.gt.f32.partialorder %v1732_v41, 0.0  ;;  %v560_v26 = vld [vmem:[%s4317_s16 + $0xe0] sm:$0xff]  ;;  %v561_v41 = vld [vmem:[%s4317_s16 + $0xe8] sm:$0xff] }
 0x243   : > { %v1889_v62 = vmul.f32 %v4283_v42, %v1857_v32  ;;  %3738 = vrcp.f32 %v1735_v49  ;;  %3582 = vmatprep.subr.bf16.mxu1 %v3581_v1  ;;  %3586 = vmatprep.subr.bf16.mxu0 %v4449_v23  ;;  %vm1803_vm9 = vcmp.gt.f32.partialorder %v1735_v49, 0.0 }
 0x244   : > { %v3729_v13 = vpop.eup %3728  ;;  %3356 = vmatprep.mubr.msk.f32.mxu0 %vm1437_vm1, %v1888_v17 }
 0x245   : > { %v3731_v16 = vpop.eup %3730  ;;  %v1860_v50 = vsel %vm1796_vm4, %v3729_v13, 0.0  ;;  %v1726_v22 = vpop.xlane.xlu1 %1725  ;;  %3357 = vmatmul.mubr.msk.f32.gmra.mrb[18].mxu0 %vm1437_vm1, %v1889_v62  ;;  %v4491_v13 = vpack.c.bf16 %v561_v41, %v560_v26 }
 0x246   : > { %v1729_v53 = vpop.xlane.xlu0 %1728  ;;  %v1892_v42 = vmul.f32 %v4285_v4, %v1860_v50  ;;  %v1861_v27 = vsel %vm1797_vm5, %v3731_v16, 0.0  ;;  %3740 = vrcp.f32 %v1726_v22  ;;  %3584 = vmatpush3.bf16.msra.mxu1 %v3581_v1  ;;  %vm1800_vm10 = vcmp.gt.f32.partialorder %v1726_v22, 0.0 }
 0x247   : > { %v1893_v34 = vmul.f32 %v4293_v44, %v1861_v27  ;;  %3742 = vrcp.f32 %v1729_v53  ;;  %3594 = vmatprep.subr.bf16.mxu1 %v4459_v47  ;;  %vm1801_vm11 = vcmp.gt.f32.partialorder %v1729_v53, 0.0 }
 0x248   : > { %v3733_v35 = vpop.eup %3732  ;;  %3370 = vmatprep.mubr.msk.f32.mxu1 %vm1437_vm1, %v1892_v42 }
 0x249   : > { %v3735_v30 = vpop.eup %3734  ;;  %v1862_v57 = vsel %vm1798_vm6, %v3733_v35, 0.0  ;;  %v1738_v4 = vpop.xlane.xlu1 %1737  ;;  %3371 = vmatmul.mubr.msk.f32.gmra.mrb[18].mxu1 %vm1437_vm1, %v1893_v34  ;;  %v558_v34 = vld [vmem:[%s4317_s16 + $0xd0] sm:$0xff]  ;;  %v559_v35 = vld [vmem:[%s4317_s16 + $0xd8] sm:$0xff] }
 0x24a   : > { %v1741_v44 = vpop.xlane.xlu0 %1740  ;;  %v1894_v60 = vmul.f32 %v4295_v55, %v1862_v57  ;;  %v1863_v61 = vsel %vm1799_vm7, %v3735_v30, 0.0  ;;  %3744 = vrcp.f32 %v1738_v4  ;;  %vm1804_vm12 = vcmp.gt.f32.partialorder %v1738_v4, 0.0 }
 0x24b   : > { %v1895_v20 = vmul.f32 %v4303_v31, %v1863_v61  ;;  %3746 = vrcp.f32 %v1741_v44  ;;  %vm1805_vm13 = vcmp.gt.f32.partialorder %v1741_v44, 0.0  ;;  %v3605_v44 = vpack.c.bf16 %v559_v35, %v558_v34  ;;  %v562_v61 = vld [vmem:[%s4317_s16 + $0xf0] sm:$0xff] }
 0x24c   : > { %v3737_v8 = vpop.eup %3736  ;;  %3381 = vmatprep.mubr.msk.f32.mxu0 %vm1437_vm1, %v1894_v60 }
 0x24d   : > { %v3739_v28 = vpop.eup %3738  ;;  %v1866_v52 = vsel %vm1802_vm8, %v3737_v8, 0.0  ;;  %v1744_v37 = vpop.xlane.xlu1 %1743  ;;  %3382 = vmatmul.mubr.msk.f32.vlgmr.msra.gmra.mrb[20].mxu0 %vm1437_vm1, %v1895_v20  ;;  %v563_v20 = vld [vmem:[%s4317_s16 + $0xf8] sm:$0xff] }
 0x24e   : > { %v1747_v55 = vpop.xlane.xlu0 %1746  ;;  %v1898_v31 = vmul.f32 %v4305_v33, %v1866_v52  ;;  %v1867_v1 = vsel %vm1803_vm9, %v3739_v28, 0.0  ;;  %3748 = vrcp.f32 %v1744_v37  ;;  %3588 = vmatpush3.bf16.msra.mxu0 %v4449_v23  ;;  %vm1806_vm14 = vcmp.gt.f32.partialorder %v1744_v37, 0.0 }
 0x24f   : > { %v1899_v59 = vmul.f32 %v4319_v48, %v1867_v1  ;;  %3750 = vrcp.f32 %v1747_v55  ;;  %3590 = vmatprep.subr.bf16.mxu0 %v3589_v21  ;;  %vm1807_vm15 = vcmp.gt.f32.partialorder %v1747_v55, 0.0  ;;  %v3613_v14 = vpack.c.bf16 %v563_v20, %v562_v61 }
 0x250   : > { %v3741_v25 = vpop.eup %3740  ;;  %3395 = vmatprep.mubr.msk.f32.mxu1 %vm1437_vm1, %v1898_v31 }
 0x251   : > { %v3743_v49 = vpop.eup %3742  ;;  %v1864_v17 = vsel %vm1800_vm10, %v3741_v25, 0.0  ;;  %v1756_v33 = vpop.xlane.xlu1 %1755  ;;  %3396 = vmatmul.mubr.msk.f32.vlgmr.msra.gmra.mrb[20].mxu1 %vm1437_vm1, %v1899_v59 }
 0x252   : > { %v1759_v23 = vpop.xlane.xlu0 %1758  ;;  %v1896_v48 = vmul.f32 %v4321_v29, %v1864_v17  ;;  %v1865_v32 = vsel %vm1801_vm11, %v3743_v49, 0.0  ;;  %3752 = vrcp.f32 %v1756_v33  ;;  %3592 = vmatpush3.bf16.msra.mxu0 %v3589_v21  ;;  %3596 = vmatpush3.bf16.msra.mxu1 %v4459_v47  ;;  %vm1810_vm2 = vcmp.gt.f32.partialorder %v1756_v33, 0.0 }
 0x253   : > { %v1897_v62 = vmul.f32 %v4333_v15, %v1865_v32  ;;  %3754 = vrcp.f32 %v1759_v23  ;;  %3598 = vmatprep.subr.bf16.mxu1 %v3597_v18  ;;  %3602 = vmatprep.subr.bf16.mxu0 %v4481_v19  ;;  %vm1811_vm3 = vcmp.gt.f32.partialorder %v1759_v23, 0.0 }
 0x254   : > { %v3745_v16 = vpop.eup %3744  ;;  %3384 = vmatprep.mubr.msk.f32.mxu0 %vm1437_vm1, %v1896_v48 }
 0x255   : > { %v3747_v50 = vpop.eup %3746  ;;  %v1868_v29 = vsel %vm1804_vm12, %v3745_v16, 0.0  ;;  %v1750_v22 = vpop.xlane.xlu1 %1749  ;;  %3385 = vmatmul.mubr.msk.f32.gmra.mrb[22].mxu0 %vm1437_vm1, %v1897_v62 }
 0x256   : > { %v1753_v47 = vpop.xlane.xlu0 %1752  ;;  %v1900_v15 = vmul.f32 %v4335_v38, %v1868_v29  ;;  %v1869_v53 = vsel %vm1805_vm13, %v3747_v50, 0.0  ;;  %3756 = vrcp.f32 %v1750_v22  ;;  %3600 = vmatpush3.bf16.msra.mxu1 %v3597_v18  ;;  %vm1808_vm4 = vcmp.gt.f32.partialorder %v1750_v22, 0.0 }
 0x257   : > { %v1901_v42 = vmul.f32 %v4345_v58, %v1869_v53  ;;  %3758 = vrcp.f32 %v1753_v47  ;;  %3610 = vmatprep.subr.bf16.mxu1 %v4491_v13  ;;  %vm1809_vm5 = vcmp.gt.f32.partialorder %v1753_v47, 0.0 }
 0x258   : > { %v3749_v27 = vpop.eup %3748  ;;  %3398 = vmatprep.mubr.msk.f32.mxu1 %vm1437_vm1, %v1900_v15 }
 0x259   : > { %v3751_v36 = vpop.eup %3750  ;;  %v1870_v43 = vsel %vm1806_vm14, %v3749_v27, 0.0  ;;  %v1762_v38 = vpop.xlane.xlu1 %1761  ;;  %3399 = vmatmul.mubr.msk.f32.gmra.mrb[22].mxu1 %vm1437_vm1, %v1901_v42 }
 0x25a   : > { %v1765_v30 = vpop.xlane.xlu0 %1764  ;;  %v1902_v58 = vmul.f32 %v4347_v45, %v1870_v43  ;;  %v1871_v57 = vsel %vm1807_vm15, %v3751_v36, 0.0  ;;  %3760 = vrcp.f32 %v1762_v38  ;;  %vm1812_vm6 = vcmp.gt.f32.partialorder %v1762_v38, 0.0 }
 0x25b   : > { %v1903_v4 = vmul.f32 %v4357_v6, %v1871_v57  ;;  %3762 = vrcp.f32 %v1765_v30  ;;  %vm1813_vm7 = vcmp.gt.f32.partialorder %v1765_v30, 0.0 }
 0x25c   : > { %v3753_v60 = vpop.eup %3752  ;;  %3409 = vmatprep.mubr.msk.f32.mxu0 %vm1437_vm1, %v1902_v58 }
 0x25d   : > { %v3755_v21 = vpop.eup %3754  ;;  %v1874_v63 = vsel %vm1810_vm2, %v3753_v60, 0.0  ;;  %v1768_v8 = vpop.xlane.xlu1 %1767  ;;  %3410 = vmatmul.mubr.msk.f32.vlgmr.msra.gmra.mrb[24].mxu0 %vm1437_vm1, %v1903_v4  ;;  %vm2756_vm2 = vcmask 523648  }
 0x25e   : > { %v1771_v9 = vpop.xlane.xlu0 %1770  ;;  %v1906_v45 = vmul.f32 %v4359_v39, %v1874_v63  ;;  %v1875_v24 = vsel %vm1811_vm3, %v3755_v21, 0.0  ;;  %3764 = vrcp.f32 %v1768_v8  ;;  %3604 = vmatpush3.bf16.msra.mxu0 %v4481_v19  ;;  %vm1814_vm8 = vcmp.gt.f32.partialorder %v1768_v8, 0.0 }
 0x25f   : > { %v1907_v6 = vmul.f32 %v4367_v46, %v1875_v24  ;;  %3766 = vrcp.f32 %v1771_v9  ;;  %3606 = vmatprep.subr.bf16.mxu0 %v3605_v44  ;;  %vm1815_vm9 = vcmp.gt.f32.partialorder %v1771_v9, 0.0  ;;  %vm2777_vm3 = vcmask 654848  }
 0x260   : > { %v3757_v28 = vpop.eup %3756  ;;  %3423 = vmatprep.mubr.msk.f32.mxu1 %vm1437_vm1, %v1906_v45 }
 0x261   : > { %v3759_v52 = vpop.eup %3758  ;;  %v1872_v37 = vsel %vm1808_vm4, %v3757_v28, 0.0  ;;  %v1780_v55 = vpop.xlane.xlu1 %1779  ;;  %3424 = vmatmul.mubr.msk.f32.vlgmr.msra.gmra.mrb[24].mxu1 %vm1437_vm1, %v1907_v6  ;;  %vm2798_vm4 = vcmask 786048  }
 0x262   : > { %v1783_v39 = vpop.xlane.xlu0 %1782  ;;  %v1904_v31 = vmul.f32 %v4369_v12, %v1872_v37  ;;  %v1873_v1 = vsel %vm1809_vm5, %v3759_v52, 0.0  ;;  %3768 = vrcp.f32 %v1780_v55  ;;  %3608 = vmatpush3.bf16.msra.mxu0 %v3605_v44  ;;  %3612 = vmatpush3.bf16.msra.mxu1 %v4491_v13  ;;  %vm1818_vm10 = vcmp.gt.f32.partialorder %v1780_v55, 0.0 }
 0x263   : > { %v1905_v46 = vmul.f32 %v4381_v5, %v1873_v1  ;;  %3770 = vrcp.f32 %v1783_v39  ;;  %3614 = vmatprep.subr.bf16.mxu1 %v3613_v14  ;;  %vm1819_vm11 = vcmp.gt.f32.partialorder %v1783_v39, 0.0  ;;  %vm2819_vm5 = vcmask 917248  }
 0x264   : > { %v3761_v59 = vpop.eup %3760  ;;  %3412 = vmatprep.mubr.msk.f32.mxu0 %vm1437_vm1, %v1904_v31 }
 0x265   : > { %v3763_v18 = vpop.eup %3762  ;;  %v1876_v19 = vsel %vm1812_vm6, %v3761_v59, 0.0  ;;  %v1774_v25 = vpop.xlane.xlu1 %1773  ;;  %3413 = vmatmul.mubr.msk.f32.gmra.mrb[26].mxu0 %vm1437_vm1, %v1905_v46  ;;  %vm2840_vm6 = vcmask 1048448  }
 0x266   : > { %v1777_v12 = vpop.xlane.xlu0 %1776  ;;  %v1908_v26 = vmul.f32 %v4383_v3, %v1876_v19  ;;  %v1877_v41 = vsel %vm1813_vm7, %v3763_v18, 0.0  ;;  %3772 = vrcp.f32 %v1774_v25  ;;  %3616 = vmatpush3.bf16.msra.mxu1 %v3613_v14  ;;  %vm1816_vm12 = vcmp.gt.f32.partialorder %v1774_v25, 0.0 }
 0x267   : > { %v1909_v5 = vmul.f32 %v4396_v56, %v1877_v41  ;;  %3774 = vrcp.f32 %v1777_v12  ;;  %vm1817_vm13 = vcmp.gt.f32.partialorder %v1777_v12, 0.0 }
 0x268   : > { %v3765_v49 = vpop.eup %3764  ;;  %3426 = vmatprep.mubr.msk.f32.mxu1 %vm1437_vm1, %v1908_v26 }
 0x269   : > { %v3767_v17 = vpop.eup %3766  ;;  %v1878_v33 = vsel %vm1814_vm8, %v3765_v49, 0.0  ;;  %v1786_v23 = vpop.xlane.xlu1 %1785  ;;  %3427 = vmatmul.mubr.msk.f32.gmra.mrb[26].mxu1 %vm1437_vm1, %v1909_v5 }
 0x26a   : > { %v1789_v48 = vpop.xlane.xlu0 %1788  ;;  %v1910_v32 = vmul.f32 %v4398_v7, %v1878_v33  ;;  %v1879_v3 = vsel %vm1815_vm9, %v3767_v17, 0.0  ;;  %3776 = vrcp.f32 %v1786_v23  ;;  %vm1820_vm14 = vcmp.gt.f32.partialorder %v1786_v23, 0.0 }
 0x26b   : > { %v1911_v62 = vmul.f32 %v4406_v51, %v1879_v3  ;;  %3778 = vrcp.f32 %v1789_v48  ;;  %vm1821_vm15 = vcmp.gt.f32.partialorder %v1789_v48, 0.0 }
 0x26c   : > { %v3769_v56 = vpop.eup %3768  ;;  %3437 = vmatprep.mubr.msk.f32.mxu0 %vm1437_vm1, %v1910_v32 }
 0x26d   : > { %v3771_v13 = vpop.eup %3770  ;;  %v1882_v16 = vsel %vm1818_vm10, %v3769_v56, 0.0  ;;  %3438 = vmatmul.mubr.msk.f32.vlgmr.msra.gmra.mrb[28].mxu0 %vm1437_vm1, %v1911_v62 }
 0x26e   : > { %v1914_v50 = vmul.f32 %v4408_v0, %v1882_v16  ;;  %v1883_v29 = vsel %vm1819_vm11, %v3771_v13, 0.0 }
 0x26f   : > { %v1915_v22 = vmul.f32 %v4414_v10, %v1883_v29 }
 0x270   : > { %v3773_v7 = vpop.eup %3772  ;;  %3451 = vmatprep.mubr.msk.f32.mxu1 %vm1437_vm1, %v1914_v50 }
 0x271   : > { %v3775_v51 = vpop.eup %3774  ;;  %v1880_v47 = vsel %vm1816_vm12, %v3773_v7, 0.0  ;;  %3452 = vmatmul.mubr.msk.f32.vlgmr.msra.gmra.mrb[28].mxu1 %vm1437_vm1, %v1915_v22 }
 0x272   : > { %v1912_v15 = vmul.f32 %v4420_v11, %v1880_v47  ;;  %v1881_v53 = vsel %vm1817_vm13, %v3775_v51, 0.0 }
 0x273   : > { %v1913_v42 = vmul.f32 %v4422_v40, %v1881_v53 }
 0x274   : > { %v3777_v27 = vpop.eup %3776  ;;  %3440 = vmatprep.mubr.msk.f32.mxu0 %vm1437_vm1, %v1912_v15 }
 0x275   : > { %v3779_v0 = vpop.eup %3778  ;;  %v1884_v10 = vsel %vm1820_vm14, %v3777_v27, 0.0  ;;  %3441 = vmatmul.mubr.msk.f32.gmra.mrb[30].mxu0 %vm1437_vm1, %v1913_v42 }
 0x276   : > { %v1916_v34 = vmul.f32 %v4428_v2, %v1884_v10  ;;  %v1885_v35 = vsel %vm1821_vm15, %v3779_v0, 0.0 }
 0x277   : > { %v1917_v36 = vmul.f32 %v4430_v54, %v1885_v35 }
 0x278   : > { %3454 = vmatprep.mubr.msk.f32.mxu1 %vm1437_vm1, %v1916_v34 }
 0x279   : > { %3455 = vmatmul.mubr.msk.f32.gmra.mrb[30].mxu1 %vm1437_vm1, %v1917_v36  ;;  %vm2735_vm1 = vcmask 392448  }
 0x310   : > { %v3355_v11 = vpop.f32.mrb[16].mxu0 }
 0x311   : > { %2695 = vst.msk [vmem:[%s4542_s19 + $0x8] sm:$0xff] %vm564_vm0, %v3355_v11  ;;  %v1996_v40 = vpop.f32.mrb[17].mxu0 }
 0x312   : > { %2694 = vst.msk [vmem:[%s4542_s19] sm:$0xff] %vm564_vm0, %v1996_v40 }
 0x314   : > { %v3369_v2 = vpop.f32.mrb[16].mxu1 }
 0x315   : > { %2704 = vrot.lane.b32.xlu0 %v3369_v2, %s3806_s20  ;;  %v2093_v54 = vpop.f32.mrb[17].mxu1 }
 0x316   : > { %2702 = vrot.lane.b32.xlu1 %v2093_v54, %s3806_s20 }
 0x318   : > { %v3358_v43 = vpop.f32.mrb[18].mxu0 }
 0x319   : > { %2697 = vst.msk [vmem:[%s4542_s19 + $0x18] sm:$0xff] %vm564_vm0, %v3358_v43  ;;  %v2006_v38 = vpop.f32.mrb[19].mxu0 }
 0x31a   : > { %2696 = vst.msk [vmem:[%s4542_s19 + $0x10] sm:$0xff] %vm564_vm0, %v2006_v38  ;;  %vm2714_vm0 = vcmask 261248  }
 0x31c   : > { %v3372_v30 = vpop.f32.mrb[18].mxu1 }
 0x31d   : > { %2708 = vrot.lane.b32.xlu1 %v3372_v30, %s3806_s20  ;;  %v2103_v58 = vpop.f32.mrb[19].mxu1 }
 0x320   : > { %v3383_v57 = vpop.f32.mrb[20].mxu0 }
 0x321   : > { %2706 = vrot.lane.b32.xlu1 %v2103_v58, %s3806_s20  ;;  %v2190_v4 = vpop.f32.mrb[21].mxu0 }
 0x322   : > { %2723 = vrot.lane.b32.xlu0 %v2190_v4, %s3807_s24 }
 0x324   : > { %v3397_v44 = vpop.f32.mrb[20].mxu1 }
 0x325   : > { %2725 = vrot.lane.b32.xlu1 %v3383_v57, %s3807_s24  ;;  %v2287_v60 = vpop.f32.mrb[21].mxu1 }
 0x326   : > { %2744 = vrot.lane.b32.xlu0 %v2287_v60, %s3808_s21 }
 0x328   : > { %v3386_v61 = vpop.f32.mrb[22].mxu0 }
 0x329   : > { %2746 = vrot.lane.b32.xlu1 %v3397_v44, %s3808_s21  ;;  %v2200_v20 = vpop.f32.mrb[23].mxu0 }
 0x32a   : > { %2727 = vrot.lane.b32.xlu0 %v2200_v20, %s3807_s24 }
 0x32c   : > { %v3400_v21 = vpop.f32.mrb[22].mxu1 }
 0x32d   : > { %2729 = vrot.lane.b32.xlu1 %v3386_v61, %s3807_s24  ;;  %v2297_v63 = vpop.f32.mrb[23].mxu1 }
 0x32e   : > { %2748 = vrot.lane.b32.xlu0 %v2297_v63, %s3808_s21 }
 0x330   : > { %v3411_v8 = vpop.f32.mrb[24].mxu0 }
 0x331   : > { %2750 = vrot.lane.b32.xlu1 %v3400_v21, %s3808_s21  ;;  %v2384_v9 = vpop.f32.mrb[25].mxu0 }
 0x332   : > { %2765 = vrot.lane.b32.xlu0 %v2384_v9, %s3809_s22 }
 0x334   : > { %v3425_v45 = vpop.f32.mrb[24].mxu1 }
 0x335   : > { %2767 = vrot.lane.b32.xlu1 %v3411_v8, %s3809_s22  ;;  %v2481_v24 = vpop.f32.mrb[25].mxu1 }
 0x336   : > { %2786 = vrot.lane.b32.xlu0 %v2481_v24, %s3810_s23 }
 0x338   : > { %v3414_v6 = vpop.f32.mrb[26].mxu0 }
 0x339   : > { %2788 = vrot.lane.b32.xlu1 %v3425_v45, %s3810_s23  ;;  %v2394_v14 = vpop.f32.mrb[27].mxu0 }
 0x33a   : > { %2769 = vrot.lane.b32.xlu0 %v2394_v14, %s3809_s22 }
 0x33c   : > { %v3428_v28 = vpop.f32.mrb[26].mxu1 }
 0x33d   : > { %2771 = vrot.lane.b32.xlu1 %v3414_v6, %s3809_s22  ;;  %v2491_v52 = vpop.f32.mrb[27].mxu1 }
 0x33e   : > { %2790 = vrot.lane.b32.xlu0 %v2491_v52, %s3810_s23 }
 0x340   : > { %v3439_v37 = vpop.f32.mrb[28].mxu0 }
 0x341   : > { %2792 = vrot.lane.b32.xlu1 %v3428_v28, %s3810_s23  ;;  %v2578_v55 = vpop.f32.mrb[29].mxu0 }
 0x342   : > { %2807 = vrot.lane.b32.xlu0 %v2578_v55, %s3811_s28 }
 0x344   : > { %v3453_v39 = vpop.f32.mrb[28].mxu1 }
 0x345   : > { %2809 = vrot.lane.b32.xlu1 %v3439_v37, %s3811_s28  ;;  %v2675_v31 = vpop.f32.mrb[29].mxu1 }
 0x346   : > { %2828 = vrot.lane.b32.xlu0 %v2675_v31, %s3812_s29 }
 0x348   : > { %v3442_v1 = vpop.f32.mrb[30].mxu0 }
 0x349   : > { %2830 = vrot.lane.b32.xlu1 %v3453_v39, %s3812_s29  ;;  %v2588_v46 = vpop.f32.mrb[31].mxu0 }
 0x34a   : > { %2811 = vrot.lane.b32.xlu0 %v2588_v46, %s3811_s28 }
 0x34c   : > { %v3456_v59 = vpop.f32.mrb[30].mxu1 }
 0x34d   : > { %2813 = vrot.lane.b32.xlu1 %v3442_v1, %s3811_s28  ;;  %v2685_v18 = vpop.f32.mrb[31].mxu1 }
 0x34e   : > { %2832 = vrot.lane.b32.xlu0 %v2685_v18, %s3812_s29 }
 0x351   : > { %2834 = vrot.lane.b32.xlu1 %v3456_v59, %s3812_s29 }
 0x387   : > { %v2705_v19 = vpop.permute.xlu0 %2704 }
 0x388   : > { %2716 = vst.msk [vmem:[%s4542_s19 + $0x8] sm:$0xff] %vm2714_vm0, %v2705_v19  ;;  %v2703_v25 = vpop.permute.xlu1 %2702 }
 0x389   : > { %2715 = vst.msk [vmem:[%s4542_s19] sm:$0xff] %vm2714_vm0, %v2703_v25 }
 0x38f   : > { %v2709_v12 = vpop.permute.xlu1 %2708 }
 0x390   : > { %2718 = vst.msk [vmem:[%s4542_s19 + $0x18] sm:$0xff] %vm2714_vm0, %v2709_v12 }
 0x393   : > { %v2707_v26 = vpop.permute.xlu1 %2706 }
 0x394   : > { %2717 = vst.msk [vmem:[%s4542_s19 + $0x10] sm:$0xff] %vm2714_vm0, %v2707_v26  ;;  %v2724_v41 = vpop.permute.xlu0 %2723 }
 0x395   : > { %2736 = vst.msk [vmem:[%s4542_s19] sm:$0xff] %vm2735_vm1, %v2724_v41 }
 0x397   : > { %v2726_v5 = vpop.permute.xlu1 %2725 }
 0x398   : > { %2737 = vst.msk [vmem:[%s4542_s19 + $0x8] sm:$0xff] %vm2735_vm1, %v2726_v5  ;;  %v2745_v49 = vpop.permute.xlu0 %2744 }
 0x399   : > { %2757 = vst.msk [vmem:[%s4542_s19] sm:$0xff] %vm2756_vm2, %v2745_v49 }
 0x39b   : > { %v2747_v17 = vpop.permute.xlu1 %2746 }
 0x39c   : > { %2758 = vst.msk [vmem:[%s4542_s19 + $0x8] sm:$0xff] %vm2756_vm2, %v2747_v17  ;;  %v2728_v33 = vpop.permute.xlu0 %2727 }
 0x39d   : > { %2738 = vst.msk [vmem:[%s4542_s19 + $0x10] sm:$0xff] %vm2735_vm1, %v2728_v33 }
 0x39f   : > { %v2730_v23 = vpop.permute.xlu1 %2729 }
 0x3a0   : > { %2739 = vst.msk [vmem:[%s4542_s19 + $0x18] sm:$0xff] %vm2735_vm1, %v2730_v23  ;;  %v2749_v48 = vpop.permute.xlu0 %2748 }
 0x3a1   : > { %2759 = vst.msk [vmem:[%s4542_s19 + $0x10] sm:$0xff] %vm2756_vm2, %v2749_v48 }
 0x3a3   : > { %v2751_v32 = vpop.permute.xlu1 %2750 }
 0x3a4   : > { %2760 = vst.msk [vmem:[%s4542_s19 + $0x18] sm:$0xff] %vm2756_vm2, %v2751_v32  ;;  %v2766_v3 = vpop.permute.xlu0 %2765 }
 0x3a5   : > { %2778 = vst.msk [vmem:[%s4542_s19] sm:$0xff] %vm2777_vm3, %v2766_v3 }
 0x3a7   : > { %v2768_v62 = vpop.permute.xlu1 %2767 }
 0x3a8   : > { %2779 = vst.msk [vmem:[%s4542_s19 + $0x8] sm:$0xff] %vm2777_vm3, %v2768_v62  ;;  %v2787_v56 = vpop.permute.xlu0 %2786 }
 0x3a9   : > { %2799 = vst.msk [vmem:[%s4542_s19] sm:$0xff] %vm2798_vm4, %v2787_v56 }
 0x3ab   : > { %v2789_v13 = vpop.permute.xlu1 %2788 }
 0x3ac   : > { %2800 = vst.msk [vmem:[%s4542_s19 + $0x8] sm:$0xff] %vm2798_vm4, %v2789_v13  ;;  %v2770_v16 = vpop.permute.xlu0 %2769 }
 0x3ad   : > { %2780 = vst.msk [vmem:[%s4542_s19 + $0x10] sm:$0xff] %vm2777_vm3, %v2770_v16 }
 0x3af   : > { %v2772_v50 = vpop.permute.xlu1 %2771 }
 0x3b0   : > { %2781 = vst.msk [vmem:[%s4542_s19 + $0x18] sm:$0xff] %vm2777_vm3, %v2772_v50  ;;  %v2791_v29 = vpop.permute.xlu0 %2790 }
 0x3b1   : > { %2801 = vst.msk [vmem:[%s4542_s19 + $0x10] sm:$0xff] %vm2798_vm4, %v2791_v29 }
 0x3b3   : > { %v2793_v22 = vpop.permute.xlu1 %2792 }
 0x3b4   : > { %2802 = vst.msk [vmem:[%s4542_s19 + $0x18] sm:$0xff] %vm2798_vm4, %v2793_v22  ;;  %v2808_v7 = vpop.permute.xlu0 %2807 }
 0x3b5   : > { %2820 = vst.msk [vmem:[%s4542_s19] sm:$0xff] %vm2819_vm5, %v2808_v7 }
 0x3b7   : > { %v2810_v51 = vpop.permute.xlu1 %2809 }
 0x3b8   : > { %2821 = vst.msk [vmem:[%s4542_s19 + $0x8] sm:$0xff] %vm2819_vm5, %v2810_v51  ;;  %v2829_v47 = vpop.permute.xlu0 %2828 }
 0x3b9   : > { %2841 = vst.msk [vmem:[%s4542_s19] sm:$0xff] %vm2840_vm6, %v2829_v47 }
 0x3bb   : > { %v2831_v15 = vpop.permute.xlu1 %2830 }
 0x3bc   : > { %2842 = vst.msk [vmem:[%s4542_s19 + $0x8] sm:$0xff] %vm2840_vm6, %v2831_v15  ;;  %v2812_v53 = vpop.permute.xlu0 %2811 }
 0x3bd   : > { %2822 = vst.msk [vmem:[%s4542_s19 + $0x10] sm:$0xff] %vm2819_vm5, %v2812_v53 }
 0x3bf   : > { %v2814_v42 = vpop.permute.xlu1 %2813 }
 0x3c0   : > { %2823 = vst.msk [vmem:[%s4542_s19 + $0x18] sm:$0xff] %vm2819_vm5, %v2814_v42  ;;  %v2833_v27 = vpop.permute.xlu0 %2832 }
 0x3c1   : > { %2843 = vst.msk [vmem:[%s4542_s19 + $0x10] sm:$0xff] %vm2840_vm6, %v2833_v27 }
 0x3c3   : > { %v2835_v0 = vpop.permute.xlu1 %2834 }
 0x3c4   : > { %2844 = vst.msk [vmem:[%s4542_s19 + $0x18] sm:$0xff] %vm2840_vm6, %v2835_v0 }
 0x3c5 PF: > { %s17_s26 = sadd.s32 1, %s3802_s26   ;;  %s4599_s24 = smov %s3798_s25 }
 0x3c6   : > { %p14_p5 = scmp.ge.s32.totalorder %s17_s26, 4   ;;  %s4600_s25 = smov %s4602_s27 }
 0x3c8   :  { %16 = sbr.rel (!%p14_p5) target bundleno = 2 (0x2), region = 90 }

</bundles_post_ra>
